<compile_context>
chip_gen: v5e
topology: v5e:2x2
jax: 0.10.0
libtpu: 0.0.40
codegen_flags: <defaults>
</compile_context>

<pallas_src>
import math
import numpy as np
import jax
import jax.numpy as jnp
from jax.experimental import pallas as pl
from jax.experimental.pallas import tpu as pltpu

# Small, module-consistent hyper-parameters.
SEQ = 16          # model.sequence_length (fixed context window)
D = 32            # hidden_features
H = 4             # nhead
NUM_LAYERS = 2    # num_layers
VOCAB = 32        # vocab_size
EPS = 1e-5        # nn.LayerNorm default eps

_WEIGHT_ORDER = ('w_qkv', 'b_qkv', 'wo', 'bo', 'g1', 'b1n',
                 'w1', 'b1', 'w2', 'b2', 'g2', 'b2n', 'w_out', 'b_out')


# ----------------------------------------------------------------------------- kernel

def _gpt_forward_kernel(x_ref, wqkv_ref, bqkv_ref, wo_ref, bo_ref,
                        g1_ref, b1n_ref, w1_ref, b1_ref, w2_ref, b2_ref,
                        g2_ref, b2n_ref, wout_ref, bout_ref, out_ref):
    """Fused forward: NUM_LAYERS post-norm encoder layers + vocab projection.

    x_ref block is (R, D) with R = (sequences in this grid step) * SEQ; sequences are
    contiguous SEQ-row blocks, so causal attention uses a block-diagonal mask over (R, R).
    """
    R = x_ref.shape[0]
    x = x_ref[...]                                            # (R, D) f32

    # Block-diagonal causal mask built in-kernel (no mask input / DMA).
    ri = jax.lax.broadcasted_iota(jnp.int32, (R, R), 0)
    ci = jax.lax.broadcasted_iota(jnp.int32, (R, R), 1)
    if SEQ & (SEQ - 1) == 0:                                  # power-of-two fast path
        sh = SEQ.bit_length() - 1
        rblk, cblk = ri >> sh, ci >> sh
    else:
        rblk, cblk = ri // SEQ, ci // SEQ
    allowed = (rblk == cblk) & (ci <= ri)                     # (R, R) bool

    dh = D // H
    scale = 1.0 / math.sqrt(dh)
    neg_big = jnp.float32(-1e30)

    for l in range(NUM_LAYERS):                               # static unroll over layers
        w_qkv = wqkv_ref[l]
        b_qkv = bqkv_ref[l]
        w_o = wo_ref[l]
        b_o = bo_ref[l]
        g1, b1n = g1_ref[l], b1n_ref[l]
        w1, b1 = w1_ref[l], b1_ref[l]
        w2, b2 = w2_ref[l], b2_ref[l]
        g2, b2n = g2_ref[l], b2n_ref[l]

        # Fused QKV projection: one (R, D) @ (D, 3D) MXU pass.
        qkv = jnp.dot(x, w_qkv, preferred_element_type=jnp.float32) + b_qkv   # (R, 3D)

        # Multi-head causal attention; accumulate Wo projection per head (no concat).
        attn = jnp.zeros((R, D), jnp.float32)
        for h in range(H):                                    # static unroll over heads
            qh = qkv[:, h * dh:(h + 1) * dh]                  # (R, dh)
            kh = qkv[:, D + h * dh:D + (h + 1) * dh]
            vh = qkv[:, 2 * D + h * dh:2 * D + (h + 1) * dh]
            s = jax.lax.dot_general(qh, kh, (((1,), (1,)), ((), ())),
                                    preferred_element_type=jnp.float32) * scale   # (R, R)
            s = jnp.where(allowed, s, neg_big)
            s = s - jnp.max(s, axis=-1, keepdims=True)
            p = jnp.exp(s)
            p = p * pl.reciprocal(jnp.sum(p, axis=-1, keepdims=True), approx=True)
            ctx = jnp.dot(p, vh, preferred_element_type=jnp.float32)              # (R, dh)
            attn = attn + jnp.dot(ctx, w_o[h * dh:(h + 1) * dh, :],
                                  preferred_element_type=jnp.float32)             # (R, D)
        attn = attn + b_o

        # residual + LayerNorm1 (post-norm, PyTorch default)
        h1 = x + attn
        m1 = jnp.mean(h1, axis=-1, keepdims=True)
        v1 = jnp.mean((h1 - m1) ** 2, axis=-1, keepdims=True)
        h1 = (h1 - m1) * jax.lax.rsqrt(v1 + EPS) * g1 + b1n

        # feed-forward (Linear -> ReLU -> Linear) + residual + LayerNorm2
        f = jnp.dot(h1, w1, preferred_element_type=jnp.float32) + b1
        f = jnp.maximum(f, 0.0)
        f = jnp.dot(f, w2, preferred_element_type=jnp.float32) + b2
        h2 = h1 + f
        m2 = jnp.mean(h2, axis=-1, keepdims=True)
        v2 = jnp.mean((h2 - m2) ** 2, axis=-1, keepdims=True)
        x = (h2 - m2) * jax.lax.rsqrt(v2 + EPS) * g2 + b2n

    # Final vocab projection, written as one lane-dense (R, VOCAB) slab.
    out_ref[...] = (jnp.dot(x, wout_ref[...], preferred_element_type=jnp.float32)
                    + bout_ref[...])


# ----------------------------------------------------------------------------- wrapper

def _replicated_spec(arr):
    nd = arr.ndim
    return pl.BlockSpec(arr.shape, lambda g, _nd=nd: (0,) * _nd)


def _fused_forward(x_flat, packed, G):
    """x_flat: (B*SEQ, D) activations; one pallas_call for the whole transformer stack."""
    Rtot, Dm = x_flat.shape
    R = Rtot // G
    weights = [packed[k] for k in _WEIGHT_ORDER]
    return pl.pallas_call(
        _gpt_forward_kernel,
        out_shape=jax.ShapeDtypeStruct((Rtot, VOCAB), jnp.float32),
        grid=(G,),
        in_specs=[pl.BlockSpec((R, Dm), lambda g: (g, 0))]
                 + [_replicated_spec(w) for w in weights],
        out_specs=pl.BlockSpec((R, VOCAB), lambda g: (g, 0)),
        compiler_params=pltpu.CompilerParams(dimension_semantics=("parallel",)),
    )(x_flat, *weights)


# ----------------------------------------------------------------------------- model glue

def forward(packed, ids):
    """Mirrors Model.forward: crop/pad to SEQ, embed, pos-enc, shift-by-one, N encoder
    layers with causal mask, vocab projection, slice back to input length."""
    B, L = ids.shape
    val = ids[:, max(0, L - SEQ):]
    pad = SEQ - val.shape[1]
    if pad > 0:
        val = jnp.concatenate([val, jnp.zeros((B, pad), jnp.int32)], axis=1)
    x = packed['tok_emb'][val]                               # (B, SEQ, D)
    x = x + packed['pos_emb'][None, :, :]
    # TODO(synk): dropout (p=0.1) in LearnablePosEnc / encoder layers is an eval-mode identity here.
    x = jnp.concatenate([jnp.zeros((B, 1, D), jnp.float32), x[:, :-1]], axis=1)

    x_flat = x.reshape(B * SEQ, D)                           # fold batch into matmul rows
    G = 2 if (B % 2 == 0 and B >= 2) else 1                  # 2-way split keeps v7x's 2 TCs busy
    logits_flat = _fused_forward(x_flat, packed, G)          # single fused pallas_call
    logits = logits_flat.reshape(B, SEQ, VOCAB)
    return logits[:, :L]


# ----------------------------------------------------------------------------- reference (plain JAX)

def _ref_layernorm(x, g, b):
    m = jnp.mean(x, axis=-1, keepdims=True)
    v = jnp.mean((x - m) ** 2, axis=-1, keepdims=True)
    return (x - m) * jax.lax.rsqrt(v + EPS) * g + b


def _causal_mask_additive(S):
    row = jnp.arange(S)[:, None]
    col = jnp.arange(S)[None, :]
    return jnp.where(col <= row, 0.0, -jnp.inf).astype(jnp.float32)


def _ref_layer(x, mask, p):
    B, S, Dm = x.shape
    dh = Dm // H
    q = x @ p['wq'] + p['bq']
    k = x @ p['wk'] + p['bk']
    v = x @ p['wv'] + p['bv']
    sp = lambda t: t.reshape(B, S, H, dh).transpose(0, 2, 1, 3)
    s = jnp.einsum('bhqd,bhkd->bhqk', sp(q), sp(k)) / math.sqrt(dh) + mask
    a = jnp.einsum('bhqk,bhkd->bhqd', jax.nn.softmax(s, axis=-1), sp(v))
    a = a.transpose(0, 2, 1, 3).reshape(B, S, Dm) @ p['wo'] + p['bo']
    h1 = _ref_layernorm(x + a, p['g1'], p['b1n'])
    f = jnp.maximum(h1 @ p['w1'] + p['b1'], 0.0) @ p['w2'] + p['b2']
    return _ref_layernorm(h1 + f, p['g2'], p['b2n'])


def reference_forward(params, ids):
    B, L = ids.shape
    val = ids[:, max(0, L - SEQ):]
    pad = SEQ - val.shape[1]
    if pad > 0:
        val = jnp.concatenate([val, jnp.zeros((B, pad), jnp.int32)], axis=1)
    x = params['tok_emb'][val] + params['pos_emb'][None, :, :]
    x = jnp.concatenate([jnp.zeros((B, 1, D), jnp.float32), x[:, :-1]], axis=1)
    mask = _causal_mask_additive(SEQ)
    for lp in params['layers']:
        x = _ref_layer(x, mask, lp)
    return (x @ params['w_out'] + params['b_out'])[:, :L]


# ----------------------------------------------------------------------------- params

def init_params(key):
    ks = jax.random.split(key, 8 + NUM_LAYERS * 16)
    it = iter(ks)

    def rnd(shape, scale=0.05):
        return (scale * jax.random.normal(next(it), shape)).astype(jnp.float32)

    params = {
        'tok_emb': rnd((VOCAB, D), 0.1),
        'pos_emb': rnd((SEQ, D), 0.1),
        'w_out': rnd((D, VOCAB)),
        'b_out': rnd((1, VOCAB)),
        'layers': [],
    }
    for _ in range(NUM_LAYERS):
        params['layers'].append(dict(
            wq=rnd((D, D)), wk=rnd((D, D)), wv=rnd((D, D)),
            bq=rnd((1, D)), bk=rnd((1, D)), bv=rnd((1, D)),
            wo=rnd((D, D)), bo=rnd((1, D)),
            g1=jnp.ones((1, D), jnp.float32), b1n=jnp.zeros((1, D), jnp.float32),
            w1=rnd((D, 2 * D)), b1=rnd((1, 2 * D)),
            w2=rnd((2 * D, D)), b2=rnd((1, D)),
            g2=jnp.ones((1, D), jnp.float32), b2n=jnp.zeros((1, D), jnp.float32),
        ))
    return params


def pack_params(params):
    """Stack per-layer weights along a leading layer axis; fuse Wq/Wk/Wv -> W_qkv."""
    layers = params['layers']
    stack = lambda k: jnp.stack([lp[k] for lp in layers])
    w_qkv = jnp.stack([jnp.concatenate([lp['wq'], lp['wk'], lp['wv']], axis=1)
                       for lp in layers])                       # (NL, D, 3D)
    b_qkv = jnp.stack([jnp.concatenate([lp['bq'], lp['bk'], lp['bv']], axis=1)
                       for lp in layers])                       # (NL, 1, 3D)
    return dict(
        tok_emb=params['tok_emb'], pos_emb=params['pos_emb'],
        w_qkv=w_qkv, b_qkv=b_qkv,
        wo=stack('wo'), bo=stack('bo'),
        g1=stack('g1'), b1n=stack('b1n'),
        w1=stack('w1'), b1=stack('b1'),
        w2=stack('w2'), b2=stack('b2'),
        g2=stack('g2'), b2n=stack('b2n'),
        w_out=params['w_out'], b_out=params['b_out'],
    )


# ----------------------------------------------------------------------------- main

if __name__ == "__main__":
    key = jax.random.PRNGKey(0)
    pkey, ikey = jax.random.split(key)
    params = init_params(pkey)
    packed = pack_params(params)

    B, L = 4, 8                                    # batch=4, prompt length=8 tokens
    ids = jax.random.randint(ikey, (B, L), 0, VOCAB, dtype=jnp.int32)

    fwd = jax.jit(forward)
    logits = fwd(packed, ids)
    logits = jax.block_until_ready(logits)
    assert logits.shape == (B, L, VOCAB) and logits.dtype == jnp.float32

    ref = reference_forward(params, ids)
    np.testing.assert_allclose(np.asarray(logits), np.asarray(ref), atol=2e-3, rtol=2e-3)

    print("KERNEL_OK")
</pallas_src>

<mosaic_0001>
module attributes {stable_mosaic.version = 11 : i64} {
  func.func @_gpt_forward_kernel(%arg0: i32, %arg1: memref<32x32xf32, #tpu.memory_space<vmem>>, %arg2: memref<2x32x96xf32, #tpu.memory_space<vmem>>, %arg3: memref<2x1x96xf32, #tpu.memory_space<vmem>>, %arg4: memref<2x32x32xf32, #tpu.memory_space<vmem>>, %arg5: memref<2x1x32xf32, #tpu.memory_space<vmem>>, %arg6: memref<2x1x32xf32, #tpu.memory_space<vmem>>, %arg7: memref<2x1x32xf32, #tpu.memory_space<vmem>>, %arg8: memref<2x32x64xf32, #tpu.memory_space<vmem>>, %arg9: memref<2x1x64xf32, #tpu.memory_space<vmem>>, %arg10: memref<2x64x32xf32, #tpu.memory_space<vmem>>, %arg11: memref<2x1x32xf32, #tpu.memory_space<vmem>>, %arg12: memref<2x1x32xf32, #tpu.memory_space<vmem>>, %arg13: memref<2x1x32xf32, #tpu.memory_space<vmem>>, %arg14: memref<32x32xf32, #tpu.memory_space<vmem>>, %arg15: memref<1x32xf32, #tpu.memory_space<vmem>>, %arg16: memref<32x32xf32, #tpu.memory_space<vmem>>) attributes {dimension_semantics = [#tpu.dimension_semantics<parallel>], iteration_bounds = array<i64: 2>, scalar_prefetch = 0 : i64, scratch_operands = 0 : i64, tpu.core_type = #tpu.core_type<tc>, window_params = [{transform_indices = @transform_0, window_bounds = array<i64: 32, 32>}, {pipeline_mode = #tpu.pipeline_mode<synchronous>, transform_indices = @transform_1, window_bounds = array<i64: 2, 32, 96>}, {pipeline_mode = #tpu.pipeline_mode<synchronous>, transform_indices = @transform_2, window_bounds = array<i64: 2, 1, 96>}, {pipeline_mode = #tpu.pipeline_mode<synchronous>, transform_indices = @transform_3, window_bounds = array<i64: 2, 32, 32>}, {pipeline_mode = #tpu.pipeline_mode<synchronous>, transform_indices = @transform_4, window_bounds = array<i64: 2, 1, 32>}, {pipeline_mode = #tpu.pipeline_mode<synchronous>, transform_indices = @transform_5, window_bounds = array<i64: 2, 1, 32>}, {pipeline_mode = #tpu.pipeline_mode<synchronous>, transform_indices = @transform_6, window_bounds = array<i64: 2, 1, 32>}, {pipeline_mode = #tpu.pipeline_mode<synchronous>, transform_indices = @transform_7, window_bounds = array<i64: 2, 32, 64>}, {pipeline_mode = #tpu.pipeline_mode<synchronous>, transform_indices = @transform_8, window_bounds = array<i64: 2, 1, 64>}, {pipeline_mode = #tpu.pipeline_mode<synchronous>, transform_indices = @transform_9, window_bounds = array<i64: 2, 64, 32>}, {pipeline_mode = #tpu.pipeline_mode<synchronous>, transform_indices = @transform_10, window_bounds = array<i64: 2, 1, 32>}, {pipeline_mode = #tpu.pipeline_mode<synchronous>, transform_indices = @transform_11, window_bounds = array<i64: 2, 1, 32>}, {pipeline_mode = #tpu.pipeline_mode<synchronous>, transform_indices = @transform_12, window_bounds = array<i64: 2, 1, 32>}, {pipeline_mode = #tpu.pipeline_mode<synchronous>, transform_indices = @transform_13, window_bounds = array<i64: 32, 32>}, {pipeline_mode = #tpu.pipeline_mode<synchronous>, transform_indices = @transform_14, window_bounds = array<i64: 1, 32>}, {transform_indices = @transform_15, window_bounds = array<i64: 32, 32>}]} {
    %c0 = arith.constant 0 : index
    %c0_0 = arith.constant 0 : index
    %0 = vector.load %arg1[%c0, %c0_0] : memref<32x32xf32, #tpu.memory_space<vmem>>, vector<32x32xf32>
    %1 = tpu.iota {dimensions = array<i32: 0>} : vector<32x32xi32>
    %2 = tpu.iota {dimensions = array<i32: 1>} : vector<32x32xi32>
    %c4_i32 = arith.constant 4 : i32
    %3 = vector.broadcast %c4_i32 : i32 to vector<32x32xi32>
    %4 = arith.shrsi %1, %3 : vector<32x32xi32>
    %c4_i32_1 = arith.constant 4 : i32
    %5 = vector.broadcast %c4_i32_1 : i32 to vector<32x32xi32>
    %6 = arith.shrsi %2, %5 : vector<32x32xi32>
    %7 = arith.cmpi eq, %4, %6 : vector<32x32xi32>
    %8 = arith.cmpi sle, %2, %1 : vector<32x32xi32>
    %9 = arith.andi %7, %8 : vector<32x32xi1>
    %c0_2 = arith.constant 0 : index
    %c0_3 = arith.constant 0 : index
    %c0_4 = arith.constant 0 : index
    %10 = vector.load %arg2[%c0_2, %c0_3, %c0_4] : memref<2x32x96xf32, #tpu.memory_space<vmem>>, vector<1x32x96xf32>
    %11 = vector.shape_cast %10 : vector<1x32x96xf32> to vector<32x96xf32>
    %c0_5 = arith.constant 0 : index
    %c0_6 = arith.constant 0 : index
    %c0_7 = arith.constant 0 : index
    %12 = vector.load %arg3[%c0_5, %c0_6, %c0_7] : memref<2x1x96xf32, #tpu.memory_space<vmem>>, vector<1x1x96xf32>
    %13 = vector.shape_cast %12 : vector<1x1x96xf32> to vector<1x96xf32>
    %c0_8 = arith.constant 0 : index
    %c0_9 = arith.constant 0 : index
    %c0_10 = arith.constant 0 : index
    %14 = vector.load %arg4[%c0_8, %c0_9, %c0_10] : memref<2x32x32xf32, #tpu.memory_space<vmem>>, vector<1x32x32xf32>
    %15 = vector.shape_cast %14 : vector<1x32x32xf32> to vector<32x32xf32>
    %c0_11 = arith.constant 0 : index
    %c0_12 = arith.constant 0 : index
    %c0_13 = arith.constant 0 : index
    %16 = vector.load %arg5[%c0_11, %c0_12, %c0_13] : memref<2x1x32xf32, #tpu.memory_space<vmem>>, vector<1x1x32xf32>
    %17 = vector.shape_cast %16 : vector<1x1x32xf32> to vector<1x32xf32>
    %c0_14 = arith.constant 0 : index
    %c0_15 = arith.constant 0 : index
    %c0_16 = arith.constant 0 : index
    %18 = vector.load %arg6[%c0_14, %c0_15, %c0_16] : memref<2x1x32xf32, #tpu.memory_space<vmem>>, vector<1x1x32xf32>
    %19 = vector.shape_cast %18 : vector<1x1x32xf32> to vector<1x32xf32>
    %c0_17 = arith.constant 0 : index
    %c0_18 = arith.constant 0 : index
    %c0_19 = arith.constant 0 : index
    %20 = vector.load %arg7[%c0_17, %c0_18, %c0_19] : memref<2x1x32xf32, #tpu.memory_space<vmem>>, vector<1x1x32xf32>
    %21 = vector.shape_cast %20 : vector<1x1x32xf32> to vector<1x32xf32>
    %c0_20 = arith.constant 0 : index
    %c0_21 = arith.constant 0 : index
    %c0_22 = arith.constant 0 : index
    %22 = vector.load %arg8[%c0_20, %c0_21, %c0_22] : memref<2x32x64xf32, #tpu.memory_space<vmem>>, vector<1x32x64xf32>
    %23 = vector.shape_cast %22 : vector<1x32x64xf32> to vector<32x64xf32>
    %c0_23 = arith.constant 0 : index
    %c0_24 = arith.constant 0 : index
    %c0_25 = arith.constant 0 : index
    %24 = vector.load %arg9[%c0_23, %c0_24, %c0_25] : memref<2x1x64xf32, #tpu.memory_space<vmem>>, vector<1x1x64xf32>
    %25 = vector.shape_cast %24 : vector<1x1x64xf32> to vector<1x64xf32>
    %c0_26 = arith.constant 0 : index
    %c0_27 = arith.constant 0 : index
    %c0_28 = arith.constant 0 : index
    %26 = vector.load %arg10[%c0_26, %c0_27, %c0_28] : memref<2x64x32xf32, #tpu.memory_space<vmem>>, vector<1x64x32xf32>
    %27 = vector.shape_cast %26 : vector<1x64x32xf32> to vector<64x32xf32>
    %c0_29 = arith.constant 0 : index
    %c0_30 = arith.constant 0 : index
    %c0_31 = arith.constant 0 : index
    %28 = vector.load %arg11[%c0_29, %c0_30, %c0_31] : memref<2x1x32xf32, #tpu.memory_space<vmem>>, vector<1x1x32xf32>
    %29 = vector.shape_cast %28 : vector<1x1x32xf32> to vector<1x32xf32>
    %c0_32 = arith.constant 0 : index
    %c0_33 = arith.constant 0 : index
    %c0_34 = arith.constant 0 : index
    %30 = vector.load %arg12[%c0_32, %c0_33, %c0_34] : memref<2x1x32xf32, #tpu.memory_space<vmem>>, vector<1x1x32xf32>
    %31 = vector.shape_cast %30 : vector<1x1x32xf32> to vector<1x32xf32>
    %c0_35 = arith.constant 0 : index
    %c0_36 = arith.constant 0 : index
    %c0_37 = arith.constant 0 : index
    %32 = vector.load %arg13[%c0_35, %c0_36, %c0_37] : memref<2x1x32xf32, #tpu.memory_space<vmem>>, vector<1x1x32xf32>
    %33 = vector.shape_cast %32 : vector<1x1x32xf32> to vector<1x32xf32>
    %cst = arith.constant dense<0.000000e+00> : vector<32x96xf32>
    %34 = tpu.matmul %0, %11, %cst {dimension_numbers = #tpu.dot_dimension_numbers<[1], [0], [0], [1], [0, 0, 1, 1], [], []>} : vector<32x32xf32>, vector<32x96xf32>, vector<32x96xf32> -> vector<32x96xf32>
    %35 = vector.broadcast %13 : vector<1x96xf32> to vector<32x96xf32>
    %36 = arith.addf %34, %35 : vector<32x96xf32>
    %cst_38 = arith.constant 0.000000e+00 : f32
    %37 = vector.broadcast %cst_38 : f32 to vector<32x32xf32>
    %38 = vector.extract_strided_slice %36 {offsets = [0, 0], sizes = [32, 8], strides = [1, 1]} : vector<32x96xf32> to vector<32x8xf32>
    %39 = vector.extract_strided_slice %36 {offsets = [0, 32], sizes = [32, 8], strides = [1, 1]} : vector<32x96xf32> to vector<32x8xf32>
    %40 = vector.extract_strided_slice %36 {offsets = [0, 64], sizes = [32, 8], strides = [1, 1]} : vector<32x96xf32> to vector<32x8xf32>
    %cst_39 = arith.constant dense<0.000000e+00> : vector<32x32xf32>
    %41 = tpu.matmul %38, %39, %cst_39 {dimension_numbers = #tpu.dot_dimension_numbers<[1], [1], [0], [0], [0, 0, 1, 0], [], []>} : vector<32x8xf32>, vector<32x8xf32>, vector<32x32xf32> -> vector<32x32xf32>
    %cst_40 = arith.constant 0.353553385 : f32
    %42 = vector.broadcast %cst_40 : f32 to vector<32x32xf32>
    %43 = arith.mulf %41, %42 : vector<32x32xf32>
    %cst_41 = arith.constant -1.000000e+30 : f32
    %44 = vector.broadcast %cst_41 : f32 to vector<32x32xf32>
    %45 = arith.select %9, %43, %44 : vector<32x32xi1>, vector<32x32xf32>
    %cst_42 = arith.constant dense<0xFF800000> : vector<32xf32>
    %46 = vector.multi_reduction <maximumf>, %45, %cst_42 [1] : vector<32x32xf32> to vector<32xf32>
    %47 = vector.shape_cast %46 : vector<32xf32> to vector<32x1xf32>
    %48 = vector.broadcast %47 : vector<32x1xf32> to vector<32x32xf32>
    %49 = arith.subf %45, %48 : vector<32x32xf32>
    %50 = math.exp %49 : vector<32x32xf32>
    %cst_43 = arith.constant dense<0.000000e+00> : vector<32xf32>
    %51 = vector.multi_reduction <add>, %50, %cst_43 [1] : vector<32x32xf32> to vector<32xf32>
    %52 = vector.shape_cast %51 : vector<32xf32> to vector<32x1xf32>
    %53 = tpu.reciprocal %52 {approx = true} : vector<32x1xf32> -> vector<32x1xf32>
    %54 = vector.broadcast %53 : vector<32x1xf32> to vector<32x32xf32>
    %55 = arith.mulf %50, %54 : vector<32x32xf32>
    %cst_44 = arith.constant dense<0.000000e+00> : vector<32x8xf32>
    %56 = tpu.matmul %55, %40, %cst_44 {dimension_numbers = #tpu.dot_dimension_numbers<[1], [0], [0], [1], [0, 0, 1, 1], [], []>} : vector<32x32xf32>, vector<32x8xf32>, vector<32x8xf32> -> vector<32x8xf32>
    %57 = vector.extract_strided_slice %15 {offsets = [0, 0], sizes = [8, 32], strides = [1, 1]} : vector<32x32xf32> to vector<8x32xf32>
    %cst_45 = arith.constant dense<0.000000e+00> : vector<32x32xf32>
    %58 = tpu.matmul %56, %57, %cst_45 {dimension_numbers = #tpu.dot_dimension_numbers<[1], [0], [0], [1], [0, 0, 1, 1], [], []>} : vector<32x8xf32>, vector<8x32xf32>, vector<32x32xf32> -> vector<32x32xf32>
    %59 = arith.addf %37, %58 : vector<32x32xf32>
    %60 = vector.extract_strided_slice %36 {offsets = [0, 8], sizes = [32, 8], strides = [1, 1]} : vector<32x96xf32> to vector<32x8xf32>
    %61 = vector.extract_strided_slice %36 {offsets = [0, 40], sizes = [32, 8], strides = [1, 1]} : vector<32x96xf32> to vector<32x8xf32>
    %62 = vector.extract_strided_slice %36 {offsets = [0, 72], sizes = [32, 8], strides = [1, 1]} : vector<32x96xf32> to vector<32x8xf32>
    %cst_46 = arith.constant dense<0.000000e+00> : vector<32x32xf32>
    %63 = tpu.matmul %60, %61, %cst_46 {dimension_numbers = #tpu.dot_dimension_numbers<[1], [1], [0], [0], [0, 0, 1, 0], [], []>} : vector<32x8xf32>, vector<32x8xf32>, vector<32x32xf32> -> vector<32x32xf32>
    %cst_47 = arith.constant 0.353553385 : f32
    %64 = vector.broadcast %cst_47 : f32 to vector<32x32xf32>
    %65 = arith.mulf %63, %64 : vector<32x32xf32>
    %cst_48 = arith.constant -1.000000e+30 : f32
    %66 = vector.broadcast %cst_48 : f32 to vector<32x32xf32>
    %67 = arith.select %9, %65, %66 : vector<32x32xi1>, vector<32x32xf32>
    %cst_49 = arith.constant dense<0xFF800000> : vector<32xf32>
    %68 = vector.multi_reduction <maximumf>, %67, %cst_49 [1] : vector<32x32xf32> to vector<32xf32>
    %69 = vector.shape_cast %68 : vector<32xf32> to vector<32x1xf32>
    %70 = vector.broadcast %69 : vector<32x1xf32> to vector<32x32xf32>
    %71 = arith.subf %67, %70 : vector<32x32xf32>
    %72 = math.exp %71 : vector<32x32xf32>
    %cst_50 = arith.constant dense<0.000000e+00> : vector<32xf32>
    %73 = vector.multi_reduction <add>, %72, %cst_50 [1] : vector<32x32xf32> to vector<32xf32>
    %74 = vector.shape_cast %73 : vector<32xf32> to vector<32x1xf32>
    %75 = tpu.reciprocal %74 {approx = true} : vector<32x1xf32> -> vector<32x1xf32>
    %76 = vector.broadcast %75 : vector<32x1xf32> to vector<32x32xf32>
    %77 = arith.mulf %72, %76 : vector<32x32xf32>
    %cst_51 = arith.constant dense<0.000000e+00> : vector<32x8xf32>
    %78 = tpu.matmul %77, %62, %cst_51 {dimension_numbers = #tpu.dot_dimension_numbers<[1], [0], [0], [1], [0, 0, 1, 1], [], []>} : vector<32x32xf32>, vector<32x8xf32>, vector<32x8xf32> -> vector<32x8xf32>
    %79 = vector.extract_strided_slice %15 {offsets = [8, 0], sizes = [8, 32], strides = [1, 1]} : vector<32x32xf32> to vector<8x32xf32>
    %cst_52 = arith.constant dense<0.000000e+00> : vector<32x32xf32>
    %80 = tpu.matmul %78, %79, %cst_52 {dimension_numbers = #tpu.dot_dimension_numbers<[1], [0], [0], [1], [0, 0, 1, 1], [], []>} : vector<32x8xf32>, vector<8x32xf32>, vector<32x32xf32> -> vector<32x32xf32>
    %81 = arith.addf %59, %80 : vector<32x32xf32>
    %82 = vector.extract_strided_slice %36 {offsets = [0, 16], sizes = [32, 8], strides = [1, 1]} : vector<32x96xf32> to vector<32x8xf32>
    %83 = vector.extract_strided_slice %36 {offsets = [0, 48], sizes = [32, 8], strides = [1, 1]} : vector<32x96xf32> to vector<32x8xf32>
    %84 = vector.extract_strided_slice %36 {offsets = [0, 80], sizes = [32, 8], strides = [1, 1]} : vector<32x96xf32> to vector<32x8xf32>
    %cst_53 = arith.constant dense<0.000000e+00> : vector<32x32xf32>
    %85 = tpu.matmul %82, %83, %cst_53 {dimension_numbers = #tpu.dot_dimension_numbers<[1], [1], [0], [0], [0, 0, 1, 0], [], []>} : vector<32x8xf32>, vector<32x8xf32>, vector<32x32xf32> -> vector<32x32xf32>
    %cst_54 = arith.constant 0.353553385 : f32
    %86 = vector.broadcast %cst_54 : f32 to vector<32x32xf32>
    %87 = arith.mulf %85, %86 : vector<32x32xf32>
    %cst_55 = arith.constant -1.000000e+30 : f32
    %88 = vector.broadcast %cst_55 : f32 to vector<32x32xf32>
    %89 = arith.select %9, %87, %88 : vector<32x32xi1>, vector<32x32xf32>
    %cst_56 = arith.constant dense<0xFF800000> : vector<32xf32>
    %90 = vector.multi_reduction <maximumf>, %89, %cst_56 [1] : vector<32x32xf32> to vector<32xf32>
    %91 = vector.shape_cast %90 : vector<32xf32> to vector<32x1xf32>
    %92 = vector.broadcast %91 : vector<32x1xf32> to vector<32x32xf32>
    %93 = arith.subf %89, %92 : vector<32x32xf32>
    %94 = math.exp %93 : vector<32x32xf32>
    %cst_57 = arith.constant dense<0.000000e+00> : vector<32xf32>
    %95 = vector.multi_reduction <add>, %94, %cst_57 [1] : vector<32x32xf32> to vector<32xf32>
    %96 = vector.shape_cast %95 : vector<32xf32> to vector<32x1xf32>
    %97 = tpu.reciprocal %96 {approx = true} : vector<32x1xf32> -> vector<32x1xf32>
    %98 = vector.broadcast %97 : vector<32x1xf32> to vector<32x32xf32>
    %99 = arith.mulf %94, %98 : vector<32x32xf32>
    %cst_58 = arith.constant dense<0.000000e+00> : vector<32x8xf32>
    %100 = tpu.matmul %99, %84, %cst_58 {dimension_numbers = #tpu.dot_dimension_numbers<[1], [0], [0], [1], [0, 0, 1, 1], [], []>} : vector<32x32xf32>, vector<32x8xf32>, vector<32x8xf32> -> vector<32x8xf32>
    %101 = vector.extract_strided_slice %15 {offsets = [16, 0], sizes = [8, 32], strides = [1, 1]} : vector<32x32xf32> to vector<8x32xf32>
    %cst_59 = arith.constant dense<0.000000e+00> : vector<32x32xf32>
    %102 = tpu.matmul %100, %101, %cst_59 {dimension_numbers = #tpu.dot_dimension_numbers<[1], [0], [0], [1], [0, 0, 1, 1], [], []>} : vector<32x8xf32>, vector<8x32xf32>, vector<32x32xf32> -> vector<32x32xf32>
    %103 = arith.addf %81, %102 : vector<32x32xf32>
    %104 = vector.extract_strided_slice %36 {offsets = [0, 24], sizes = [32, 8], strides = [1, 1]} : vector<32x96xf32> to vector<32x8xf32>
    %105 = vector.extract_strided_slice %36 {offsets = [0, 56], sizes = [32, 8], strides = [1, 1]} : vector<32x96xf32> to vector<32x8xf32>
    %106 = vector.extract_strided_slice %36 {offsets = [0, 88], sizes = [32, 8], strides = [1, 1]} : vector<32x96xf32> to vector<32x8xf32>
    %cst_60 = arith.constant dense<0.000000e+00> : vector<32x32xf32>
    %107 = tpu.matmul %104, %105, %cst_60 {dimension_numbers = #tpu.dot_dimension_numbers<[1], [1], [0], [0], [0, 0, 1, 0], [], []>} : vector<32x8xf32>, vector<32x8xf32>, vector<32x32xf32> -> vector<32x32xf32>
    %cst_61 = arith.constant 0.353553385 : f32
    %108 = vector.broadcast %cst_61 : f32 to vector<32x32xf32>
    %109 = arith.mulf %107, %108 : vector<32x32xf32>
    %cst_62 = arith.constant -1.000000e+30 : f32
    %110 = vector.broadcast %cst_62 : f32 to vector<32x32xf32>
    %111 = arith.select %9, %109, %110 : vector<32x32xi1>, vector<32x32xf32>
    %cst_63 = arith.constant dense<0xFF800000> : vector<32xf32>
    %112 = vector.multi_reduction <maximumf>, %111, %cst_63 [1] : vector<32x32xf32> to vector<32xf32>
    %113 = vector.shape_cast %112 : vector<32xf32> to vector<32x1xf32>
    %114 = vector.broadcast %113 : vector<32x1xf32> to vector<32x32xf32>
    %115 = arith.subf %111, %114 : vector<32x32xf32>
    %116 = math.exp %115 : vector<32x32xf32>
    %cst_64 = arith.constant dense<0.000000e+00> : vector<32xf32>
    %117 = vector.multi_reduction <add>, %116, %cst_64 [1] : vector<32x32xf32> to vector<32xf32>
    %118 = vector.shape_cast %117 : vector<32xf32> to vector<32x1xf32>
    %119 = tpu.reciprocal %118 {approx = true} : vector<32x1xf32> -> vector<32x1xf32>
    %120 = vector.broadcast %119 : vector<32x1xf32> to vector<32x32xf32>
    %121 = arith.mulf %116, %120 : vector<32x32xf32>
    %cst_65 = arith.constant dense<0.000000e+00> : vector<32x8xf32>
    %122 = tpu.matmul %121, %106, %cst_65 {dimension_numbers = #tpu.dot_dimension_numbers<[1], [0], [0], [1], [0, 0, 1, 1], [], []>} : vector<32x32xf32>, vector<32x8xf32>, vector<32x8xf32> -> vector<32x8xf32>
    %123 = vector.extract_strided_slice %15 {offsets = [24, 0], sizes = [8, 32], strides = [1, 1]} : vector<32x32xf32> to vector<8x32xf32>
    %cst_66 = arith.constant dense<0.000000e+00> : vector<32x32xf32>
    %124 = tpu.matmul %122, %123, %cst_66 {dimension_numbers = #tpu.dot_dimension_numbers<[1], [0], [0], [1], [0, 0, 1, 1], [], []>} : vector<32x8xf32>, vector<8x32xf32>, vector<32x32xf32> -> vector<32x32xf32>
    %125 = arith.addf %103, %124 : vector<32x32xf32>
    %126 = vector.broadcast %17 : vector<1x32xf32> to vector<32x32xf32>
    %127 = arith.addf %125, %126 : vector<32x32xf32>
    %128 = arith.addf %0, %127 : vector<32x32xf32>
    %cst_67 = arith.constant dense<0.000000e+00> : vector<32xf32>
    %129 = vector.multi_reduction <add>, %128, %cst_67 [1] : vector<32x32xf32> to vector<32xf32>
    %130 = vector.shape_cast %129 : vector<32xf32> to vector<32x1xf32>
    %cst_68 = arith.constant 3.200000e+01 : f32
    %131 = vector.broadcast %cst_68 : f32 to vector<32x1xf32>
    %132 = arith.divf %130, %131 : vector<32x1xf32>
    %133 = vector.broadcast %132 : vector<32x1xf32> to vector<32x32xf32>
    %134 = arith.subf %128, %133 : vector<32x32xf32>
    %135 = arith.mulf %134, %134 : vector<32x32xf32>
    %cst_69 = arith.constant dense<0.000000e+00> : vector<32xf32>
    %136 = vector.multi_reduction <add>, %135, %cst_69 [1] : vector<32x32xf32> to vector<32xf32>
    %137 = vector.shape_cast %136 : vector<32xf32> to vector<32x1xf32>
    %cst_70 = arith.constant 3.200000e+01 : f32
    %138 = vector.broadcast %cst_70 : f32 to vector<32x1xf32>
    %139 = arith.divf %137, %138 : vector<32x1xf32>
    %140 = vector.broadcast %132 : vector<32x1xf32> to vector<32x32xf32>
    %141 = arith.subf %128, %140 : vector<32x32xf32>
    %cst_71 = arith.constant 9.99999974E-6 : f32
    %142 = vector.broadcast %cst_71 : f32 to vector<32x1xf32>
    %143 = arith.addf %139, %142 : vector<32x1xf32>
    %144 = math.rsqrt %143 : vector<32x1xf32>
    %145 = vector.broadcast %144 : vector<32x1xf32> to vector<32x32xf32>
    %146 = arith.mulf %141, %145 : vector<32x32xf32>
    %147 = vector.broadcast %19 : vector<1x32xf32> to vector<32x32xf32>
    %148 = arith.mulf %146, %147 : vector<32x32xf32>
    %149 = vector.broadcast %21 : vector<1x32xf32> to vector<32x32xf32>
    %150 = arith.addf %148, %149 : vector<32x32xf32>
    %cst_72 = arith.constant dense<0.000000e+00> : vector<32x64xf32>
    %151 = tpu.matmul %150, %23, %cst_72 {dimension_numbers = #tpu.dot_dimension_numbers<[1], [0], [0], [1], [0, 0, 1, 1], [], []>} : vector<32x32xf32>, vector<32x64xf32>, vector<32x64xf32> -> vector<32x64xf32>
    %152 = vector.broadcast %25 : vector<1x64xf32> to vector<32x64xf32>
    %153 = arith.addf %151, %152 : vector<32x64xf32>
    %cst_73 = arith.constant 0.000000e+00 : f32
    %154 = vector.broadcast %cst_73 : f32 to vector<32x64xf32>
    %155 = arith.maximumf %153, %154 : vector<32x64xf32>
    %cst_74 = arith.constant dense<0.000000e+00> : vector<32x32xf32>
    %156 = tpu.matmul %155, %27, %cst_74 {dimension_numbers = #tpu.dot_dimension_numbers<[1], [0], [0], [1], [0, 0, 1, 1], [], []>} : vector<32x64xf32>, vector<64x32xf32>, vector<32x32xf32> -> vector<32x32xf32>
    %157 = vector.broadcast %29 : vector<1x32xf32> to vector<32x32xf32>
    %158 = arith.addf %156, %157 : vector<32x32xf32>
    %159 = arith.addf %150, %158 : vector<32x32xf32>
    %cst_75 = arith.constant dense<0.000000e+00> : vector<32xf32>
    %160 = vector.multi_reduction <add>, %159, %cst_75 [1] : vector<32x32xf32> to vector<32xf32>
    %161 = vector.shape_cast %160 : vector<32xf32> to vector<32x1xf32>
    %cst_76 = arith.constant 3.200000e+01 : f32
    %162 = vector.broadcast %cst_76 : f32 to vector<32x1xf32>
    %163 = arith.divf %161, %162 : vector<32x1xf32>
    %164 = vector.broadcast %163 : vector<32x1xf32> to vector<32x32xf32>
    %165 = arith.subf %159, %164 : vector<32x32xf32>
    %166 = arith.mulf %165, %165 : vector<32x32xf32>
    %cst_77 = arith.constant dense<0.000000e+00> : vector<32xf32>
    %167 = vector.multi_reduction <add>, %166, %cst_77 [1] : vector<32x32xf32> to vector<32xf32>
    %168 = vector.shape_cast %167 : vector<32xf32> to vector<32x1xf32>
    %cst_78 = arith.constant 3.200000e+01 : f32
    %169 = vector.broadcast %cst_78 : f32 to vector<32x1xf32>
    %170 = arith.divf %168, %169 : vector<32x1xf32>
    %171 = vector.broadcast %163 : vector<32x1xf32> to vector<32x32xf32>
    %172 = arith.subf %159, %171 : vector<32x32xf32>
    %cst_79 = arith.constant 9.99999974E-6 : f32
    %173 = vector.broadcast %cst_79 : f32 to vector<32x1xf32>
    %174 = arith.addf %170, %173 : vector<32x1xf32>
    %175 = math.rsqrt %174 : vector<32x1xf32>
    %176 = vector.broadcast %175 : vector<32x1xf32> to vector<32x32xf32>
    %177 = arith.mulf %172, %176 : vector<32x32xf32>
    %178 = vector.broadcast %31 : vector<1x32xf32> to vector<32x32xf32>
    %179 = arith.mulf %177, %178 : vector<32x32xf32>
    %180 = vector.broadcast %33 : vector<1x32xf32> to vector<32x32xf32>
    %181 = arith.addf %179, %180 : vector<32x32xf32>
    %c1 = arith.constant 1 : index
    %c0_80 = arith.constant 0 : index
    %c0_81 = arith.constant 0 : index
    %182 = vector.load %arg2[%c1, %c0_80, %c0_81] : memref<2x32x96xf32, #tpu.memory_space<vmem>>, vector<1x32x96xf32>
    %183 = vector.shape_cast %182 : vector<1x32x96xf32> to vector<32x96xf32>
    %c1_82 = arith.constant 1 : index
    %c0_83 = arith.constant 0 : index
    %c0_84 = arith.constant 0 : index
    %184 = vector.load %arg3[%c1_82, %c0_83, %c0_84] : memref<2x1x96xf32, #tpu.memory_space<vmem>>, vector<1x1x96xf32>
    %185 = vector.shape_cast %184 : vector<1x1x96xf32> to vector<1x96xf32>
    %c1_85 = arith.constant 1 : index
    %c0_86 = arith.constant 0 : index
    %c0_87 = arith.constant 0 : index
    %186 = vector.load %arg4[%c1_85, %c0_86, %c0_87] : memref<2x32x32xf32, #tpu.memory_space<vmem>>, vector<1x32x32xf32>
    %187 = vector.shape_cast %186 : vector<1x32x32xf32> to vector<32x32xf32>
    %c1_88 = arith.constant 1 : index
    %c0_89 = arith.constant 0 : index
    %c0_90 = arith.constant 0 : index
    %188 = vector.load %arg5[%c1_88, %c0_89, %c0_90] : memref<2x1x32xf32, #tpu.memory_space<vmem>>, vector<1x1x32xf32>
    %189 = vector.shape_cast %188 : vector<1x1x32xf32> to vector<1x32xf32>
    %c1_91 = arith.constant 1 : index
    %c0_92 = arith.constant 0 : index
    %c0_93 = arith.constant 0 : index
    %190 = vector.load %arg6[%c1_91, %c0_92, %c0_93] : memref<2x1x32xf32, #tpu.memory_space<vmem>>, vector<1x1x32xf32>
    %191 = vector.shape_cast %190 : vector<1x1x32xf32> to vector<1x32xf32>
    %c1_94 = arith.constant 1 : index
    %c0_95 = arith.constant 0 : index
    %c0_96 = arith.constant 0 : index
    %192 = vector.load %arg7[%c1_94, %c0_95, %c0_96] : memref<2x1x32xf32, #tpu.memory_space<vmem>>, vector<1x1x32xf32>
    %193 = vector.shape_cast %192 : vector<1x1x32xf32> to vector<1x32xf32>
    %c1_97 = arith.constant 1 : index
    %c0_98 = arith.constant 0 : index
    %c0_99 = arith.constant 0 : index
    %194 = vector.load %arg8[%c1_97, %c0_98, %c0_99] : memref<2x32x64xf32, #tpu.memory_space<vmem>>, vector<1x32x64xf32>
    %195 = vector.shape_cast %194 : vector<1x32x64xf32> to vector<32x64xf32>
    %c1_100 = arith.constant 1 : index
    %c0_101 = arith.constant 0 : index
    %c0_102 = arith.constant 0 : index
    %196 = vector.load %arg9[%c1_100, %c0_101, %c0_102] : memref<2x1x64xf32, #tpu.memory_space<vmem>>, vector<1x1x64xf32>
    %197 = vector.shape_cast %196 : vector<1x1x64xf32> to vector<1x64xf32>
    %c1_103 = arith.constant 1 : index
    %c0_104 = arith.constant 0 : index
    %c0_105 = arith.constant 0 : index
    %198 = vector.load %arg10[%c1_103, %c0_104, %c0_105] : memref<2x64x32xf32, #tpu.memory_space<vmem>>, vector<1x64x32xf32>
    %199 = vector.shape_cast %198 : vector<1x64x32xf32> to vector<64x32xf32>
    %c1_106 = arith.constant 1 : index
    %c0_107 = arith.constant 0 : index
    %c0_108 = arith.constant 0 : index
    %200 = vector.load %arg11[%c1_106, %c0_107, %c0_108] : memref<2x1x32xf32, #tpu.memory_space<vmem>>, vector<1x1x32xf32>
    %201 = vector.shape_cast %200 : vector<1x1x32xf32> to vector<1x32xf32>
    %c1_109 = arith.constant 1 : index
    %c0_110 = arith.constant 0 : index
    %c0_111 = arith.constant 0 : index
    %202 = vector.load %arg12[%c1_109, %c0_110, %c0_111] : memref<2x1x32xf32, #tpu.memory_space<vmem>>, vector<1x1x32xf32>
    %203 = vector.shape_cast %202 : vector<1x1x32xf32> to vector<1x32xf32>
    %c1_112 = arith.constant 1 : index
    %c0_113 = arith.constant 0 : index
    %c0_114 = arith.constant 0 : index
    %204 = vector.load %arg13[%c1_112, %c0_113, %c0_114] : memref<2x1x32xf32, #tpu.memory_space<vmem>>, vector<1x1x32xf32>
    %205 = vector.shape_cast %204 : vector<1x1x32xf32> to vector<1x32xf32>
    %cst_115 = arith.constant dense<0.000000e+00> : vector<32x96xf32>
    %206 = tpu.matmul %181, %183, %cst_115 {dimension_numbers = #tpu.dot_dimension_numbers<[1], [0], [0], [1], [0, 0, 1, 1], [], []>} : vector<32x32xf32>, vector<32x96xf32>, vector<32x96xf32> -> vector<32x96xf32>
    %207 = vector.broadcast %185 : vector<1x96xf32> to vector<32x96xf32>
    %208 = arith.addf %206, %207 : vector<32x96xf32>
    %cst_116 = arith.constant 0.000000e+00 : f32
    %209 = vector.broadcast %cst_116 : f32 to vector<32x32xf32>
    %210 = vector.extract_strided_slice %208 {offsets = [0, 0], sizes = [32, 8], strides = [1, 1]} : vector<32x96xf32> to vector<32x8xf32>
    %211 = vector.extract_strided_slice %208 {offsets = [0, 32], sizes = [32, 8], strides = [1, 1]} : vector<32x96xf32> to vector<32x8xf32>
    %212 = vector.extract_strided_slice %208 {offsets = [0, 64], sizes = [32, 8], strides = [1, 1]} : vector<32x96xf32> to vector<32x8xf32>
    %cst_117 = arith.constant dense<0.000000e+00> : vector<32x32xf32>
    %213 = tpu.matmul %210, %211, %cst_117 {dimension_numbers = #tpu.dot_dimension_numbers<[1], [1], [0], [0], [0, 0, 1, 0], [], []>} : vector<32x8xf32>, vector<32x8xf32>, vector<32x32xf32> -> vector<32x32xf32>
    %cst_118 = arith.constant 0.353553385 : f32
    %214 = vector.broadcast %cst_118 : f32 to vector<32x32xf32>
    %215 = arith.mulf %213, %214 : vector<32x32xf32>
    %cst_119 = arith.constant -1.000000e+30 : f32
    %216 = vector.broadcast %cst_119 : f32 to vector<32x32xf32>
    %217 = arith.select %9, %215, %216 : vector<32x32xi1>, vector<32x32xf32>
    %cst_120 = arith.constant dense<0xFF800000> : vector<32xf32>
    %218 = vector.multi_reduction <maximumf>, %217, %cst_120 [1] : vector<32x32xf32> to vector<32xf32>
    %219 = vector.shape_cast %218 : vector<32xf32> to vector<32x1xf32>
    %220 = vector.broadcast %219 : vector<32x1xf32> to vector<32x32xf32>
    %221 = arith.subf %217, %220 : vector<32x32xf32>
    %222 = math.exp %221 : vector<32x32xf32>
    %cst_121 = arith.constant dense<0.000000e+00> : vector<32xf32>
    %223 = vector.multi_reduction <add>, %222, %cst_121 [1] : vector<32x32xf32> to vector<32xf32>
    %224 = vector.shape_cast %223 : vector<32xf32> to vector<32x1xf32>
    %225 = tpu.reciprocal %224 {approx = true} : vector<32x1xf32> -> vector<32x1xf32>
    %226 = vector.broadcast %225 : vector<32x1xf32> to vector<32x32xf32>
    %227 = arith.mulf %222, %226 : vector<32x32xf32>
    %cst_122 = arith.constant dense<0.000000e+00> : vector<32x8xf32>
    %228 = tpu.matmul %227, %212, %cst_122 {dimension_numbers = #tpu.dot_dimension_numbers<[1], [0], [0], [1], [0, 0, 1, 1], [], []>} : vector<32x32xf32>, vector<32x8xf32>, vector<32x8xf32> -> vector<32x8xf32>
    %229 = vector.extract_strided_slice %187 {offsets = [0, 0], sizes = [8, 32], strides = [1, 1]} : vector<32x32xf32> to vector<8x32xf32>
    %cst_123 = arith.constant dense<0.000000e+00> : vector<32x32xf32>
    %230 = tpu.matmul %228, %229, %cst_123 {dimension_numbers = #tpu.dot_dimension_numbers<[1], [0], [0], [1], [0, 0, 1, 1], [], []>} : vector<32x8xf32>, vector<8x32xf32>, vector<32x32xf32> -> vector<32x32xf32>
    %231 = arith.addf %209, %230 : vector<32x32xf32>
    %232 = vector.extract_strided_slice %208 {offsets = [0, 8], sizes = [32, 8], strides = [1, 1]} : vector<32x96xf32> to vector<32x8xf32>
    %233 = vector.extract_strided_slice %208 {offsets = [0, 40], sizes = [32, 8], strides = [1, 1]} : vector<32x96xf32> to vector<32x8xf32>
    %234 = vector.extract_strided_slice %208 {offsets = [0, 72], sizes = [32, 8], strides = [1, 1]} : vector<32x96xf32> to vector<32x8xf32>
    %cst_124 = arith.constant dense<0.000000e+00> : vector<32x32xf32>
    %235 = tpu.matmul %232, %233, %cst_124 {dimension_numbers = #tpu.dot_dimension_numbers<[1], [1], [0], [0], [0, 0, 1, 0], [], []>} : vector<32x8xf32>, vector<32x8xf32>, vector<32x32xf32> -> vector<32x32xf32>
    %cst_125 = arith.constant 0.353553385 : f32
    %236 = vector.broadcast %cst_125 : f32 to vector<32x32xf32>
    %237 = arith.mulf %235, %236 : vector<32x32xf32>
    %cst_126 = arith.constant -1.000000e+30 : f32
    %238 = vector.broadcast %cst_126 : f32 to vector<32x32xf32>
    %239 = arith.select %9, %237, %238 : vector<32x32xi1>, vector<32x32xf32>
    %cst_127 = arith.constant dense<0xFF800000> : vector<32xf32>
    %240 = vector.multi_reduction <maximumf>, %239, %cst_127 [1] : vector<32x32xf32> to vector<32xf32>
    %241 = vector.shape_cast %240 : vector<32xf32> to vector<32x1xf32>
    %242 = vector.broadcast %241 : vector<32x1xf32> to vector<32x32xf32>
    %243 = arith.subf %239, %242 : vector<32x32xf32>
    %244 = math.exp %243 : vector<32x32xf32>
    %cst_128 = arith.constant dense<0.000000e+00> : vector<32xf32>
    %245 = vector.multi_reduction <add>, %244, %cst_128 [1] : vector<32x32xf32> to vector<32xf32>
    %246 = vector.shape_cast %245 : vector<32xf32> to vector<32x1xf32>
    %247 = tpu.reciprocal %246 {approx = true} : vector<32x1xf32> -> vector<32x1xf32>
    %248 = vector.broadcast %247 : vector<32x1xf32> to vector<32x32xf32>
    %249 = arith.mulf %244, %248 : vector<32x32xf32>
    %cst_129 = arith.constant dense<0.000000e+00> : vector<32x8xf32>
    %250 = tpu.matmul %249, %234, %cst_129 {dimension_numbers = #tpu.dot_dimension_numbers<[1], [0], [0], [1], [0, 0, 1, 1], [], []>} : vector<32x32xf32>, vector<32x8xf32>, vector<32x8xf32> -> vector<32x8xf32>
    %251 = vector.extract_strided_slice %187 {offsets = [8, 0], sizes = [8, 32], strides = [1, 1]} : vector<32x32xf32> to vector<8x32xf32>
    %cst_130 = arith.constant dense<0.000000e+00> : vector<32x32xf32>
    %252 = tpu.matmul %250, %251, %cst_130 {dimension_numbers = #tpu.dot_dimension_numbers<[1], [0], [0], [1], [0, 0, 1, 1], [], []>} : vector<32x8xf32>, vector<8x32xf32>, vector<32x32xf32> -> vector<32x32xf32>
    %253 = arith.addf %231, %252 : vector<32x32xf32>
    %254 = vector.extract_strided_slice %208 {offsets = [0, 16], sizes = [32, 8], strides = [1, 1]} : vector<32x96xf32> to vector<32x8xf32>
    %255 = vector.extract_strided_slice %208 {offsets = [0, 48], sizes = [32, 8], strides = [1, 1]} : vector<32x96xf32> to vector<32x8xf32>
    %256 = vector.extract_strided_slice %208 {offsets = [0, 80], sizes = [32, 8], strides = [1, 1]} : vector<32x96xf32> to vector<32x8xf32>
    %cst_131 = arith.constant dense<0.000000e+00> : vector<32x32xf32>
    %257 = tpu.matmul %254, %255, %cst_131 {dimension_numbers = #tpu.dot_dimension_numbers<[1], [1], [0], [0], [0, 0, 1, 0], [], []>} : vector<32x8xf32>, vector<32x8xf32>, vector<32x32xf32> -> vector<32x32xf32>
    %cst_132 = arith.constant 0.353553385 : f32
    %258 = vector.broadcast %cst_132 : f32 to vector<32x32xf32>
    %259 = arith.mulf %257, %258 : vector<32x32xf32>
    %cst_133 = arith.constant -1.000000e+30 : f32
    %260 = vector.broadcast %cst_133 : f32 to vector<32x32xf32>
    %261 = arith.select %9, %259, %260 : vector<32x32xi1>, vector<32x32xf32>
    %cst_134 = arith.constant dense<0xFF800000> : vector<32xf32>
    %262 = vector.multi_reduction <maximumf>, %261, %cst_134 [1] : vector<32x32xf32> to vector<32xf32>
    %263 = vector.shape_cast %262 : vector<32xf32> to vector<32x1xf32>
    %264 = vector.broadcast %263 : vector<32x1xf32> to vector<32x32xf32>
    %265 = arith.subf %261, %264 : vector<32x32xf32>
    %266 = math.exp %265 : vector<32x32xf32>
    %cst_135 = arith.constant dense<0.000000e+00> : vector<32xf32>
    %267 = vector.multi_reduction <add>, %266, %cst_135 [1] : vector<32x32xf32> to vector<32xf32>
    %268 = vector.shape_cast %267 : vector<32xf32> to vector<32x1xf32>
    %269 = tpu.reciprocal %268 {approx = true} : vector<32x1xf32> -> vector<32x1xf32>
    %270 = vector.broadcast %269 : vector<32x1xf32> to vector<32x32xf32>
    %271 = arith.mulf %266, %270 : vector<32x32xf32>
    %cst_136 = arith.constant dense<0.000000e+00> : vector<32x8xf32>
    %272 = tpu.matmul %271, %256, %cst_136 {dimension_numbers = #tpu.dot_dimension_numbers<[1], [0], [0], [1], [0, 0, 1, 1], [], []>} : vector<32x32xf32>, vector<32x8xf32>, vector<32x8xf32> -> vector<32x8xf32>
    %273 = vector.extract_strided_slice %187 {offsets = [16, 0], sizes = [8, 32], strides = [1, 1]} : vector<32x32xf32> to vector<8x32xf32>
    %cst_137 = arith.constant dense<0.000000e+00> : vector<32x32xf32>
    %274 = tpu.matmul %272, %273, %cst_137 {dimension_numbers = #tpu.dot_dimension_numbers<[1], [0], [0], [1], [0, 0, 1, 1], [], []>} : vector<32x8xf32>, vector<8x32xf32>, vector<32x32xf32> -> vector<32x32xf32>
    %275 = arith.addf %253, %274 : vector<32x32xf32>
    %276 = vector.extract_strided_slice %208 {offsets = [0, 24], sizes = [32, 8], strides = [1, 1]} : vector<32x96xf32> to vector<32x8xf32>
    %277 = vector.extract_strided_slice %208 {offsets = [0, 56], sizes = [32, 8], strides = [1, 1]} : vector<32x96xf32> to vector<32x8xf32>
    %278 = vector.extract_strided_slice %208 {offsets = [0, 88], sizes = [32, 8], strides = [1, 1]} : vector<32x96xf32> to vector<32x8xf32>
    %cst_138 = arith.constant dense<0.000000e+00> : vector<32x32xf32>
    %279 = tpu.matmul %276, %277, %cst_138 {dimension_numbers = #tpu.dot_dimension_numbers<[1], [1], [0], [0], [0, 0, 1, 0], [], []>} : vector<32x8xf32>, vector<32x8xf32>, vector<32x32xf32> -> vector<32x32xf32>
    %cst_139 = arith.constant 0.353553385 : f32
    %280 = vector.broadcast %cst_139 : f32 to vector<32x32xf32>
    %281 = arith.mulf %279, %280 : vector<32x32xf32>
    %cst_140 = arith.constant -1.000000e+30 : f32
    %282 = vector.broadcast %cst_140 : f32 to vector<32x32xf32>
    %283 = arith.select %9, %281, %282 : vector<32x32xi1>, vector<32x32xf32>
    %cst_141 = arith.constant dense<0xFF800000> : vector<32xf32>
    %284 = vector.multi_reduction <maximumf>, %283, %cst_141 [1] : vector<32x32xf32> to vector<32xf32>
    %285 = vector.shape_cast %284 : vector<32xf32> to vector<32x1xf32>
    %286 = vector.broadcast %285 : vector<32x1xf32> to vector<32x32xf32>
    %287 = arith.subf %283, %286 : vector<32x32xf32>
    %288 = math.exp %287 : vector<32x32xf32>
    %cst_142 = arith.constant dense<0.000000e+00> : vector<32xf32>
    %289 = vector.multi_reduction <add>, %288, %cst_142 [1] : vector<32x32xf32> to vector<32xf32>
    %290 = vector.shape_cast %289 : vector<32xf32> to vector<32x1xf32>
    %291 = tpu.reciprocal %290 {approx = true} : vector<32x1xf32> -> vector<32x1xf32>
    %292 = vector.broadcast %291 : vector<32x1xf32> to vector<32x32xf32>
    %293 = arith.mulf %288, %292 : vector<32x32xf32>
    %cst_143 = arith.constant dense<0.000000e+00> : vector<32x8xf32>
    %294 = tpu.matmul %293, %278, %cst_143 {dimension_numbers = #tpu.dot_dimension_numbers<[1], [0], [0], [1], [0, 0, 1, 1], [], []>} : vector<32x32xf32>, vector<32x8xf32>, vector<32x8xf32> -> vector<32x8xf32>
    %295 = vector.extract_strided_slice %187 {offsets = [24, 0], sizes = [8, 32], strides = [1, 1]} : vector<32x32xf32> to vector<8x32xf32>
    %cst_144 = arith.constant dense<0.000000e+00> : vector<32x32xf32>
    %296 = tpu.matmul %294, %295, %cst_144 {dimension_numbers = #tpu.dot_dimension_numbers<[1], [0], [0], [1], [0, 0, 1, 1], [], []>} : vector<32x8xf32>, vector<8x32xf32>, vector<32x32xf32> -> vector<32x32xf32>
    %297 = arith.addf %275, %296 : vector<32x32xf32>
    %298 = vector.broadcast %189 : vector<1x32xf32> to vector<32x32xf32>
    %299 = arith.addf %297, %298 : vector<32x32xf32>
    %300 = arith.addf %181, %299 : vector<32x32xf32>
    %cst_145 = arith.constant dense<0.000000e+00> : vector<32xf32>
    %301 = vector.multi_reduction <add>, %300, %cst_145 [1] : vector<32x32xf32> to vector<32xf32>
    %302 = vector.shape_cast %301 : vector<32xf32> to vector<32x1xf32>
    %cst_146 = arith.constant 3.200000e+01 : f32
    %303 = vector.broadcast %cst_146 : f32 to vector<32x1xf32>
    %304 = arith.divf %302, %303 : vector<32x1xf32>
    %305 = vector.broadcast %304 : vector<32x1xf32> to vector<32x32xf32>
    %306 = arith.subf %300, %305 : vector<32x32xf32>
    %307 = arith.mulf %306, %306 : vector<32x32xf32>
    %cst_147 = arith.constant dense<0.000000e+00> : vector<32xf32>
    %308 = vector.multi_reduction <add>, %307, %cst_147 [1] : vector<32x32xf32> to vector<32xf32>
    %309 = vector.shape_cast %308 : vector<32xf32> to vector<32x1xf32>
    %cst_148 = arith.constant 3.200000e+01 : f32
    %310 = vector.broadcast %cst_148 : f32 to vector<32x1xf32>
    %311 = arith.divf %309, %310 : vector<32x1xf32>
    %312 = vector.broadcast %304 : vector<32x1xf32> to vector<32x32xf32>
    %313 = arith.subf %300, %312 : vector<32x32xf32>
    %cst_149 = arith.constant 9.99999974E-6 : f32
    %314 = vector.broadcast %cst_149 : f32 to vector<32x1xf32>
    %315 = arith.addf %311, %314 : vector<32x1xf32>
    %316 = math.rsqrt %315 : vector<32x1xf32>
    %317 = vector.broadcast %316 : vector<32x1xf32> to vector<32x32xf32>
    %318 = arith.mulf %313, %317 : vector<32x32xf32>
    %319 = vector.broadcast %191 : vector<1x32xf32> to vector<32x32xf32>
    %320 = arith.mulf %318, %319 : vector<32x32xf32>
    %321 = vector.broadcast %193 : vector<1x32xf32> to vector<32x32xf32>
    %322 = arith.addf %320, %321 : vector<32x32xf32>
    %cst_150 = arith.constant dense<0.000000e+00> : vector<32x64xf32>
    %323 = tpu.matmul %322, %195, %cst_150 {dimension_numbers = #tpu.dot_dimension_numbers<[1], [0], [0], [1], [0, 0, 1, 1], [], []>} : vector<32x32xf32>, vector<32x64xf32>, vector<32x64xf32> -> vector<32x64xf32>
    %324 = vector.broadcast %197 : vector<1x64xf32> to vector<32x64xf32>
    %325 = arith.addf %323, %324 : vector<32x64xf32>
    %cst_151 = arith.constant 0.000000e+00 : f32
    %326 = vector.broadcast %cst_151 : f32 to vector<32x64xf32>
    %327 = arith.maximumf %325, %326 : vector<32x64xf32>
    %cst_152 = arith.constant dense<0.000000e+00> : vector<32x32xf32>
    %328 = tpu.matmul %327, %199, %cst_152 {dimension_numbers = #tpu.dot_dimension_numbers<[1], [0], [0], [1], [0, 0, 1, 1], [], []>} : vector<32x64xf32>, vector<64x32xf32>, vector<32x32xf32> -> vector<32x32xf32>
    %329 = vector.broadcast %201 : vector<1x32xf32> to vector<32x32xf32>
    %330 = arith.addf %328, %329 : vector<32x32xf32>
    %331 = arith.addf %322, %330 : vector<32x32xf32>
    %cst_153 = arith.constant dense<0.000000e+00> : vector<32xf32>
    %332 = vector.multi_reduction <add>, %331, %cst_153 [1] : vector<32x32xf32> to vector<32xf32>
    %333 = vector.shape_cast %332 : vector<32xf32> to vector<32x1xf32>
    %cst_154 = arith.constant 3.200000e+01 : f32
    %334 = vector.broadcast %cst_154 : f32 to vector<32x1xf32>
    %335 = arith.divf %333, %334 : vector<32x1xf32>
    %336 = vector.broadcast %335 : vector<32x1xf32> to vector<32x32xf32>
    %337 = arith.subf %331, %336 : vector<32x32xf32>
    %338 = arith.mulf %337, %337 : vector<32x32xf32>
    %cst_155 = arith.constant dense<0.000000e+00> : vector<32xf32>
    %339 = vector.multi_reduction <add>, %338, %cst_155 [1] : vector<32x32xf32> to vector<32xf32>
    %340 = vector.shape_cast %339 : vector<32xf32> to vector<32x1xf32>
    %cst_156 = arith.constant 3.200000e+01 : f32
    %341 = vector.broadcast %cst_156 : f32 to vector<32x1xf32>
    %342 = arith.divf %340, %341 : vector<32x1xf32>
    %343 = vector.broadcast %335 : vector<32x1xf32> to vector<32x32xf32>
    %344 = arith.subf %331, %343 : vector<32x32xf32>
    %cst_157 = arith.constant 9.99999974E-6 : f32
    %345 = vector.broadcast %cst_157 : f32 to vector<32x1xf32>
    %346 = arith.addf %342, %345 : vector<32x1xf32>
    %347 = math.rsqrt %346 : vector<32x1xf32>
    %348 = vector.broadcast %347 : vector<32x1xf32> to vector<32x32xf32>
    %349 = arith.mulf %344, %348 : vector<32x32xf32>
    %350 = vector.broadcast %203 : vector<1x32xf32> to vector<32x32xf32>
    %351 = arith.mulf %349, %350 : vector<32x32xf32>
    %352 = vector.broadcast %205 : vector<1x32xf32> to vector<32x32xf32>
    %353 = arith.addf %351, %352 : vector<32x32xf32>
    %c0_158 = arith.constant 0 : index
    %c0_159 = arith.constant 0 : index
    %354 = vector.load %arg14[%c0_158, %c0_159] : memref<32x32xf32, #tpu.memory_space<vmem>>, vector<32x32xf32>
    %cst_160 = arith.constant dense<0.000000e+00> : vector<32x32xf32>
    %355 = tpu.matmul %353, %354, %cst_160 {dimension_numbers = #tpu.dot_dimension_numbers<[1], [0], [0], [1], [0, 0, 1, 1], [], []>} : vector<32x32xf32>, vector<32x32xf32>, vector<32x32xf32> -> vector<32x32xf32>
    %c0_161 = arith.constant 0 : index
    %c0_162 = arith.constant 0 : index
    %356 = vector.load %arg15[%c0_161, %c0_162] : memref<1x32xf32, #tpu.memory_space<vmem>>, vector<1x32xf32>
    %357 = vector.broadcast %356 : vector<1x32xf32> to vector<32x32xf32>
    %358 = arith.addf %355, %357 : vector<32x32xf32>
    %c0_163 = arith.constant 0 : index
    %c0_164 = arith.constant 0 : index
    %359 = vector.load %arg16[%c0_163, %c0_164] : memref<32x32xf32, #tpu.memory_space<vmem>>, vector<32x32xf32>
    tpu.vector_store %arg16[%c0_163, %c0_164], %358 {strides = array<i32>} : memref<32x32xf32, #tpu.memory_space<vmem>>, vector<32x32xf32>,
    return
  }
  func.func @transform_0(%arg0: i32) -> (i32, i32) {
    %c0_i32 = arith.constant 0 : i32
    %c0_i32_0 = arith.constant 0 : i32
    return %arg0, %c0_i32 : i32, i32
  }
  func.func @transform_1(%arg0: i32) -> (i32, i32, i32) {
    %c0_i32 = arith.constant 0 : i32
    %c0_i32_0 = arith.constant 0 : i32
    %c0_i32_1 = arith.constant 0 : i32
    %c0_i32_2 = arith.constant 0 : i32
    return %c0_i32, %c0_i32_0, %c0_i32_1 : i32, i32, i32
  }
  func.func @transform_2(%arg0: i32) -> (i32, i32, i32) {
    %c0_i32 = arith.constant 0 : i32
    %c0_i32_0 = arith.constant 0 : i32
    %c0_i32_1 = arith.constant 0 : i32
    %c0_i32_2 = arith.constant 0 : i32
    return %c0_i32, %c0_i32_0, %c0_i32_1 : i32, i32, i32
  }
  func.func @transform_3(%arg0: i32) -> (i32, i32, i32) {
    %c0_i32 = arith.constant 0 : i32
    %c0_i32_0 = arith.constant 0 : i32
    %c0_i32_1 = arith.constant 0 : i32
    %c0_i32_2 = arith.constant 0 : i32
    return %c0_i32, %c0_i32_0, %c0_i32_1 : i32, i32, i32
  }
  func.func @transform_4(%arg0: i32) -> (i32, i32, i32) {
    %c0_i32 = arith.constant 0 : i32
    %c0_i32_0 = arith.constant 0 : i32
    %c0_i32_1 = arith.constant 0 : i32
    %c0_i32_2 = arith.constant 0 : i32
    return %c0_i32, %c0_i32_0, %c0_i32_1 : i32, i32, i32
  }
  func.func @transform_5(%arg0: i32) -> (i32, i32, i32) {
    %c0_i32 = arith.constant 0 : i32
    %c0_i32_0 = arith.constant 0 : i32
    %c0_i32_1 = arith.constant 0 : i32
    %c0_i32_2 = arith.constant 0 : i32
    return %c0_i32, %c0_i32_0, %c0_i32_1 : i32, i32, i32
  }
  func.func @transform_6(%arg0: i32) -> (i32, i32, i32) {
    %c0_i32 = arith.constant 0 : i32
    %c0_i32_0 = arith.constant 0 : i32
    %c0_i32_1 = arith.constant 0 : i32
    %c0_i32_2 = arith.constant 0 : i32
    return %c0_i32, %c0_i32_0, %c0_i32_1 : i32, i32, i32
  }
  func.func @transform_7(%arg0: i32) -> (i32, i32, i32) {
    %c0_i32 = arith.constant 0 : i32
    %c0_i32_0 = arith.constant 0 : i32
    %c0_i32_1 = arith.constant 0 : i32
    %c0_i32_2 = arith.constant 0 : i32
    return %c0_i32, %c0_i32_0, %c0_i32_1 : i32, i32, i32
  }
  func.func @transform_8(%arg0: i32) -> (i32, i32, i32) {
    %c0_i32 = arith.constant 0 : i32
    %c0_i32_0 = arith.constant 0 : i32
    %c0_i32_1 = arith.constant 0 : i32
    %c0_i32_2 = arith.constant 0 : i32
    return %c0_i32, %c0_i32_0, %c0_i32_1 : i32, i32, i32
  }
  func.func @transform_9(%arg0: i32) -> (i32, i32, i32) {
    %c0_i32 = arith.constant 0 : i32
    %c0_i32_0 = arith.constant 0 : i32
    %c0_i32_1 = arith.constant 0 : i32
    %c0_i32_2 = arith.constant 0 : i32
    return %c0_i32, %c0_i32_0, %c0_i32_1 : i32, i32, i32
  }
  func.func @transform_10(%arg0: i32) -> (i32, i32, i32) {
    %c0_i32 = arith.constant 0 : i32
    %c0_i32_0 = arith.constant 0 : i32
    %c0_i32_1 = arith.constant 0 : i32
    %c0_i32_2 = arith.constant 0 : i32
    return %c0_i32, %c0_i32_0, %c0_i32_1 : i32, i32, i32
  }
  func.func @transform_11(%arg0: i32) -> (i32, i32, i32) {
    %c0_i32 = arith.constant 0 : i32
    %c0_i32_0 = arith.constant 0 : i32
    %c0_i32_1 = arith.constant 0 : i32
    %c0_i32_2 = arith.constant 0 : i32
    return %c0_i32, %c0_i32_0, %c0_i32_1 : i32, i32, i32
  }
  func.func @transform_12(%arg0: i32) -> (i32, i32, i32) {
    %c0_i32 = arith.constant 0 : i32
    %c0_i32_0 = arith.constant 0 : i32
    %c0_i32_1 = arith.constant 0 : i32
    %c0_i32_2 = arith.constant 0 : i32
    return %c0_i32, %c0_i32_0, %c0_i32_1 : i32, i32, i32
  }
  func.func @transform_13(%arg0: i32) -> (i32, i32) {
    %c0_i32 = arith.constant 0 : i32
    %c0_i32_0 = arith.constant 0 : i32
    %c0_i32_1 = arith.constant 0 : i32
    return %c0_i32, %c0_i32_0 : i32, i32
  }
  func.func @transform_14(%arg0: i32) -> (i32, i32) {
    %c0_i32 = arith.constant 0 : i32
    %c0_i32_0 = arith.constant 0 : i32
    %c0_i32_1 = arith.constant 0 : i32
    return %c0_i32, %c0_i32_0 : i32, i32
  }
  func.func @transform_15(%arg0: i32) -> (i32, i32) {
    %c0_i32 = arith.constant 0 : i32
    %c0_i32_0 = arith.constant 0 : i32
    return %arg0, %c0_i32 : i32, i32
  }
}

</mosaic_0001>

<bundles_post_ra>
// kernel: forward.1
= control target key start
LH: loop header
LB: loop body
LE: loop exit
PB: predicated region body
PF: predicated region fallthrough
CT: control target
= control target key end

     0   :  { %s3666_s18 = smov 0   ;;  %s4687_s0 = inlined_call_operand.vmem [shape: f32[64,32], index: 0, kind: input, shape index: {}]   ;;  %s4688_s1 = inlined_call_operand.vmem [shape: f32[2,32,96], index: 1, kind: input, shape index: {}]   ;;  %s4689_s2 = inlined_call_operand.vmem [shape: f32[2,1,96], index: 2, kind: input, shape index: {}]   ;;  %s4690_s3 = inlined_call_operand.vmem [shape: f32[2,32,32], index: 3, kind: input, shape index: {}]   ;;  %s4691_s4 = inlined_call_operand.vmem [shape: f32[2,1,32], index: 4, kind: input, shape index: {}]   ;;  %s4692_s5 = inlined_call_operand.vmem [shape: f32[2,1,32], index: 5, kind: input, shape index: {}]   ;;  %s4693_s6 = inlined_call_operand.vmem [shape: f32[2,1,32], index: 6, kind: input, shape index: {}]   ;;  %s4694_s7 = inlined_call_operand.vmem [shape: f32[2,32,64], index: 7, kind: input, shape index: {}]   ;;  %s4695_s8 = inlined_call_operand.vmem [shape: f32[2,1,64], index: 8, kind: input, shape index: {}]   ;;  %s4696_s9 = inlined_call_operand.vmem [shape: f32[2,64,32], index: 9, kind: input, shape index: {}]   ;;  %s4697_s10 = inlined_call_operand.vmem [shape: f32[2,1,32], index: 10, kind: input, shape index: {}]   ;;  %s4698_s11 = inlined_call_operand.vmem [shape: f32[2,1,32], index: 11, kind: input, shape index: {}]   ;;  %s4699_s12 = inlined_call_operand.vmem [shape: f32[2,1,32], index: 12, kind: input, shape index: {}]   ;;  %s4700_s13 = inlined_call_operand.vmem [shape: f32[32,32], index: 13, kind: input, shape index: {}]   ;;  %s4701_s14 = inlined_call_operand.vmem [shape: f32[1,32], index: 14, kind: input, shape index: {}]   ;;  %s4702_s15 = inlined_call_operand.vmem [shape: f32[64,32], index: 15, kind: output, shape index: {}]  }
   0x1 LB: > { %s3087_s19 = sadd.s32 4294967295, %s3572_s18   ;;  %p3091_p0 = scmp.ge.s32.totalorder %s3572_s18, 1  ;;  %s3572_s18 = sphi %s3666_s18, %s25_s18  }
   0x2   : > { %p438_p1 = scmp.lt.s32.totalorder %s3572_s18, 3 }
   0x4   : > { %p439_p2 = pnand %p3091_p0, %p438_p1 }
   0x5   : > { %s3092_s24 = sshll.u32 (!%p439_p2), %s3087_s19, 2  ;;  %s3574_s21 = smov (!%p439_p2), 96  }
   0x6   : > { %442 = sbr.rel (%p439_p2) target bundleno = 4881 (0x1311), region = 80  ;;  %p487_p3 = scmp.lt.s32.totalorder (!%p439_p2), %s3092_s24, 7 }
   0x7   : > { %s3575_s22 = smov (!%p439_p2), 64   ;;  %s3576_s23 = smov (!%p439_p2), 120  }
   0x8   : > { %s3577_s25 = smov (!%p439_p2), 88   ;;  %s4714_s26 = smov (!%p439_p2), 80  }
   0x9   : > { %s3579_s27 = smov (!%p439_p2), 72   ;;  %s4710_s28 = smov (!%p439_p2), 104  }
   0xa   : > { %s4712_s30 = smov (!%p439_p2), 112   ;;  %s4708_s20 = smov (!%p439_p2), 56  }
   0xb   : > { %v529_v0 = vld [vmem:[%s4688_s1 + $0x18] sm:$0xff]  ;;  %v528_v1 = vld [vmem:[%s4688_s1 + $0x10] sm:$0xff]  ;;  %v527_v2 = vld [vmem:[%s4688_s1 + $0x8] sm:$0xff]  ;;  %s4732_s24 = smov (!%p487_p3, %s3092_s24), 7  ;;  %vm557_vm0 = vcmask 261120   ;;  %vm611_vm1 = vcmask 64512   ;;  %v502_v21 = vlaneseq }
   0xc   : > { %582 = vmatpush.msra.mxu0 %v529_v0  ;;  %v526_v3 = vld [vmem:[%s4688_s1] sm:$0xff]  ;;  %s4703_s29 = sshll.u32 %s4732_s24, 3  ;;  %s4706_s16 = smov 48  }
   0xd   : > { %s3694_s17 = scalar_lea.vmem %s4687_s0, %s4703_s29  ;;  %v3383_v9 = vld [vmem:[%s4689_s2] ss:$0 sm:$0xff]  ;;  %v503_v22 = vshrl.u32 %v502_v21, 7  ;;  %v508_v23 = vand.u32 127, %v502_v21  ;;  %s4704_s19 = smov 40  }
   0xe   : > { %583 = vmatpush.msra.mxu0 %v528_v1  ;;  %v498_v4 = vld [vmem:[%s3694_s17] sm:$0xff]  ;;  %v499_v5 = vld [vmem:[%s3694_s17 + $0x8] sm:$0xff]  ;;  %v500_v6 = vld [vmem:[%s3694_s17 + $0x10] sm:$0xff] }
   0xf   : > { %v501_v7 = vld [vmem:[%s3694_s17 + $0x18] sm:$0xff]  ;;  %v509_v24 = vshra.s32 %v503_v22, 4  ;;  %v513_v25 = vshra.s32 %v508_v23, 4  ;;  %vm518_vm3 = vcmp.le.s32.totalorder %v508_v23, %v503_v22  ;;  %v504_v26 = vadd.s32 8, %v503_v22 }
  0x10   : > { %584 = vmatpush.msra.mxu0 %v527_v2  ;;  %v505_v33 = vadd.s32 16, %v503_v22  ;;  %v506_v40 = vadd.s32 24, %v503_v22 }
  0x11   : > { %vm514_vm2 = vcmp.eq.s32.totalorder %v509_v24, %v513_v25  ;;  %v510_v30 = vshra.s32 %v504_v26, 4  ;;  %vm519_vm6 = vcmp.le.s32.totalorder %v508_v23, %v504_v26 }
  0x12   : > { %585 = vmatpush.msra.mxu0 %v526_v3  ;;  %vm3735_vm4 = vmand %vm514_vm2, %vm518_vm3  ;;  %v511_v37 = vshra.s32 %v505_v33, 4  ;;  %vm520_vm9 = vcmp.le.s32.totalorder %v508_v23, %v505_v33  ;;  %v512_v44 = vshra.s32 %v506_v40, 4  ;;  %vm521_vm12 = vcmp.le.s32.totalorder %v508_v23, %v506_v40 }
  0x13   : > { %3096 = vmatmul.msk.f32.vlgmr.msra.gmra.mxu0 %vm557_vm0, %v498_v4  ;;  %vm515_vm5 = vcmp.eq.s32.totalorder %v510_v30, %v513_v25  ;;  %v531_v30 = vld [vmem:[%s4690_s3] sm:$0xff] }
  0x14   : > { %vm3742_vm7 = vmand %vm515_vm5, %vm519_vm6  ;;  %vm516_vm8 = vcmp.eq.s32.totalorder %v511_v37, %v513_v25  ;;  %vm517_vm11 = vcmp.eq.s32.totalorder %v512_v44, %v513_v25 }
  0x15   : > { %vm3749_vm10 = vmand %vm516_vm8, %vm520_vm9 }
  0x16   : > { %vm3756_vm13 = vmand %vm517_vm11, %vm521_vm12 }
  0x1b   : > { %3097 = vmatmul.msk.f32.gmra.mxu0 %vm557_vm0, %v499_v5 }
  0x23   : > { %3098 = vmatmul.msk.f32.gmra.mxu0 %vm557_vm0, %v500_v6 }
  0x2b   : > { %3099 = vmatmul.msk.f32.gmra.mxu0 %vm557_vm0, %v501_v7 }
  0x90   : > { %v587_v8 = vpop.f32.mrf.mxu0 }
  0x91   : > { %v3711_v13 = vadd.f32 %v3383_v9, %v587_v8 }
  0x98   : > { %v590_v10 = vpop.f32.mrf.mxu0 }
  0x99   : > { %v3707_v11 = vadd.f32 %v3383_v9, %v590_v10 }
  0x9b   : > { %605 = vrot.lane.b32.xlu1 %v3707_v11, %s3574_s21  ;;  %v3771_v53 = vpack.i.bf16 %v3711_v13, %v3707_v11 }
  0xa0   : > { %v593_v12 = vpop.f32.mrf.mxu0 }
  0xa1   : > { %v3719_v16 = vadd.f32 %v3383_v9, %v593_v12 }
  0xa3   : > { %603 = vrot.lane.b32.xlu1 %v3711_v13, %s3574_s21 }
  0xa8   : > { %v596_v14 = vpop.f32.mrf.mxu0 }
  0xa9   : > { %v3715_v15 = vadd.f32 %v3383_v9, %v596_v14 }
  0xab   : > { %609 = vrot.lane.b32.xlu0 %v3715_v15, %s3574_s21  ;;  %v3765_v52 = vpack.i.bf16 %v3719_v16, %v3715_v15 }
  0xb3   : > { %607 = vrot.lane.b32.xlu0 %v3719_v16, %s3574_s21 }
 0x10d   : > { %v606_v18 = vpop.permute.xlu1 %605 }
 0x115   : > { %v604_v20 = vpop.permute.xlu1 %603 }
 0x11d   : > { %v610_v17 = vpop.permute.xlu0 %609 }
 0x11e   : > { %3100 = vmatpush.xpose.msk.msra.mxu1 %vm611_vm1, %v610_v17 }
 0x125   : > { %v608_v19 = vpop.permute.xlu0 %607 }
 0x126   : > { %3101 = vmatpush.xpose.msk.msra.mxu1 %vm611_vm1, %v608_v19 }
 0x12a   : > { %3102 = vmatpush.xpose.msk.msra.mxu1 %vm611_vm1, %v606_v18 }
 0x12e   : > { %3103 = vmatpush.xpose.msk.msra.mxu1 %vm611_vm1, %v604_v20 }
 0x131   : > { %3104 = vmatmul.msk.f32.vlgmr.msra.gmra.mxu1 %vm611_vm1, %v3711_v13 }
 0x132   : > { %996 = vmatpush.msrb.mxu1 %v531_v30 }
 0x139   : > { %3105 = vmatmul.msk.f32.gmra.mxu1 %vm611_vm1, %v3707_v11 }
 0x141   : > { %3106 = vmatmul.msk.f32.gmra.mxu1 %vm611_vm1, %v3719_v16 }
 0x149   : > { %3107 = vmatmul.msk.f32.gmra.mxu1 %vm611_vm1, %v3715_v15 }
 0x1ae   : > { %v645_v27 = vpop.f32.mrf.mxu1 }
 0x1af   : > { %v657_v29 = vmul.f32 0.35355338, %v645_v27 }
 0x1b1   : > { %v661_v31 = vsel %vm3735_vm4, %v657_v29, -1e+30 }
 0x1b2   : > { %v665_v32 = vsel %vm557_vm0, %v661_v31, -inf }
 0x1b3   : > { %666 = vmax.xlane.f32.xlu2 %v665_v32 }
 0x1b6   : > { %v648_v34 = vpop.f32.mrf.mxu1 }
 0x1b7   : > { %v658_v36 = vmul.f32 0.35355338, %v648_v34 }
 0x1b9   : > { %v662_v38 = vsel %vm3742_vm7, %v658_v36, -1e+30 }
 0x1ba   : > { %v668_v39 = vsel %vm557_vm0, %v662_v38, -inf }
 0x1bb   : > { %669 = vmax.xlane.f32.xlu2 %v668_v39 }
 0x1be   : > { %v651_v41 = vpop.f32.mrf.mxu1 }
 0x1bf   : > { %v659_v43 = vmul.f32 0.35355338, %v651_v41 }
 0x1c1   : > { %v663_v45 = vsel %vm3749_vm10, %v659_v43, -1e+30 }
 0x1c2   : > { %v671_v46 = vsel %vm557_vm0, %v663_v45, -inf }
 0x1c3   : > { %672 = vmax.xlane.f32.xlu0 %v671_v46 }
 0x1c6   : > { %v654_v47 = vpop.f32.mrf.mxu1 }
 0x1c7   : > { %v660_v49 = vmul.f32 0.35355338, %v654_v47 }
 0x1c9   : > { %v664_v50 = vsel %vm3756_vm13, %v660_v49, -1e+30 }
 0x1ca   : > { %v674_v51 = vsel %vm557_vm0, %v664_v50, -inf }
 0x1cb   : > { %675 = vmax.xlane.f32.xlu1 %v674_v51 }
 0x1d3   : > { %3304 = vrot.lane.b32.xlu2 %v3765_v52, %s3575_s22 }
 0x1db   : > { %3309 = vrot.lane.b32.xlu2 %v3771_v53, %s3575_s22 }
 0x226   : > { %v667_v54 = vpop.xlane.xlu2 %666 }
 0x227   : > { %v677_v55 = vsub.f32 %v661_v31, %v667_v54 }
 0x229   : > { %v681_v56 = vmul.f32 1.442695, %v677_v55 }
 0x22b   : > { %3400 = vpow2.f32 %v681_v56 }
 0x22e   : > { %v670_v57 = vpop.xlane.xlu2 %669 }
 0x22f   : > { %v678_v58 = vsub.f32 %v662_v38, %v670_v57 }
 0x231   : > { %v3775_v59 = vpop.eup %3400  ;;  %v683_v60 = vmul.f32 1.442695, %v678_v58 }
 0x232   : > { %v689_v61 = vsel %vm557_vm0, %v3775_v59, 0.0 }
 0x233   : > { %3402 = vpow2.f32 %v683_v60  ;;  %690 = vadd.xlane.f32.xlu2 %v689_v61 }
 0x236   : > { %v3305_v62 = vpop.permute.xlu2 %3304  ;;  %v673_v63 = vpop.xlane.xlu0 %672 }
 0x237   : > { %v679_v0 = vsub.f32 %v663_v45, %v673_v63  ;;  %v3306_v1 = vunpack.i.l.bf16 %v3305_v62  ;;  %v3307_v4 = vunpack.i.h.bf16 %v3305_v62 }
 0x239   : > { %v3403_v2 = vpop.eup %3402  ;;  %v685_v3 = vmul.f32 1.442695, %v679_v0  ;;  %745 = vmatpush.msra.mxu2 %v3306_v1 }
 0x23a   : > { %v692_v5 = vsel %vm557_vm0, %v3403_v2, 0.0 }
 0x23b   : > { %3404 = vpow2.f32 %v685_v3  ;;  %693 = vadd.xlane.f32.xlu2 %v692_v5  ;;  %746 = vmatpush.msra.mxu2 %v3307_v4 }
 0x23e   : > { %v3310_v6 = vpop.permute.xlu2 %3309  ;;  %v676_v7 = vpop.xlane.xlu1 %675 }
 0x23f   : > { %v680_v8 = vsub.f32 %v664_v50, %v676_v7  ;;  %v3311_v9 = vunpack.i.l.bf16 %v3310_v6  ;;  %v3312_v14 = vunpack.i.h.bf16 %v3310_v6 }
 0x241   : > { %v3405_v10 = vpop.eup %3404  ;;  %v687_v12 = vmul.f32 1.442695, %v680_v8  ;;  %747 = vmatpush.msra.mxu2 %v3311_v9 }
 0x242   : > { %v695_v17 = vsel %vm557_vm0, %v3405_v10, 0.0 }
 0x243   : > { %3406 = vpow2.f32 %v687_v12  ;;  %748 = vmatpush.msra.mxu2 %v3312_v14  ;;  %696 = vadd.xlane.f32.xlu0 %v695_v17 }
 0x249   : > { %v3407_v18 = vpop.eup %3406 }
 0x24a   : > { %v698_v19 = vsel %vm557_vm0, %v3407_v18, 0.0 }
 0x24b   : > { %699 = vadd.xlane.f32.xlu1 %v698_v19 }
 0x253   : > { %764 = vrot.lane.b32.xlu2 %v3707_v11, %s3576_s23 }
 0x257   : > { %776 = vrot.lane.b32.xlu0 %v3715_v15, %s3577_s25 }
 0x25b   : > { %1018 = vrot.lane.b32.xlu2 %v3711_v13, %s4714_s26 }
 0x25f   : > { %772 = vrot.lane.b32.xlu0 %v3707_v11, %s3577_s25 }
 0x263   : > { %1231 = vrot.lane.b32.xlu2 %v3707_v11, %s3579_s27 }
 0x264   : > { %774 = vrot.lane.b32.xlu1 %v3719_v16, %s3577_s25 }
 0x267   : > { %762 = vrot.lane.b32.xlu0 %v3711_v13, %s3576_s23 }
 0x26b   : > { %1221 = vrot.lane.b32.xlu2 %v3711_v13, %s4710_s28 }
 0x26c   : > { %770 = vrot.lane.b32.xlu1 %v3711_v13, %s3577_s25 }
 0x26f   : > { %768 = vrot.lane.b32.xlu0 %v3715_v15, %s3576_s23 }
 0x273   : > { %1016 = vrot.lane.b32.xlu2 %v3715_v15, %s4712_s30 }
 0x274   : > { %766 = vrot.lane.b32.xlu1 %v3719_v16, %s3576_s23 }
 0x277   : > { %1022 = vrot.lane.b32.xlu0 %v3719_v16, %s4714_s26 }
 0x27c   : > { %1024 = vrot.lane.b32.xlu1 %v3715_v15, %s4714_s26 }
 0x27f   : > { %1235 = vrot.lane.b32.xlu0 %v3715_v15, %s3579_s27 }
 0x284   : > { %1020 = vrot.lane.b32.xlu1 %v3707_v11, %s4714_s26 }
 0x287   : > { %1010 = vrot.lane.b32.xlu0 %v3711_v13, %s4712_s30 }
 0x28c   : > { %1233 = vrot.lane.b32.xlu1 %v3719_v16, %s3579_s27 }
 0x28f   : > { %1012 = vrot.lane.b32.xlu0 %v3707_v11, %s4712_s30 }
 0x294   : > { %1229 = vrot.lane.b32.xlu1 %v3711_v13, %s3579_s27 }
 0x297   : > { %1223 = vrot.lane.b32.xlu0 %v3707_v11, %s4710_s28 }
 0x29c   : > { %1014 = vrot.lane.b32.xlu1 %v3719_v16, %s4712_s30 }
 0x29f   : > { %1227 = vrot.lane.b32.xlu0 %v3715_v15, %s4710_s28 }
 0x2a4   : > { %1225 = vrot.lane.b32.xlu1 %v3719_v16, %s4710_s28 }
 0x2a6   : > { %v691_v20 = vpop.xlane.xlu2 %690 }
 0x2a7   : > { %3408 = vrcp.f32 %v691_v20 }
 0x2ad   : > { %v3409_v21 = vpop.eup %3408 }
 0x2ae   : > { %v694_v22 = vpop.xlane.xlu2 %693  ;;  %v705_v23 = vmul.f32 %v3409_v21, %v3775_v59 }
 0x2af   : > { %3410 = vrcp.f32 %v694_v22 }
 0x2b0   : > { %3108 = vmatmul.msk.f32.vlgmr.msra.gmra.mxu2 %vm557_vm0, %v705_v23 }
 0x2b5   : > { %v3411_v13 = vpop.eup %3410 }
 0x2b6   : > { %v697_v11 = vpop.xlane.xlu0 %696  ;;  %v706_v24 = vmul.f32 %v3411_v13, %v3403_v2  ;;  %v765_v38 = vpop.permute.xlu2 %764 }
 0x2b7   : > { %3412 = vrcp.f32 %v697_v11 }
 0x2b8   : > { %3109 = vmatmul.msk.f32.gmra.mxu2 %vm557_vm0, %v706_v24 }
 0x2bd   : > { %v3413_v25 = vpop.eup %3412 }
 0x2be   : > { %v700_v15 = vpop.xlane.xlu1 %699  ;;  %v707_v26 = vmul.f32 %v3413_v25, %v3405_v10  ;;  %v1019_v44 = vpop.permute.xlu2 %1018 }
 0x2bf   : > { %3414 = vrcp.f32 %v700_v15 }
 0x2c0   : > { %3110 = vmatmul.msk.f32.gmra.mxu2 %vm557_vm0, %v707_v26 }
 0x2c5   : > { %v3415_v16 = vpop.eup %3414 }
 0x2c6   : > { %v708_v27 = vmul.f32 %v3415_v16, %v3407_v18  ;;  %v1232_v46 = vpop.permute.xlu2 %1231 }
 0x2c8   : > { %3111 = vmatmul.msk.f32.gmra.mxu2 %vm557_vm0, %v708_v27 }
 0x2c9   : > { %v777_v29 = vpop.permute.xlu0 %776 }
 0x2ca   : > { %3112 = vmatpush.xpose.msk.msra.mxu3 %vm611_vm1, %v777_v29 }
 0x2ce   : > { %v1222_v55 = vpop.permute.xlu2 %1221 }
 0x2d1   : > { %v773_v31 = vpop.permute.xlu0 %772 }
 0x2d6   : > { %v775_v32 = vpop.permute.xlu1 %774  ;;  %v1017_v2 = vpop.permute.xlu2 %1016 }
 0x2d7   : > { %3113 = vmatpush.xpose.msk.msra.mxu3 %vm611_vm1, %v775_v32 }
 0x2d9   : > { %v763_v33 = vpop.permute.xlu0 %762 }
 0x2db   : > { %3114 = vmatpush.xpose.msk.msra.mxu3 %vm611_vm1, %v773_v31 }
 0x2de   : > { %v771_v34 = vpop.permute.xlu1 %770 }
 0x2df   : > { %3115 = vmatpush.xpose.msk.msra.mxu3 %vm611_vm1, %v771_v34 }
 0x2e1   : > { %v769_v36 = vpop.permute.xlu0 %768 }
 0x2e2   : > { %3116 = vmatmul.msk.f32.vlgmr.msra.gmra.mxu3 %vm611_vm1, %v763_v33 }
 0x2e3   : > { %3282 = vmatpush.msrb.mxu3 %v531_v30 }
 0x2e6   : > { %v767_v37 = vpop.permute.xlu1 %766 }
 0x2e9   : > { %v1023_v39 = vpop.permute.xlu0 %1022 }
 0x2ea   : > { %3117 = vmatmul.msk.f32.gmra.mxu3 %vm611_vm1, %v765_v38 }
 0x2ee   : > { %v1025_v40 = vpop.permute.xlu1 %1024 }
 0x2ef   : > { %3132 = vmatpush.xpose.msk.msra.mxu3 %vm611_vm1, %v1025_v40 }
 0x2f1   : > { %v1236_v41 = vpop.permute.xlu0 %1235 }
 0x2f2   : > { %3118 = vmatmul.msk.f32.gmra.mxu3 %vm611_vm1, %v767_v37  ;;  %3148 = vmatpush.xpose.msk.msra.mxu1 %vm611_vm1, %v1236_v41 }
 0x2f3   : > { %3133 = vmatpush.xpose.msk.msra.mxu3 %vm611_vm1, %v1023_v39 }
 0x2f6   : > { %v1021_v43 = vpop.permute.xlu1 %1020 }
 0x2f7   : > { %3134 = vmatpush.xpose.msk.msra.mxu3 %vm611_vm1, %v1021_v43 }
 0x2f9   : > { %v1011_v50 = vpop.permute.xlu0 %1010 }
 0x2fa   : > { %3119 = vmatmul.msk.f32.gmra.mxu3 %vm611_vm1, %v769_v36 }
 0x2fb   : > { %3135 = vmatpush.xpose.msk.msra.mxu3 %vm611_vm1, %v1019_v44 }
 0x2fe   : > { %v1234_v45 = vpop.permute.xlu1 %1233 }
 0x2ff   : > { %3149 = vmatpush.xpose.msk.msra.mxu1 %vm611_vm1, %v1234_v45 }
 0x301   : > { %v1013_v54 = vpop.permute.xlu0 %1012 }
 0x303   : > { %3150 = vmatpush.xpose.msk.msra.mxu1 %vm611_vm1, %v1232_v46 }
 0x306   : > { %v1230_v47 = vpop.permute.xlu1 %1229 }
 0x307   : > { %3151 = vmatpush.xpose.msk.msra.mxu1 %vm611_vm1, %v1230_v47 }
 0x309   : > { %v1224_v58 = vpop.permute.xlu0 %1223 }
 0x30e   : > { %v1015_v57 = vpop.permute.xlu1 %1014 }
 0x311   : > { %v1228_v61 = vpop.permute.xlu0 %1227 }
 0x316   : > { %v1226_v60 = vpop.permute.xlu1 %1225 }
 0x333   : > { %v750_v49 = vpop.f32.mrf.mxu2 }
 0x334   : > { %3128 = vmatmul.msk.f32.vlgmr.msrb.gmra.mxu1 %vm611_vm1, %v750_v49 }
 0x33b   : > { %v753_v51 = vpop.f32.mrf.mxu2 }
 0x33c   : > { %3129 = vmatmul.msk.f32.gmra.mxu1 %vm611_vm1, %v753_v51 }
 0x343   : > { %v756_v56 = vpop.f32.mrf.mxu2 }
 0x344   : > { %3130 = vmatmul.msk.f32.vlgmr.msrb.gmra.mxu3 %vm611_vm1, %v756_v56  ;;  %3152 = vmatmul.msk.f32.vlgmr.msra.gmra.mxu1 %vm611_vm1, %v1222_v55 }
 0x34b   : > { %v759_v59 = vpop.f32.mrf.mxu2 }
 0x34c   : > { %3131 = vmatmul.msk.f32.gmra.mxu3 %vm611_vm1, %v759_v59  ;;  %3153 = vmatmul.msk.f32.gmra.mxu1 %vm611_vm1, %v1224_v58 }
 0x354   : > { %3136 = vmatmul.msk.f32.vlgmr.msra.gmra.mxu3 %vm611_vm1, %v1011_v50  ;;  %3154 = vmatmul.msk.f32.gmra.mxu1 %vm611_vm1, %v1226_v60 }
 0x35c   : > { %3137 = vmatmul.msk.f32.gmra.mxu3 %vm611_vm1, %v1013_v54  ;;  %3155 = vmatmul.msk.f32.gmra.mxu1 %vm611_vm1, %v1228_v61 }
 0x364   : > { %3138 = vmatmul.msk.f32.gmra.mxu3 %vm611_vm1, %v1015_v57 }
 0x365   : > { %v811_v62 = vpop.f32.mrf.mxu3 }
 0x366   : > { %v823_v63 = vmul.f32 0.35355338, %v811_v62 }
 0x368   : > { %v827_v0 = vsel %vm3735_vm4, %v823_v63, -1e+30 }
 0x369   : > { %v831_v1 = vsel %vm557_vm0, %v827_v0, -inf }
 0x36a   : > { %832 = vmax.xlane.f32.xlu2 %v831_v1 }
 0x36c   : > { %3139 = vmatmul.msk.f32.gmra.mxu3 %vm611_vm1, %v1017_v2 }
 0x36d   : > { %v814_v3 = vpop.f32.mrf.mxu3 }
 0x36e   : > { %v824_v4 = vmul.f32 0.35355338, %v814_v3 }
 0x370   : > { %v828_v5 = vsel %vm3742_vm7, %v824_v4, -1e+30 }
 0x371   : > { %v834_v6 = vsel %vm557_vm0, %v828_v5, -inf }
 0x372   : > { %835 = vmax.xlane.f32.xlu1 %v834_v6 }
 0x375   : > { %v817_v7 = vpop.f32.mrf.mxu3 }
 0x376   : > { %v825_v8 = vmul.f32 0.35355338, %v817_v7 }
 0x378   : > { %v829_v9 = vsel %vm3749_vm10, %v825_v8, -1e+30 }
 0x379   : > { %v837_v10 = vsel %vm557_vm0, %v829_v9, -inf }
 0x37a   : > { %838 = vmax.xlane.f32.xlu0 %v837_v10 }
 0x37d   : > { %v820_v12 = vpop.f32.mrf.mxu3 }
 0x37e   : > { %v826_v14 = vmul.f32 0.35355338, %v820_v12 }
 0x380   : > { %v3877_v17 = vsel %vm3756_vm13, %v826_v14, -1e+30 }
 0x381   : > { %v840_v18 = vsel %vm557_vm0, %v3877_v17, -inf }
 0x382   : > { %841 = vmax.xlane.f32.xlu2 %v840_v18 }
 0x38e   : > { %3314 = vrot.lane.b32.xlu0 %v3765_v52, %s4708_s20 }
 0x39a   : > { %3319 = vrot.lane.b32.xlu2 %v3771_v53, %s4708_s20  ;;  %s4726_s20 = smov 104  }
 0x3b1   : > { %v3885_v19 = vpop.f32.mrf.mxu1 }
 0x3b9   : > { %v3887_v20 = vpop.f32.mrf.mxu1 }
 0x3c1   : > { %v1270_v21 = vpop.f32.mrf.mxu1 }
 0x3c2   : > { %v1282_v57 = vmul.f32 0.35355338, %v1270_v21 }
 0x3c4   : > { %v1286_v58 = vsel %vm3735_vm4, %v1282_v57, -1e+30 }
 0x3c5   : > { %v1290_v60 = vsel %vm557_vm0, %v1286_v58, -inf }
 0x3c7   : > { %v3889_v22 = vpop.f32.mrf.mxu3 }
 0x3c9   : > { %v3891_v23 = vpop.f32.mrf.mxu1 }
 0x3cf   : > { %v3893_v13 = vpop.f32.mrf.mxu3 }
 0x3d1   : > { %v1276_v11 = vpop.f32.mrf.mxu1 }
 0x3d2   : > { %v1284_v24 = vmul.f32 0.35355338, %v1276_v11 }
 0x3d4   : > { %v3897_v25 = vsel %vm3749_vm10, %v1284_v24, -1e+30 }
 0x3d5   : > { %v1296_v15 = vsel %vm557_vm0, %v3897_v25, -inf }
 0x3d6   : > { %1297 = vmax.xlane.f32.xlu2 %v1296_v15 }
 0x3d7   : > { %v3901_v26 = vpop.f32.mrf.mxu3 }
 0x3d8   : > { %v1071_v14 = vmul.f32 0.35355338, %v3901_v26 }
 0x3dd   : > { %v833_v16 = vpop.xlane.xlu2 %832 }
 0x3de   : > { %v843_v27 = vsub.f32 %v827_v0, %v833_v16 }
 0x3df   : > { %v1062_v29 = vpop.f32.mrf.mxu3 }
 0x3e0   : > { %v847_v30 = vmul.f32 1.442695, %v843_v27  ;;  %v1072_v31 = vmul.f32 0.35355338, %v1062_v29 }
 0x3e2   : > { %3416 = vpow2.f32 %v847_v30  ;;  %v3905_v32 = vsel %vm3742_vm7, %v1072_v31, -1e+30 }
 0x3e3   : > { %v1082_v33 = vsel %vm557_vm0, %v3905_v32, -inf }
 0x3e4   : > { %1083 = vmax.xlane.f32.xlu2 %v1082_v33 }
 0x3e5   : > { %v836_v34 = vpop.xlane.xlu1 %835 }
 0x3e6   : > { %v844_v36 = vsub.f32 %v828_v5, %v836_v34 }
 0x3e7   : > { %v1065_v37 = vpop.f32.mrf.mxu3 }
 0x3e8   : > { %v3909_v38 = vpop.eup %3416  ;;  %v849_v39 = vmul.f32 1.442695, %v844_v36  ;;  %v1073_v62 = vmul.f32 0.35355338, %v1065_v37 }
 0x3e9   : > { %v855_v40 = vsel %vm557_vm0, %v3909_v38, 0.0 }
 0x3ea   : > { %3418 = vpow2.f32 %v849_v39  ;;  %856 = vadd.xlane.f32.xlu1 %v855_v40  ;;  %v3929_v2 = vsel %vm3749_vm10, %v1073_v62, -1e+30 }
 0x3eb   : > { %v1085_v4 = vsel %vm557_vm0, %v3929_v2, -inf }
 0x3ed   : > { %v839_v41 = vpop.xlane.xlu0 %838 }
 0x3ee   : > { %v845_v43 = vsub.f32 %v829_v9, %v839_v41  ;;  %v1283_v9 = vmul.f32 0.35355338, %v3891_v23 }
 0x3ef   : > { %v1068_v44 = vpop.f32.mrf.mxu3 }
 0x3f0   : > { %v3913_v45 = vpop.eup %3418  ;;  %v851_v46 = vmul.f32 1.442695, %v845_v43  ;;  %v1074_v47 = vmul.f32 0.35355338, %v1068_v44  ;;  %v1287_v10 = vsel %vm3742_vm7, %v1283_v9, -1e+30 }
 0x3f1   : > { %v858_v49 = vsel %vm557_vm0, %v3913_v45, 0.0  ;;  %v1293_v12 = vsel %vm557_vm0, %v1287_v10, -inf }
 0x3f2   : > { %3420 = vpow2.f32 %v851_v46  ;;  %859 = vadd.xlane.f32.xlu1 %v858_v49  ;;  %v3919_v50 = vsel %vm3756_vm13, %v1074_v47, -1e+30 }
 0x3f3   : > { %v1088_v51 = vsel %vm557_vm0, %v3919_v50, -inf }
 0x3f4   : > { %1089 = vmax.xlane.f32.xlu2 %v1088_v51 }
 0x3f5   : > { %v842_v55 = vpop.xlane.xlu2 %841 }
 0x3f6   : > { %v846_v5 = vsub.f32 %v3877_v17, %v842_v55  ;;  %v1279_v17 = vpop.f32.mrf.mxu1 }
 0x3f7   : > { %v1285_v21 = vmul.f32 0.35355338, %v1279_v17 }
 0x3f8   : > { %v3421_v54 = vpop.eup %3420  ;;  %v853_v6 = vmul.f32 1.442695, %v846_v5 }
 0x3f9   : > { %v861_v56 = vsel %vm557_vm0, %v3421_v54, 0.0  ;;  %v3949_v23 = vsel %vm3756_vm13, %v1285_v21, -1e+30 }
 0x3fa   : > { %862 = vadd.xlane.f32.xlu0 %v861_v56  ;;  %3422 = vpow2.f32 %v853_v6  ;;  %v1299_v11 = vsel %vm557_vm0, %v3949_v23, -inf }
 0x3fd   : > { %v3320_v63 = vpop.permute.xlu2 %3319 }
 0x3fe   : > { %v3321_v1 = vunpack.i.l.bf16 %v3320_v63  ;;  %v3322_v3 = vunpack.i.h.bf16 %v3320_v63 }
 0x400   : > { %v3315_v59 = vpop.permute.xlu0 %3314  ;;  %v3423_v7 = vpop.eup %3422 }
 0x401   : > { %v3316_v61 = vunpack.i.l.bf16 %v3315_v59  ;;  %v3317_v0 = vunpack.i.h.bf16 %v3315_v59  ;;  %v864_v8 = vsel %vm557_vm0, %v3423_v7, 0.0 }
 0x402   : > { %1291 = vmax.xlane.f32.xlu0 %v1290_v60 }
 0x403   : > { %911 = vmatpush.msrb.mxu0 %v3316_v61 }
 0x405   : > { %912 = vmatpush.msrb.mxu0 %v3317_v0 }
 0x407   : > { %913 = vmatpush.msrb.mxu0 %v3321_v1 }
 0x409   : > { %914 = vmatpush.msrb.mxu0 %v3322_v3 }
 0x40a   : > { %1086 = vmax.xlane.f32.xlu0 %v1085_v4 }
 0x40b   : > { %3324 = vrot.lane.b32.xlu1 %v3765_v52, %s4706_s16 }
 0x41e   : > { %3329 = vrot.lane.b32.xlu0 %v3765_v52, %s4704_s19  ;;  %v1075_v52 = vsel %vm3735_vm4, %v1071_v14, -1e+30 }
 0x41f   : > { %v1079_v18 = vsel %vm557_vm0, %v1075_v52, -inf }
 0x435   : > { %865 = vadd.xlane.f32.xlu1 %v864_v8 }
 0x43d   : > { %1294 = vmax.xlane.f32.xlu1 %v1293_v12 }
 0x445   : > { %1080 = vmax.xlane.f32.xlu1 %v1079_v18 }
 0x44d   : > { %1300 = vmax.xlane.f32.xlu1 %v1299_v11 }
 0x45d   : > { %v857_v24 = vpop.xlane.xlu1 %856 }
 0x45e   : > { %3424 = vrcp.f32 %v857_v24 }
 0x464   : > { %v3425_v15 = vpop.eup %3424 }
 0x465   : > { %v860_v26 = vpop.xlane.xlu1 %859  ;;  %v871_v16 = vmul.f32 %v3425_v15, %v3909_v38 }
 0x466   : > { %3426 = vrcp.f32 %v860_v26  ;;  %3334 = vrot.lane.b32.xlu1 %v3771_v53, %s4706_s16 }
 0x467   : > { %3120 = vmatmul.msk.f32.vlgmr.msrb.gmra.mxu0 %vm557_vm0, %v871_v16 }
 0x46c   : > { %v3427_v27 = vpop.eup %3426 }
 0x46d   : > { %v863_v29 = vpop.xlane.xlu0 %862  ;;  %v872_v30 = vmul.f32 %v3427_v27, %v3913_v45 }
 0x46e   : > { %3428 = vrcp.f32 %v863_v29 }
 0x46f   : > { %3121 = vmatmul.msk.f32.gmra.mxu0 %vm557_vm0, %v872_v30 }
 0x474   : > { %v3429_v31 = vpop.eup %3428 }
 0x475   : > { %v1292_v33 = vpop.xlane.xlu0 %1291  ;;  %v873_v34 = vmul.f32 %v3429_v31, %v3421_v54  ;;  %v1298_v54 = vpop.xlane.xlu2 %1297 }
 0x476   : > { %v1302_v36 = vsub.f32 %v1286_v58, %v1292_v33  ;;  %v1304_v9 = vsub.f32 %v3897_v25, %v1298_v54 }
 0x477   : > { %3122 = vmatmul.msk.f32.gmra.mxu0 %vm557_vm0, %v873_v34 }
 0x478   : > { %v1306_v37 = vmul.f32 1.442695, %v1302_v36  ;;  %v1310_v14 = vmul.f32 1.442695, %v1304_v9 }
 0x47a   : > { %3430 = vpow2.f32 %v1306_v37 }
 0x47d   : > { %v3325_v38 = vpop.permute.xlu1 %3324  ;;  %v1087_v44 = vpop.xlane.xlu0 %1086 }
 0x47e   : > { %v3326_v39 = vunpack.i.l.bf16 %v3325_v38  ;;  %v3327_v41 = vunpack.i.h.bf16 %v3325_v38  ;;  %v1093_v57 = vsub.f32 %v3929_v2, %v1087_v44  ;;  %v1084_v61 = vpop.xlane.xlu2 %1083 }
 0x480   : > { %v3960_v40 = vpop.eup %3430  ;;  %1159 = vmatpush.msra.mxu0 %v3326_v39  ;;  %v1099_v60 = vmul.f32 1.442695, %v1093_v57 }
 0x481   : > { %v1314_v43 = vsel %vm557_vm0, %v3960_v40, 0.0 }
 0x482   : > { %1315 = vadd.xlane.f32.xlu2 %v1314_v43  ;;  %1160 = vmatpush.msra.mxu0 %v3327_v41 }
 0x490   : > { %v3330_v45 = vpop.permute.xlu0 %3329 }
 0x491   : > { %v3331_v46 = vunpack.i.l.bf16 %v3330_v45  ;;  %v3332_v47 = vunpack.i.h.bf16 %v3330_v45 }
 0x493   : > { %1370 = vmatpush.msrb.mxu3 %v3331_v46 }
 0x495   : > { %1371 = vmatpush.msrb.mxu3 %v3332_v47 }
 0x49a   : > { %3339 = vrot.lane.b32.xlu2 %v3771_v53, %s4704_s19  ;;  %v1092_v53 = vsub.f32 %v3905_v32, %v1084_v61 }
 0x49c   : > { %v1097_v4 = vmul.f32 1.442695, %v1092_v53 }
 0x4a8   : > { %v866_v49 = vpop.xlane.xlu1 %865 }
 0x4a9   : > { %3432 = vrcp.f32 %v866_v49 }
 0x4af   : > { %v3433_v51 = vpop.eup %3432 }
 0x4b0   : > { %v1295_v55 = vpop.xlane.xlu1 %1294  ;;  %v874_v56 = vmul.f32 %v3433_v51, %v3423_v7 }
 0x4b1   : > { %v1303_v58 = vsub.f32 %v1287_v10, %v1295_v55  ;;  %v532_v10 = vld [vmem:[%s4690_s3 + $0x8] sm:$0xff] }
 0x4b2   : > { %3123 = vmatmul.msk.f32.gmra.mxu0 %vm557_vm0, %v874_v56  ;;  %955 = vmatpush.msrb.mxu2 %v532_v10 }
 0x4b3   : > { %v1308_v59 = vmul.f32 1.442695, %v1303_v58 }
 0x4b5   : > { %3434 = vpow2.f32 %v1308_v59 }
 0x4b6   : > { %3436 = vpow2.f32 %v1099_v60 }
 0x4b8   : > { %v1081_v62 = vpop.xlane.xlu1 %1080 }
 0x4b9   : > { %v1091_v63 = vsub.f32 %v1075_v52, %v1081_v62  ;;  %v1090_v52 = vpop.xlane.xlu2 %1089 }
 0x4ba   : > { %v1094_v25 = vsub.f32 %v3919_v50, %v1090_v52 }
 0x4bb   : > { %v3968_v0 = vpop.eup %3434  ;;  %v1095_v1 = vmul.f32 1.442695, %v1091_v63 }
 0x4bc   : > { %v1317_v3 = vsel %vm557_vm0, %v3968_v0, 0.0  ;;  %v3973_v2 = vpop.eup %3436  ;;  %v1101_v11 = vmul.f32 1.442695, %v1094_v25 }
 0x4bd   : > { %3438 = vpow2.f32 %v1095_v1  ;;  %1318 = vadd.xlane.f32.xlu0 %v1317_v3  ;;  %v1109_v7 = vsel %vm557_vm0, %v3973_v2, 0.0 }
 0x4be   : > { %3440 = vpow2.f32 %v1097_v4  ;;  %v534_v4 = vld [vmem:[%s4690_s3 + $0x18] sm:$0xff] }
 0x4c0   : > { %v1301_v5 = vpop.xlane.xlu1 %1300 }
 0x4c1   : > { %v1305_v6 = vsub.f32 %v3949_v23, %v1301_v5 }
 0x4c3   : > { %v3439_v8 = vpop.eup %3438  ;;  %v1312_v32 = vmul.f32 1.442695, %v1305_v6  ;;  %1110 = vadd.xlane.f32.xlu2 %v1109_v7 }
 0x4c4   : > { %v1103_v12 = vsel %vm557_vm0, %v3439_v8, 0.0  ;;  %v3441_v17 = vpop.eup %3440 }
 0x4c5   : > { %3442 = vpow2.f32 %v1312_v32  ;;  %1104 = vadd.xlane.f32.xlu1 %v1103_v12  ;;  %v1106_v21 = vsel %vm557_vm0, %v3441_v17, 0.0 }
 0x4c6   : > { %3444 = vpow2.f32 %v1310_v14 }
 0x4c7   : > { %3446 = vpow2.f32 %v1101_v11 }
 0x4cb   : > { %v3983_v18 = vpop.eup %3442 }
 0x4cc   : > { %v1323_v23 = vsel %vm557_vm0, %v3983_v18, 0.0  ;;  %v3445_v24 = vpop.eup %3444 }
 0x4cd   : > { %1107 = vadd.xlane.f32.xlu1 %v1106_v21  ;;  %1324 = vadd.xlane.f32.xlu0 %v1323_v23  ;;  %v1320_v15 = vsel %vm557_vm0, %v3445_v24, 0.0  ;;  %v3447_v16 = vpop.eup %3446 }
 0x4ce   : > { %v1112_v50 = vsel %vm557_vm0, %v3447_v16, 0.0 }
 0x4d5   : > { %1321 = vadd.xlane.f32.xlu1 %v1320_v15 }
 0x4d8   : > { %v3335_v26 = vpop.permute.xlu1 %3334 }
 0x4d9   : > { %v3336_v27 = vunpack.i.l.bf16 %v3335_v26  ;;  %v3337_v29 = vunpack.i.h.bf16 %v3335_v26 }
 0x4db   : > { %1161 = vmatpush.msra.mxu0 %v3336_v27 }
 0x4dd   : > { %1113 = vadd.xlane.f32.xlu1 %v1112_v50  ;;  %1162 = vmatpush.msra.mxu0 %v3337_v29 }
 0x4df   : > { %1414 = vmatpush.msrb.mxu0 %v534_v4 }
 0x4e4   : > { %v916_v30 = vpop.f32.mrf.mxu0 }
 0x4e5   : > { %3124 = vmatmul.msk.f32.vlgmr.msrb.gmra.mxu2 %vm611_vm1, %v916_v30 }
 0x4ec   : > { %v919_v31 = vpop.f32.mrf.mxu0 }
 0x4ed   : > { %3125 = vmatmul.msk.f32.gmra.mxu2 %vm611_vm1, %v919_v31 }
 0x4f4   : > { %v922_v33 = vpop.f32.mrf.mxu0 }
 0x4f5   : > { %v1316_v34 = vpop.xlane.xlu2 %1315  ;;  %3126 = vmatmul.msk.f32.gmra.mxu2 %vm611_vm1, %v922_v33 }
 0x4f6   : > { %3448 = vrcp.f32 %v1316_v34 }
 0x4fc   : > { %v3449_v37 = vpop.eup %3448 }
 0x4fd   : > { %v3340_v36 = vpop.permute.xlu2 %3339  ;;  %v1330_v41 = vmul.f32 %v3449_v37, %v3960_v40  ;;  %v3563_v37 = vld [vmem:[%s3694_s17 + $0x8] sm:$0xff] }
 0x4fe   : > { %v3341_v38 = vunpack.i.l.bf16 %v3340_v36  ;;  %v3342_v39 = vunpack.i.h.bf16 %v3340_v36 }
 0x500   : > { %1372 = vmatpush.msrb.mxu3 %v3341_v38 }
 0x502   : > { %1373 = vmatpush.msrb.mxu3 %v3342_v39 }
 0x503   : > { %3156 = vmatmul.msk.f32.vlgmr.msrb.gmra.mxu3 %vm557_vm0, %v1330_v41 }
 0x52f   : > { %v925_v43 = vpop.f32.mrf.mxu0 }
 0x530   : > { %3127 = vmatmul.msk.f32.gmra.mxu2 %vm611_vm1, %v925_v43  ;;  %v1319_v44 = vpop.xlane.xlu0 %1318 }
 0x531   : > { %3450 = vrcp.f32 %v1319_v44 }
 0x536   : > { %v1111_v40 = vpop.xlane.xlu2 %1110 }
 0x537   : > { %v3451_v45 = vpop.eup %3450 }
 0x538   : > { %v1105_v46 = vpop.xlane.xlu1 %1104  ;;  %v1331_v47 = vmul.f32 %v3451_v45, %v3968_v0 }
 0x539   : > { %3452 = vrcp.f32 %v1105_v46 }
 0x53a   : > { %3157 = vmatmul.msk.f32.gmra.mxu3 %vm557_vm0, %v1331_v47  ;;  %v3564_v47 = vld [vmem:[%s3694_s17 + $0x10] sm:$0xff] }
 0x53f   : > { %v3453_v49 = vpop.eup %3452 }
 0x540   : > { %v1119_v51 = vmul.f32 %v3453_v49, %v3439_v8  ;;  %v1108_v54 = vpop.xlane.xlu1 %1107  ;;  %v1325_v58 = vpop.xlane.xlu0 %1324 }
 0x541   : > { %3454 = vrcp.f32 %v1108_v54 }
 0x542   : > { %3140 = vmatmul.msk.f32.vlgmr.msra.gmra.mxu0 %vm557_vm0, %v1119_v51  ;;  %3456 = vrcp.f32 %v1111_v40 }
 0x547   : > { %v3455_v55 = vpop.eup %3454 }
 0x548   : > { %v1322_v56 = vpop.xlane.xlu1 %1321  ;;  %v1120_v57 = vmul.f32 %v3455_v55, %v3441_v17  ;;  %v3457_v59 = vpop.eup %3456 }
 0x549   : > { %3458 = vrcp.f32 %v1322_v56  ;;  %v1121_v63 = vmul.f32 %v3457_v59, %v3973_v2  ;;  %v533_v2 = vld [vmem:[%s4690_s3 + $0x10] sm:$0xff] }
 0x54a   : > { %3141 = vmatmul.msk.f32.gmra.mxu0 %vm557_vm0, %v1120_v57  ;;  %3460 = vrcp.f32 %v1325_v58  ;;  %1203 = vmatpush.msra.mxu2 %v533_v2  ;;  %v3565_v57 = vld [vmem:[%s3694_s17 + $0x18] sm:$0xff] }
 0x54f   : > { %v3459_v60 = vpop.eup %3458 }
 0x550   : > { %v1114_v61 = vpop.xlane.xlu1 %1113  ;;  %v1332_v62 = vmul.f32 %v3459_v60, %v3445_v24  ;;  %v3461_v0 = vpop.eup %3460  ;;  %v3384_v24 = vld [vmem:[%s4691_s4] ss:$0 sm:$0xff]  ;;  %v3585_v60 = vmov 32.0  }
 0x551   : > { %3462 = vrcp.f32 %v1114_v61  ;;  %v1333_v3 = vmul.f32 %v3461_v0, %v3983_v18 }
 0x552   : > { %3158 = vmatmul.msk.f32.gmra.mxu3 %vm557_vm0, %v1332_v62  ;;  %3142 = vmatmul.msk.f32.gmra.mxu0 %vm557_vm0, %v1121_v63  ;;  %3464 = vrcp.f32 %v3585_v60  ;;  %v547_v60 = vld [vmem:[%s4696_s9 + $0x20] sm:$0xff] }
 0x557   : > { %v3463_v53 = vpop.eup %3462 }
 0x558   : > { %v1122_v1 = vmul.f32 %v3463_v53, %v3447_v16  ;;  %v3562_v16 = vld [vmem:[%s3694_s17] sm:$0xff]  ;;  %v3465_v61 = vpop.eup %3464  ;;  %s4730_s17 = sshll.u32 %s4732_s24, 3 }
 0x559   : > { %v1456_v62 = vmul.f32 32.0, %v3465_v61  ;;  %vm1460_vm14 = vweird.f32 %v3465_v61 }
 0x55a   : > { %3159 = vmatmul.msk.f32.gmra.mxu3 %vm557_vm0, %v1333_v3  ;;  %3143 = vmatmul.msk.f32.gmra.mxu0 %vm557_vm0, %v1122_v1 }
 0x568   : > { %v957_v14 = vpop.f32.mrf.mxu2 }
 0x569   : > { %v999_v25 = vadd.f32 %v3885_v19, %v957_v14 }
 0x570   : > { %v960_v52 = vpop.f32.mrf.mxu2 }
 0x571   : > { %v1002_v29 = vadd.f32 %v3887_v20, %v960_v52 }
 0x578   : > { %v963_v17 = vpop.f32.mrf.mxu2 }
 0x579   : > { %v1005_v36 = vadd.f32 %v3889_v22, %v963_v17 }
 0x586   : > { %v1375_v5 = vpop.f32.mrf.mxu3 }
 0x587   : > { %3160 = vmatmul.msk.f32.vlgmr.msrb.gmra.mxu0 %vm611_vm1, %v1375_v5 }
 0x5b3   : > { %v966_v18 = vpop.f32.mrf.mxu2 }
 0x5b4   : > { %v1008_v46 = vadd.f32 %v3893_v13, %v966_v18  ;;  %v1457_v13 = vsub.f32 1.0, %v1456_v62 }
 0x5b6   : > { %v1458_v63 = vmul.f32 %v3465_v61, %v1457_v13 }
 0x5b8   : > { %v1459_v0 = vadd.f32 %v3465_v61, %v1458_v63 }
 0x5ba   : > { %v4036_v53 = vsel %vm1460_vm14, %v3465_v61, %v1459_v0  ;;  %v546_v0 = vld [vmem:[%s4696_s9 + $0x18] sm:$0xff] }
 0x5bd   : > { %v1378_v6 = vpop.f32.mrf.mxu3 }
 0x5be   : > { %3161 = vmatmul.msk.f32.gmra.mxu0 %vm611_vm1, %v1378_v6 }
 0x5bf   : > { %v1164_v7 = vpop.f32.mrf.mxu0 }
 0x5c0   : > { %3144 = vmatmul.msk.f32.vlgmr.msra.gmra.mxu2 %vm611_vm1, %v1164_v7 }
 0x5c7   : > { %v1167_v8 = vpop.f32.mrf.mxu0 }
 0x5c8   : > { %3145 = vmatmul.msk.f32.gmra.mxu2 %vm611_vm1, %v1167_v8 }
 0x5cf   : > { %v1170_v9 = vpop.f32.mrf.mxu0 }
 0x5d0   : > { %3146 = vmatmul.msk.f32.gmra.mxu2 %vm611_vm1, %v1170_v9 }
 0x5d5   : > { %v1381_v32 = vpop.f32.mrf.mxu3 }
 0x5d6   : > { %3162 = vmatmul.msk.f32.gmra.mxu0 %vm611_vm1, %v1381_v32 }
 0x5d7   : > { %v1173_v10 = vpop.f32.mrf.mxu0 }
 0x5d8   : > { %3147 = vmatmul.msk.f32.gmra.mxu2 %vm611_vm1, %v1173_v10 }
 0x5dd   : > { %v1384_v12 = vpop.f32.mrf.mxu3 }
 0x5de   : > { %3163 = vmatmul.msk.f32.gmra.mxu0 %vm611_vm1, %v1384_v12 }
 0x604   : > { %v1416_v23 = vpop.f32.mrf.mxu0 }
 0x63b   : > { %v1419_v50 = vpop.f32.mrf.mxu0 }
 0x643   : > { %v1205_v21 = vpop.f32.mrf.mxu2 }
 0x644   : > { %v1217_v11 = vadd.f32 %v1205_v21, %v999_v25 }
 0x646   : > { %v1428_v15 = vadd.f32 %v1416_v23, %v1217_v11 }
 0x648   : > { %v1435_v26 = vadd.f32 %v3384_v24, %v1428_v15  ;;  %v540_v15 = vld [vmem:[%s4694_s7 + $0x10] sm:$0xff] }
 0x64a   : > { %v1439_v27 = vadd.f32 %v3562_v16, %v1435_v26  ;;  %v539_v26 = vld [vmem:[%s4694_s7 + $0x8] sm:$0xff]  ;;  %v538_v16 = vld [vmem:[%s4694_s7] sm:$0xff] }
 0x64b   : > { %v1208_v30 = vpop.f32.mrf.mxu2 }
 0x64c   : > { %v1443_v31 = vsel %vm557_vm0, %v1439_v27, 0.0  ;;  %v1218_v19 = vadd.f32 %v1208_v30, %v1002_v29 }
 0x64d   : > { %1444 = vadd.xlane.f32.xlu1 %v1443_v31 }
 0x64e   : > { %v1429_v33 = vadd.f32 %v1419_v50, %v1218_v19 }
 0x650   : > { %v1436_v34 = vadd.f32 %v3384_v24, %v1429_v33 }
 0x652   : > { %v1440_v38 = vadd.f32 %v3563_v37, %v1436_v34 }
 0x653   : > { %v1211_v39 = vpop.f32.mrf.mxu2  ;;  %v1422_v41 = vpop.f32.mrf.mxu0 }
 0x654   : > { %v1219_v43 = vadd.f32 %v1211_v39, %v1005_v36  ;;  %v1446_v44 = vsel %vm557_vm0, %v1440_v38, 0.0 }
 0x655   : > { %1447 = vadd.xlane.f32.xlu0 %v1446_v44 }
 0x656   : > { %v1430_v20 = vadd.f32 %v1422_v41, %v1219_v43 }
 0x658   : > { %v1437_v45 = vadd.f32 %v3384_v24, %v1430_v20 }
 0x65a   : > { %v1441_v49 = vadd.f32 %v3564_v47, %v1437_v45  ;;  %v3385_v45 = vld [vmem:[%s4692_s5] ss:$0 sm:$0xff] }
 0x65b   : > { %v1214_v51 = vpop.f32.mrf.mxu2  ;;  %v1425_v22 = vpop.f32.mrf.mxu0 }
 0x65c   : > { %v1220_v54 = vadd.f32 %v1214_v51, %v1008_v46  ;;  %v1449_v40 = vsel %vm557_vm0, %v1441_v49, 0.0  ;;  %v549_v51 = vld [vmem:[%s4696_s9 + $0x30] sm:$0xff] }
 0x65d   : > { %1450 = vadd.xlane.f32.xlu1 %v1449_v40 }
 0x65e   : > { %v1431_v55 = vadd.f32 %v1425_v22, %v1220_v54  ;;  %v3386_v22 = vld [vmem:[%s4693_s6] ss:$0 sm:$0xff] }
 0x660   : > { %v1438_v56 = vadd.f32 %v3384_v24, %v1431_v55  ;;  %v541_v24 = vld [vmem:[%s4694_s7 + $0x18] sm:$0xff]  ;;  %v548_v55 = vld [vmem:[%s4696_s9 + $0x28] sm:$0xff] }
 0x661   : > { %1579 = vmatpush.msrb.mxu2 %v541_v24 }
 0x662   : > { %v1442_v58 = vadd.f32 %v3565_v57, %v1438_v56 }
 0x663   : > { %1580 = vmatpush.msrb.mxu2 %v540_v15 }
 0x664   : > { %v1452_v59 = vsel %vm557_vm0, %v1442_v58, 0.0 }
 0x665   : > { %1453 = vadd.xlane.f32.xlu0 %v1452_v59  ;;  %1581 = vmatpush.msrb.mxu2 %v539_v26 }
 0x667   : > { %1582 = vmatpush.msrb.mxu2 %v538_v16 }
 0x6c0   : > { %v1445_v1 = vpop.xlane.xlu1 %1444 }
 0x6c1   : > { %v1462_v3 = vmul.f32 %v4036_v53, %v1445_v1 }
 0x6c3   : > { %v1466_v4 = vsub.f32 %v1439_v27, %v1462_v3 }
 0x6c5   : > { %v1470_v2 = vmul.f32 %v1466_v4, %v1466_v4 }
 0x6c7   : > { %v1474_v5 = vsel %vm557_vm0, %v1470_v2, 0.0 }
 0x6c8   : > { %1475 = vadd.xlane.f32.xlu2 %v1474_v5  ;;  %v1448_v6 = vpop.xlane.xlu0 %1447 }
 0x6c9   : > { %v1463_v7 = vmul.f32 %v4036_v53, %v1448_v6 }
 0x6cb   : > { %v4041_v8 = vsub.f32 %v1440_v38, %v1463_v7 }
 0x6cd   : > { %v1471_v9 = vmul.f32 %v4041_v8, %v4041_v8 }
 0x6cf   : > { %v1477_v32 = vsel %vm557_vm0, %v1471_v9, 0.0 }
 0x6d0   : > { %1478 = vadd.xlane.f32.xlu1 %v1477_v32  ;;  %v1451_v10 = vpop.xlane.xlu1 %1450 }
 0x6d1   : > { %v1464_v12 = vmul.f32 %v4036_v53, %v1451_v10 }
 0x6d3   : > { %v4047_v14 = vsub.f32 %v1441_v49, %v1464_v12  ;;  %v550_v49 = vld [vmem:[%s4696_s9 + $0x38] sm:$0xff] }
 0x6d4   : > { %1624 = vmatpush.msrb.mxu1 %v550_v49 }
 0x6d5   : > { %v1472_v52 = vmul.f32 %v4047_v14, %v4047_v14 }
 0x6d6   : > { %1625 = vmatpush.msrb.mxu1 %v549_v51 }
 0x6d7   : > { %v1480_v17 = vsel %vm557_vm0, %v1472_v52, 0.0 }
 0x6d8   : > { %1481 = vadd.xlane.f32.xlu0 %v1480_v17  ;;  %v1454_v18 = vpop.xlane.xlu0 %1453  ;;  %1626 = vmatpush.msrb.mxu1 %v548_v55 }
 0x6d9   : > { %v1465_v25 = vmul.f32 %v4036_v53, %v1454_v18 }
 0x6da   : > { %1627 = vmatpush.msrb.mxu1 %v547_v60 }
 0x6db   : > { %v4053_v21 = vsub.f32 %v1442_v58, %v1465_v25 }
 0x6dc   : > { %1628 = vmatpush.msrb.mxu1 %v546_v0 }
 0x6dd   : > { %v1473_v23 = vmul.f32 %v4053_v21, %v4053_v21 }
 0x6df   : > { %v1483_v11 = vsel %vm557_vm0, %v1473_v23, 0.0 }
 0x6e0   : > { %1484 = vadd.xlane.f32.xlu2 %v1483_v11 }
 0x73b   : > { %v1476_v27 = vpop.xlane.xlu2 %1475 }
 0x73c   : > { %v1486_v29 = vmul.f32 %v1476_v27, %v4036_v53 }
 0x73e   : > { %v1490_v50 = vadd.f32 1e-05, %v1486_v29 }
 0x740   : > { %3466 = vrsqrt.f32 %v1490_v50  ;;  %vm1500_vm2 = vweird.f32 %v1490_v50 }
 0x743   : > { %v1479_v30 = vpop.xlane.xlu1 %1478 }
 0x744   : > { %v1487_v31 = vmul.f32 %v1479_v30, %v4036_v53  ;;  %v543_v30 = vld [vmem:[%s4696_s9] sm:$0xff] }
 0x746   : > { %v3467_v19 = vpop.eup %3466  ;;  %v1491_v34 = vadd.f32 1e-05, %v1487_v31 }
 0x747   : > { %v1495_v33 = vmul.f32 %v3467_v19, %v1490_v50  ;;  %vm1501_vm15 = vweird.f32 %v3467_v19  ;;  %v544_v50 = vld [vmem:[%s4696_s9 + $0x8] sm:$0xff] }
 0x748   : > { %3468 = vrsqrt.f32 %v1491_v34  ;;  %vm1502_vm3 = vmor %vm1500_vm2, %vm1501_vm15  ;;  %vm1510_vm6 = vweird.f32 %v1491_v34 }
 0x749   : > { %v1496_v36 = vmul.f32 %v3467_v19, %v1495_v33 }
 0x74b   : > { %v1497_v37 = vmul.f32 0.5, %v1496_v36  ;;  %v1482_v38 = vpop.xlane.xlu0 %1481 }
 0x74c   : > { %v1488_v41 = vmul.f32 %v1482_v38, %v4036_v53 }
 0x74d   : > { %v1498_v39 = vsub.f32 1.5, %v1497_v37 }
 0x74e   : > { %v3469_v43 = vpop.eup %3468  ;;  %v1492_v20 = vadd.f32 1e-05, %v1488_v41 }
 0x74f   : > { %v1499_v44 = vmul.f32 %v3467_v19, %v1498_v39  ;;  %v1505_v46 = vmul.f32 %v3469_v43, %v1491_v34  ;;  %vm1511_vm5 = vweird.f32 %v3469_v43 }
 0x750   : > { %3470 = vrsqrt.f32 %v1492_v20  ;;  %vm1512_vm8 = vmor %vm1510_vm6, %vm1511_vm5  ;;  %vm1520_vm11 = vweird.f32 %v1492_v20 }
 0x751   : > { %v1503_v47 = vsel %vm1502_vm3, %v3467_v19, %v1499_v44  ;;  %v1506_v40 = vmul.f32 %v3469_v43, %v1505_v46  ;;  %vm1603_vm3 = vcmask 523264  }
 0x752   : > { %v1534_v54 = vmul.f32 %v1503_v47, %v1466_v4 }
 0x753   : > { %v1507_v57 = vmul.f32 0.5, %v1506_v40  ;;  %v1485_v58 = vpop.xlane.xlu2 %1484 }
 0x754   : > { %v1541_v56 = vmul.f32 %v3385_v45, %v1534_v54  ;;  %v1489_v59 = vmul.f32 %v1485_v58, %v4036_v53 }
 0x755   : > { %v1508_v61 = vsub.f32 1.5, %v1507_v57 }
 0x756   : > { %v4092_v62 = vadd.f32 %v3386_v22, %v1541_v56  ;;  %v3471_v13 = vpop.eup %3470  ;;  %v1493_v63 = vadd.f32 1e-05, %v1489_v59 }
 0x757   : > { %v1509_v1 = vmul.f32 %v3469_v43, %v1508_v61  ;;  %v1515_v3 = vmul.f32 %v3471_v13, %v1492_v20  ;;  %vm1521_vm9 = vweird.f32 %v3471_v13 }
 0x758   : > { %3164 = vmatmul.msk.f32.vlgmr.msrb.gmra.mxu2 %vm557_vm0, %v4092_v62  ;;  %3472 = vrsqrt.f32 %v1493_v63  ;;  %vm1522_vm12 = vmor %vm1520_vm11, %vm1521_vm9  ;;  %vm1530_vm15 = vweird.f32 %v1493_v63 }
 0x759   : > { %v1513_v4 = vsel %vm1512_vm8, %v3469_v43, %v1509_v1  ;;  %v1516_v2 = vmul.f32 %v3471_v13, %v1515_v3 }
 0x75a   : > { %v1535_v5 = vmul.f32 %v1513_v4, %v4041_v8 }
 0x75b   : > { %v1517_v6 = vmul.f32 0.5, %v1516_v2 }
 0x75c   : > { %v1542_v7 = vmul.f32 %v3385_v45, %v1535_v5 }
 0x75d   : > { %v1518_v9 = vsub.f32 1.5, %v1517_v6 }
 0x75e   : > { %v3473_v32 = vpop.eup %3472  ;;  %v1549_v10 = vadd.f32 %v3386_v22, %v1542_v7 }
 0x75f   : > { %v1519_v12 = vmul.f32 %v3471_v13, %v1518_v9  ;;  %v1525_v52 = vmul.f32 %v3473_v32, %v1493_v63  ;;  %vm1531_vm14 = vweird.f32 %v3473_v32 }
 0x760   : > { %3165 = vmatmul.msk.f32.gmra.mxu2 %vm557_vm0, %v1549_v10  ;;  %vm1532_vm2 = vmor %vm1530_vm15, %vm1531_vm14 }
 0x761   : > { %v1523_v17 = vsel %vm1522_vm12, %v3471_v13, %v1519_v12  ;;  %v1526_v18 = vmul.f32 %v3473_v32, %v1525_v52 }
 0x762   : > { %v1536_v25 = vmul.f32 %v1523_v17, %v4047_v14  ;;  %v545_v14 = vld [vmem:[%s4696_s9 + $0x10] sm:$0xff] }
 0x763   : > { %v1527_v23 = vmul.f32 0.5, %v1526_v18  ;;  %1629 = vmatpush.msrb.mxu1 %v545_v14 }
 0x764   : > { %v1543_v11 = vmul.f32 %v3385_v45, %v1536_v25 }
 0x765   : > { %v1528_v24 = vsub.f32 1.5, %v1527_v23  ;;  %1630 = vmatpush.msrb.mxu1 %v544_v50 }
 0x766   : > { %v1550_v8 = vadd.f32 %v3386_v22, %v1543_v11 }
 0x767   : > { %v1529_v15 = vmul.f32 %v3473_v32, %v1528_v24  ;;  %1631 = vmatpush.msrb.mxu1 %v543_v30 }
 0x768   : > { %3166 = vmatmul.msk.f32.gmra.mxu2 %vm557_vm0, %v1550_v8 }
 0x769   : > { %v1533_v26 = vsel %vm1532_vm2, %v3473_v32, %v1529_v15  ;;  %v3174_v15 = vld [vmem:[%s4688_s1 + $0x30] sm:$0xff] }
 0x76a   : > { %v1537_v16 = vmul.f32 %v1533_v26, %v4053_v21  ;;  %v3387_v21 = vld [vmem:[%s4695_s8] ss:$0 sm:$0xff]  ;;  %v3173_v26 = vld [vmem:[%s4688_s1 + $0x28] sm:$0xff] }
 0x76c   : > { %v1544_v27 = vmul.f32 %v3385_v45, %v1537_v16  ;;  %v3388_v45 = vld [vmem:[%s4697_s10] ss:$0 sm:$0xff] }
 0x76d   : > { %v3172_v16 = vld [vmem:[%s4688_s1 + $0x20] sm:$0xff] }
 0x76e   : > { %v1551_v29 = vadd.f32 %v3386_v22, %v1544_v27 }
 0x770   : > { %3167 = vmatmul.msk.f32.gmra.mxu2 %vm557_vm0, %v1551_v29 }
 0x7db   : > { %v1584_v31 = vpop.f32.mrf.mxu2 }
 0x7dc   : > { %v1585_v19 = vadd.f32 %v3387_v21, %v1584_v31 }
 0x7de   : > { %v1596_v33 = vmax.f32 %v1585_v19, 0.0 }
 0x7e0   : > { %3168 = vmatmul.msk.f32.vlgmr.msrb.gmra.mxu1 %vm1603_vm3, %v1596_v33 }
 0x7e3   : > { %v1587_v34 = vpop.f32.mrf.mxu2 }
 0x7e4   : > { %v1588_v36 = vadd.f32 %v3387_v21, %v1587_v34 }
 0x7e6   : > { %v1597_v37 = vmax.f32 %v1588_v36, 0.0 }
 0x7e8   : > { %3169 = vmatmul.msk.f32.gmra.mxu1 %vm1603_vm3, %v1597_v37 }
 0x7eb   : > { %v1590_v38 = vpop.f32.mrf.mxu2 }
 0x7ec   : > { %v1591_v39 = vadd.f32 %v3387_v21, %v1590_v38 }
 0x7ee   : > { %v1598_v41 = vmax.f32 %v1591_v39, 0.0 }
 0x7f0   : > { %3170 = vmatmul.msk.f32.gmra.mxu1 %vm1603_vm3, %v1598_v41 }
 0x7f3   : > { %v1593_v43 = vpop.f32.mrf.mxu2 }
 0x7f4   : > { %v1594_v44 = vadd.f32 %v3387_v21, %v1593_v43 }
 0x7f6   : > { %v1599_v20 = vmax.f32 %v1594_v44, 0.0  ;;  %v3389_v44 = vld [vmem:[%s4698_s11] ss:$0 sm:$0xff] }
 0x7f8   : > { %3171 = vmatmul.msk.f32.gmra.mxu1 %vm1603_vm3, %v1599_v20 }
 0x85d   : > { %v1633_v46 = vpop.f32.mrf.mxu1 }
 0x85e   : > { %v1634_v47 = vadd.f32 %v3388_v45, %v1633_v46 }
 0x860   : > { %v1645_v49 = vadd.f32 %v1634_v47, %v4092_v62 }
 0x862   : > { %v1649_v51 = vsel %vm557_vm0, %v1645_v49, 0.0 }
 0x863   : > { %1650 = vadd.xlane.f32.xlu1 %v1649_v51 }
 0x865   : > { %v1636_v54 = vpop.f32.mrf.mxu1 }
 0x866   : > { %v1637_v40 = vadd.f32 %v3388_v45, %v1636_v54 }
 0x868   : > { %v1646_v22 = vadd.f32 %v1637_v40, %v1549_v10 }
 0x86a   : > { %v1652_v55 = vsel %vm557_vm0, %v1646_v22, 0.0 }
 0x86b   : > { %1653 = vadd.xlane.f32.xlu0 %v1652_v55 }
 0x86d   : > { %v1639_v56 = vpop.f32.mrf.mxu1 }
 0x86e   : > { %v1640_v57 = vadd.f32 %v3388_v45, %v1639_v56 }
 0x870   : > { %v1647_v58 = vadd.f32 %v1640_v57, %v1550_v8  ;;  %v3175_v8 = vld [vmem:[%s4688_s1 + $0x38] sm:$0xff] }
 0x871   : > { %1818 = vmatpush.msra.mxu3 %v3175_v8 }
 0x872   : > { %v1655_v59 = vsel %vm557_vm0, %v1647_v58, 0.0 }
 0x873   : > { %1656 = vadd.xlane.f32.xlu2 %v1655_v59  ;;  %1819 = vmatpush.msra.mxu3 %v3174_v15  ;;  %v3391_v15 = vld [vmem:[%s4689_s2 + $0x1] ss:$0 sm:$0xff] }
 0x875   : > { %v1642_v60 = vpop.f32.mrf.mxu1  ;;  %1820 = vmatpush.msra.mxu3 %v3173_v26 }
 0x876   : > { %v1643_v61 = vadd.f32 %v3388_v45, %v1642_v60 }
 0x877   : > { %1821 = vmatpush.msra.mxu3 %v3172_v16 }
 0x878   : > { %v1648_v13 = vadd.f32 %v1643_v61, %v1551_v29 }
 0x87a   : > { %v1658_v62 = vsel %vm557_vm0, %v1648_v13, 0.0 }
 0x87b   : > { %1659 = vadd.xlane.f32.xlu1 %v1658_v62 }
 0x8d6   : > { %v1651_v63 = vpop.xlane.xlu1 %1650 }
 0x8d7   : > { %v1661_v0 = vmul.f32 %v1651_v63, %v4036_v53 }
 0x8d9   : > { %v1665_v1 = vsub.f32 %v1645_v49, %v1661_v0  ;;  %v3390_v49 = vld [vmem:[%s4699_s12] ss:$0 sm:$0xff] }
 0x8db   : > { %v1669_v3 = vmul.f32 %v1665_v1, %v1665_v1 }
 0x8dd   : > { %v1673_v4 = vsel %vm557_vm0, %v1669_v3, 0.0 }
 0x8de   : > { %1674 = vadd.xlane.f32.xlu0 %v1673_v4  ;;  %v1654_v2 = vpop.xlane.xlu0 %1653 }
 0x8df   : > { %v1662_v5 = vmul.f32 %v1654_v2, %v4036_v53 }
 0x8e1   : > { %v4132_v6 = vsub.f32 %v1646_v22, %v1662_v5 }
 0x8e3   : > { %v1670_v7 = vmul.f32 %v4132_v6, %v4132_v6 }
 0x8e5   : > { %v1676_v9 = vsel %vm557_vm0, %v1670_v7, 0.0 }
 0x8e6   : > { %v1657_v32 = vpop.xlane.xlu2 %1656  ;;  %1677 = vadd.xlane.f32.xlu2 %v1676_v9 }
 0x8e7   : > { %v1663_v10 = vmul.f32 %v1657_v32, %v4036_v53 }
 0x8e9   : > { %v4138_v12 = vsub.f32 %v1647_v58, %v1663_v10 }
 0x8eb   : > { %v1671_v52 = vmul.f32 %v4138_v12, %v4138_v12 }
 0x8ed   : > { %v1679_v17 = vsel %vm557_vm0, %v1671_v52, 0.0 }
 0x8ee   : > { %v1660_v18 = vpop.xlane.xlu1 %1659  ;;  %1680 = vadd.xlane.f32.xlu1 %v1679_v17 }
 0x8ef   : > { %v1664_v25 = vmul.f32 %v1660_v18, %v4036_v53 }
 0x8f1   : > { %v4144_v23 = vsub.f32 %v1648_v13, %v1664_v25 }
 0x8f3   : > { %v1672_v11 = vmul.f32 %v4144_v23, %v4144_v23 }
 0x8f5   : > { %v1682_v24 = vsel %vm557_vm0, %v1672_v11, 0.0 }
 0x8f6   : > { %1683 = vadd.xlane.f32.xlu0 %v1682_v24 }
 0x951   : > { %v1675_v27 = vpop.xlane.xlu0 %1674 }
 0x952   : > { %v1685_v29 = vmul.f32 %v1675_v27, %v4036_v53 }
 0x954   : > { %v1689_v14 = vadd.f32 1e-05, %v1685_v29 }
 0x956   : > { %3474 = vrsqrt.f32 %v1689_v14  ;;  %vm1699_vm6 = vweird.f32 %v1689_v14 }
 0x959   : > { %v1678_v50 = vpop.xlane.xlu2 %1677 }
 0x95a   : > { %v1686_v30 = vmul.f32 %v1678_v50, %v4036_v53 }
 0x95c   : > { %v3475_v21 = vpop.eup %3474  ;;  %v1690_v19 = vadd.f32 1e-05, %v1686_v30 }
 0x95d   : > { %v1694_v31 = vmul.f32 %v3475_v21, %v1689_v14  ;;  %vm1700_vm5 = vweird.f32 %v3475_v21 }
 0x95e   : > { %3476 = vrsqrt.f32 %v1690_v19  ;;  %vm1701_vm8 = vmor %vm1699_vm6, %vm1700_vm5  ;;  %vm1709_vm11 = vweird.f32 %v1690_v19 }
 0x95f   : > { %v1695_v33 = vmul.f32 %v3475_v21, %v1694_v31 }
 0x961   : > { %v1696_v34 = vmul.f32 0.5, %v1695_v33  ;;  %v1681_v36 = vpop.xlane.xlu1 %1680 }
 0x962   : > { %v1687_v38 = vmul.f32 %v1681_v36, %v4036_v53 }
 0x963   : > { %v1697_v37 = vsub.f32 1.5, %v1696_v34 }
 0x964   : > { %v3477_v39 = vpop.eup %3476  ;;  %v1691_v43 = vadd.f32 1e-05, %v1687_v38 }
 0x965   : > { %v1698_v41 = vmul.f32 %v3475_v21, %v1697_v37  ;;  %v1704_v20 = vmul.f32 %v3477_v39, %v1690_v19  ;;  %vm1710_vm9 = vweird.f32 %v3477_v39 }
 0x966   : > { %3478 = vrsqrt.f32 %v1691_v43  ;;  %vm1711_vm12 = vmor %vm1709_vm11, %vm1710_vm9  ;;  %vm1719_vm15 = vweird.f32 %v1691_v43 }
 0x967   : > { %v1702_v45 = vsel %vm1701_vm8, %v3475_v21, %v1698_v41  ;;  %v1705_v47 = vmul.f32 %v3477_v39, %v1704_v20 }
 0x968   : > { %v1733_v46 = vmul.f32 %v1702_v45, %v1665_v1 }
 0x969   : > { %v1706_v54 = vmul.f32 0.5, %v1705_v47  ;;  %v1684_v40 = vpop.xlane.xlu0 %1683 }
 0x96a   : > { %v1740_v51 = vmul.f32 %v3389_v44, %v1733_v46  ;;  %v1688_v22 = vmul.f32 %v1684_v40, %v4036_v53 }
 0x96b   : > { %v1707_v55 = vsub.f32 1.5, %v1706_v54 }
 0x96c   : > { %v4171_v56 = vadd.f32 %v3390_v49, %v1740_v51  ;;  %v3479_v57 = vpop.eup %3478  ;;  %v1692_v58 = vadd.f32 1e-05, %v1688_v22 }
 0x96d   : > { %v1708_v59 = vmul.f32 %v3477_v39, %v1707_v55  ;;  %v1714_v60 = vmul.f32 %v3479_v57, %v1691_v43  ;;  %vm1720_vm14 = vweird.f32 %v3479_v57 }
 0x96e   : > { %3200 = vmatmul.msk.f32.vlgmr.msra.gmra.mxu3 %vm557_vm0, %v4171_v56  ;;  %3480 = vrsqrt.f32 %v1692_v58  ;;  %vm1721_vm2 = vmor %vm1719_vm15, %vm1720_vm14  ;;  %vm1729_vm6 = vweird.f32 %v1692_v58 }
 0x96f   : > { %v1712_v61 = vsel %vm1711_vm12, %v3477_v39, %v1708_v59  ;;  %v1715_v13 = vmul.f32 %v3479_v57, %v1714_v60 }
 0x970   : > { %v1734_v62 = vmul.f32 %v1712_v61, %v4132_v6 }
 0x971   : > { %v1716_v63 = vmul.f32 0.5, %v1715_v13 }
 0x972   : > { %v1741_v0 = vmul.f32 %v3389_v44, %v1734_v62 }
 0x973   : > { %v1717_v1 = vsub.f32 1.5, %v1716_v63 }
 0x974   : > { %v3481_v3 = vpop.eup %3480  ;;  %v4176_v4 = vadd.f32 %v3390_v49, %v1741_v0 }
 0x975   : > { %v1718_v2 = vmul.f32 %v3479_v57, %v1717_v1  ;;  %v1724_v5 = vmul.f32 %v3481_v3, %v1692_v58  ;;  %vm1730_vm5 = vweird.f32 %v3481_v3 }
 0x976   : > { %3201 = vmatmul.msk.f32.gmra.mxu3 %vm557_vm0, %v4176_v4  ;;  %vm1731_vm8 = vmor %vm1729_vm6, %vm1730_vm5 }
 0x977   : > { %v1722_v7 = vsel %vm1721_vm2, %v3479_v57, %v1718_v2  ;;  %v1725_v9 = vmul.f32 %v3481_v3, %v1724_v5 }
 0x978   : > { %v1735_v32 = vmul.f32 %v1722_v7, %v4138_v12 }
 0x979   : > { %v1726_v10 = vmul.f32 0.5, %v1725_v9 }
 0x97a   : > { %v1742_v6 = vmul.f32 %v3389_v44, %v1735_v32 }
 0x97b   : > { %v1727_v52 = vsub.f32 1.5, %v1726_v10 }
 0x97c   : > { %v4181_v17 = vadd.f32 %v3390_v49, %v1742_v6 }
 0x97d   : > { %v1728_v18 = vmul.f32 %v3481_v3, %v1727_v52 }
 0x97e   : > { %3202 = vmatmul.msk.f32.gmra.mxu3 %vm557_vm0, %v4181_v17 }
 0x97f   : > { %v1732_v25 = vsel %vm1731_vm8, %v3481_v3, %v1728_v18 }
 0x980   : > { %v1736_v11 = vmul.f32 %v1732_v25, %v4144_v23 }
 0x982   : > { %v1743_v24 = vmul.f32 %v3389_v44, %v1736_v11 }
 0x984   : > { %v4186_v8 = vadd.f32 %v3390_v49, %v1743_v24 }
 0x986   : > { %3203 = vmatmul.msk.f32.gmra.mxu3 %vm557_vm0, %v4186_v8 }
 0x9f1   : > { %v1823_v12 = vpop.f32.mrf.mxu3 }
 0x9f2   : > { %v4205_v50 = vadd.f32 %v3391_v15, %v1823_v12 }
 0x9f9   : > { %v1826_v26 = vpop.f32.mrf.mxu3 }
 0x9fa   : > { %v4193_v16 = vadd.f32 %v3391_v15, %v1826_v26 }
 0x9fc   : > { %1841 = vrot.lane.b32.xlu0 %v4193_v16, %s3574_s21  ;;  %v4241_v22 = vpack.i.bf16 %v4205_v50, %v4193_v16 }
 0xa01   : > { %v1829_v27 = vpop.f32.mrf.mxu3 }
 0xa02   : > { %v4197_v29 = vadd.f32 %v3391_v15, %v1829_v27 }
 0xa04   : > { %1843 = vrot.lane.b32.xlu1 %v4197_v29, %s3574_s21 }
 0xa09   : > { %v1832_v23 = vpop.f32.mrf.mxu3 }
 0xa0a   : > { %v4201_v14 = vadd.f32 %v3391_v15, %v1832_v23  ;;  %v3177_v23 = vld [vmem:[%s4690_s3 + $0x20] sm:$0xff] }
 0xa0c   : > { %1845 = vrot.lane.b32.xlu2 %v4201_v14, %s3574_s21  ;;  %v4235_v40 = vpack.i.bf16 %v4197_v29, %v4201_v14 }
 0xa14   : > { %1839 = vrot.lane.b32.xlu2 %v4205_v50, %s3574_s21  ;;  %s4724_s21 = smov 80  }
 0xa66   : > { %v1846_v30 = vpop.permute.xlu2 %1845 }
 0xa67   : > { %3204 = vmatpush.xpose.msk.msra.mxu0 %vm611_vm1, %v1846_v30 }
 0xa6e   : > { %v1842_v31 = vpop.permute.xlu0 %1841  ;;  %v1840_v19 = vpop.permute.xlu2 %1839 }
 0xa76   : > { %v1844_v21 = vpop.permute.xlu1 %1843 }
 0xa77   : > { %3205 = vmatpush.xpose.msk.msra.mxu0 %vm611_vm1, %v1844_v21 }
 0xa7b   : > { %3206 = vmatpush.xpose.msk.msra.mxu0 %vm611_vm1, %v1842_v31 }
 0xa7f   : > { %3207 = vmatpush.xpose.msk.msra.mxu0 %vm611_vm1, %v1840_v19 }
 0xa82   : > { %3208 = vmatmul.msk.f32.vlgmr.msra.gmra.mxu0 %vm611_vm1, %v4205_v50 }
 0xa8a   : > { %3209 = vmatmul.msk.f32.gmra.mxu0 %vm611_vm1, %v4193_v16 }
 0xa92   : > { %3210 = vmatmul.msk.f32.gmra.mxu0 %vm611_vm1, %v4197_v29 }
 0xa9a   : > { %3211 = vmatmul.msk.f32.gmra.mxu0 %vm611_vm1, %v4201_v14 }
 0xaff   : > { %v1880_v33 = vpop.f32.mrf.mxu0 }
 0xb00   : > { %v1892_v34 = vmul.f32 0.35355338, %v1880_v33 }
 0xb02   : > { %v1896_v36 = vsel %vm3735_vm4, %v1892_v34, -1e+30 }
 0xb03   : > { %v1900_v37 = vsel %vm557_vm0, %v1896_v36, -inf }
 0xb04   : > { %1901 = vmax.xlane.f32.xlu0 %v1900_v37 }
 0xb07   : > { %v1883_v38 = vpop.f32.mrf.mxu0 }
 0xb08   : > { %v1893_v39 = vmul.f32 0.35355338, %v1883_v38 }
 0xb0a   : > { %v1897_v41 = vsel %vm3742_vm7, %v1893_v39, -1e+30 }
 0xb0b   : > { %v1903_v43 = vsel %vm557_vm0, %v1897_v41, -inf }
 0xb0c   : > { %1904 = vmax.xlane.f32.xlu1 %v1903_v43 }
 0xb0f   : > { %v1886_v44 = vpop.f32.mrf.mxu0 }
 0xb10   : > { %v1894_v20 = vmul.f32 0.35355338, %v1886_v44 }
 0xb12   : > { %v1898_v45 = vsel %vm3749_vm10, %v1894_v20, -1e+30 }
 0xb13   : > { %v1906_v46 = vsel %vm557_vm0, %v1898_v45, -inf }
 0xb14   : > { %1907 = vmax.xlane.f32.xlu2 %v1906_v46 }
 0xb17   : > { %v1889_v47 = vpop.f32.mrf.mxu0 }
 0xb18   : > { %v1895_v49 = vmul.f32 0.35355338, %v1889_v47 }
 0xb1a   : > { %v1899_v51 = vsel %vm3756_vm13, %v1895_v49, -1e+30 }
 0xb1b   : > { %v1909_v54 = vsel %vm557_vm0, %v1899_v51, -inf }
 0xb1c   : > { %1910 = vmax.xlane.f32.xlu0 %v1909_v54 }
 0xb2c   : > { %3344 = vrot.lane.b32.xlu2 %v4235_v40, %s3575_s22 }
 0xb30   : > { %3349 = vrot.lane.b32.xlu0 %v4241_v22, %s3575_s22  ;;  %s4725_s22 = smov 112  }
 0xb34   : > { %2011 = vrot.lane.b32.xlu2 %v4201_v14, %s3577_s25 }
 0xb38   : > { %2009 = vrot.lane.b32.xlu0 %v4197_v29, %s3577_s25 }
 0xb3c   : > { %2005 = vrot.lane.b32.xlu2 %v4205_v50, %s3577_s25 }
 0xb40   : > { %1997 = vrot.lane.b32.xlu0 %v4205_v50, %s3576_s23 }
 0xb44   : > { %1999 = vrot.lane.b32.xlu2 %v4193_v16, %s3576_s23 }
 0xb48   : > { %2470 = vrot.lane.b32.xlu0 %v4201_v14, %s3579_s27 }
 0xb4c   : > { %2001 = vrot.lane.b32.xlu2 %v4197_v29, %s3576_s23 }
 0xb50   : > { %2259 = vrot.lane.b32.xlu0 %v4201_v14, %s4724_s21 }
 0xb54   : > { %2257 = vrot.lane.b32.xlu2 %v4197_v29, %s4724_s21 }
 0xb58   : > { %2466 = vrot.lane.b32.xlu0 %v4193_v16, %s3579_s27 }
 0xb5c   : > { %2255 = vrot.lane.b32.xlu2 %v4193_v16, %s4724_s21 }
 0xb60   : > { %2464 = vrot.lane.b32.xlu0 %v4205_v50, %s3579_s27 }
 0xb64   : > { %2253 = vrot.lane.b32.xlu2 %v4205_v50, %s4724_s21  ;;  %s496_s21 = scalar_lea.vmem %s4702_s15, %s4730_s17 }
 0xb68   : > { %2245 = vrot.lane.b32.xlu0 %v4205_v50, %s4725_s22 }
 0xb6c   : > { %2247 = vrot.lane.b32.xlu2 %v4193_v16, %s4725_s22 }
 0xb70   : > { %2460 = vrot.lane.b32.xlu0 %v4197_v29, %s4726_s20 }
 0xb74   : > { %2462 = vrot.lane.b32.xlu2 %v4201_v14, %s4726_s20 }
 0xb77   : > { %v1902_v55 = vpop.xlane.xlu0 %1901 }
 0xb78   : > { %v1912_v57 = vsub.f32 %v1896_v36, %v1902_v55  ;;  %2251 = vrot.lane.b32.xlu0 %v4201_v14, %s4725_s22 }
 0xb7a   : > { %v1916_v58 = vmul.f32 1.442695, %v1912_v57 }
 0xb7c   : > { %3482 = vpow2.f32 %v1916_v58 }
 0xb7f   : > { %v1905_v59 = vpop.xlane.xlu1 %1904 }
 0xb80   : > { %v1913_v60 = vsub.f32 %v1897_v41, %v1905_v59 }
 0xb82   : > { %v3483_v61 = vpop.eup %3482  ;;  %v1918_v13 = vmul.f32 1.442695, %v1913_v60 }
 0xb83   : > { %v1924_v62 = vsel %vm557_vm0, %v3483_v61, 0.0 }
 0xb84   : > { %3484 = vpow2.f32 %v1918_v13  ;;  %1925 = vadd.xlane.f32.xlu1 %v1924_v62 }
 0xb87   : > { %v1908_v63 = vpop.xlane.xlu2 %1907 }
 0xb88   : > { %v1914_v0 = vsub.f32 %v1898_v45, %v1908_v63 }
 0xb8a   : > { %v3485_v1 = vpop.eup %3484  ;;  %v1920_v3 = vmul.f32 1.442695, %v1914_v0 }
 0xb8b   : > { %v1927_v2 = vsel %vm557_vm0, %v3485_v1, 0.0 }
 0xb8c   : > { %3486 = vpow2.f32 %v1920_v3  ;;  %1928 = vadd.xlane.f32.xlu1 %v1927_v2 }
 0xb8f   : > { %v3345_v5 = vpop.permute.xlu2 %3344  ;;  %v1911_v7 = vpop.xlane.xlu0 %1910 }
 0xb90   : > { %v3346_v9 = vunpack.i.l.bf16 %v3345_v5  ;;  %v1915_v32 = vsub.f32 %v1899_v51, %v1911_v7  ;;  %v3347_v6 = vunpack.i.h.bf16 %v3345_v5 }
 0xb92   : > { %v3487_v10 = vpop.eup %3486  ;;  %v1922_v52 = vmul.f32 1.442695, %v1915_v32  ;;  %1980 = vmatpush.msra.mxu2 %v3346_v9 }
 0xb93   : > { %v1930_v18 = vsel %vm557_vm0, %v3487_v10, 0.0 }
 0xb94   : > { %3488 = vpow2.f32 %v1922_v52  ;;  %1931 = vadd.xlane.f32.xlu1 %v1930_v18  ;;  %1981 = vmatpush.msra.mxu2 %v3347_v6 }
 0xb97   : > { %v2012_v25 = vpop.permute.xlu2 %2011 }
 0xb98   : > { %3216 = vmatpush.xpose.msk.msra.mxu1 %vm611_vm1, %v2012_v25 }
 0xb9a   : > { %v3489_v11 = vpop.eup %3488 }
 0xb9b   : > { %v1933_v24 = vsel %vm557_vm0, %v3489_v11, 0.0 }
 0xb9c   : > { %1934 = vadd.xlane.f32.xlu1 %v1933_v24 }
 0xba2   : > { %v3350_v12 = vpop.permute.xlu0 %3349 }
 0xba3   : > { %v3351_v15 = vunpack.i.l.bf16 %v3350_v12  ;;  %v3352_v26 = vunpack.i.h.bf16 %v3350_v12 }
 0xba5   : > { %1982 = vmatpush.msra.mxu2 %v3351_v15 }
 0xba7   : > { %1983 = vmatpush.msra.mxu2 %v3352_v26 }
 0xba9   : > { %2231 = vmatpush.msrb.mxu2 %v3177_v23 }
 0xbaa   : > { %v2010_v27 = vpop.permute.xlu0 %2009 }
 0xbab   : > { %3217 = vmatpush.xpose.msk.msra.mxu1 %vm611_vm1, %v2010_v27 }
 0xbb2   : > { %v1998_v30 = vpop.permute.xlu0 %1997 }
 0xbb5   : > { %2007 = vrot.lane.b32.xlu1 %v4193_v16, %s3577_s25  ;;  %s4728_s25 = smov 48  }
 0xbba   : > { %v2471_v33 = vpop.permute.xlu0 %2470 }
 0xbbd   : > { %2468 = vrot.lane.b32.xlu1 %v4197_v29, %s3579_s27  ;;  %s4729_s27 = smov 40  }
 0xbc2   : > { %v2260_v20 = vpop.permute.xlu0 %2259 }
 0xbc5   : > { %2003 = vrot.lane.b32.xlu1 %v4201_v14, %s3576_s23  ;;  %s4727_s23 = smov 56  }
 0xbca   : > { %v2467_v47 = vpop.permute.xlu0 %2466 }
 0xbcd   : > { %2456 = vrot.lane.b32.xlu1 %v4205_v50, %s4726_s20  ;;  %v2006_v50 = vpop.permute.xlu2 %2005 }
 0xbd2   : > { %v2465_v54 = vpop.permute.xlu0 %2464 }
 0xbd5   : > { %2458 = vrot.lane.b32.xlu1 %v4193_v16, %s4726_s20  ;;  %v2000_v39 = vpop.permute.xlu2 %1999 }
 0xbda   : > { %v2246_v59 = vpop.permute.xlu0 %2245 }
 0xbdd   : > { %2249 = vrot.lane.b32.xlu1 %v4197_v29, %s4725_s22  ;;  %v2002_v44 = vpop.permute.xlu2 %2001 }
 0xbe2   : > { %v2461_v13 = vpop.permute.xlu0 %2460 }
 0xbe5   : > { %v2258_v45 = vpop.permute.xlu2 %2257 }
 0xbea   : > { %v2252_v63 = vpop.permute.xlu0 %2251 }
 0xbed   : > { %v2256_v49 = vpop.permute.xlu2 %2255 }
 0xbf5   : > { %v2254_v55 = vpop.permute.xlu2 %2253 }
 0xbf7   : > { %v1926_v21 = vpop.xlane.xlu1 %1925 }
 0xbf8   : > { %3490 = vrcp.f32 %v1926_v21 }
 0xbfe   : > { %v3491_v31 = vpop.eup %3490 }
 0xbff   : > { %v1940_v19 = vmul.f32 %v3491_v31, %v3483_v61  ;;  %v1929_v14 = vpop.xlane.xlu1 %1928  ;;  %v2248_v61 = vpop.permute.xlu2 %2247 }
 0xc00   : > { %3492 = vrcp.f32 %v1929_v14 }
 0xc01   : > { %3212 = vmatmul.msk.f32.vlgmr.msra.gmra.mxu2 %vm557_vm0, %v1940_v19 }
 0xc02   : > { %3252 = vmatpush.xpose.msk.msra.mxu2 %vm611_vm1, %v2471_v33 }
 0xc06   : > { %v3493_v16 = vpop.eup %3492 }
 0xc07   : > { %v1932_v29 = vpop.xlane.xlu1 %1931  ;;  %v1941_v34 = vmul.f32 %v3493_v16, %v3485_v1  ;;  %v2463_v25 = vpop.permute.xlu2 %2462 }
 0xc08   : > { %3494 = vrcp.f32 %v1932_v29 }
 0xc09   : > { %3213 = vmatmul.msk.f32.gmra.mxu2 %vm557_vm0, %v1941_v34 }
 0xc0e   : > { %v3495_v36 = vpop.eup %3494 }
 0xc0f   : > { %v1935_v37 = vpop.xlane.xlu1 %1934  ;;  %v1942_v38 = vmul.f32 %v3495_v36, %v3487_v10 }
 0xc10   : > { %3496 = vrcp.f32 %v1935_v37 }
 0xc11   : > { %3214 = vmatmul.msk.f32.gmra.mxu2 %vm557_vm0, %v1942_v38 }
 0xc16   : > { %v3497_v41 = vpop.eup %3496 }
 0xc17   : > { %v1943_v43 = vmul.f32 %v3497_v41, %v3489_v11 }
 0xc19   : > { %3215 = vmatmul.msk.f32.gmra.mxu2 %vm557_vm0, %v1943_v43 }
 0xc27   : > { %v2008_v46 = vpop.permute.xlu1 %2007 }
 0xc28   : > { %3218 = vmatpush.xpose.msk.msra.mxu1 %vm611_vm1, %v2008_v46 }
 0xc2c   : > { %3219 = vmatpush.xpose.msk.msra.mxu1 %vm611_vm1, %v2006_v50 }
 0xc2f   : > { %v2469_v51 = vpop.permute.xlu1 %2468  ;;  %3220 = vmatmul.msk.f32.vlgmr.msra.gmra.mxu1 %vm611_vm1, %v1998_v30 }
 0xc30   : > { %3236 = vmatpush.xpose.msk.msrb.mxu1 %vm611_vm1, %v2260_v20  ;;  %3253 = vmatpush.xpose.msk.msra.mxu2 %vm611_vm1, %v2469_v51 }
 0xc34   : > { %3237 = vmatpush.xpose.msk.msrb.mxu1 %vm611_vm1, %v2258_v45  ;;  %3254 = vmatpush.xpose.msk.msra.mxu2 %vm611_vm1, %v2467_v47 }
 0xc37   : > { %3221 = vmatmul.msk.f32.gmra.mxu1 %vm611_vm1, %v2000_v39  ;;  %v2004_v57 = vpop.permute.xlu1 %2003 }
 0xc38   : > { %3238 = vmatpush.xpose.msk.msrb.mxu1 %vm611_vm1, %v2256_v49  ;;  %3255 = vmatpush.xpose.msk.msra.mxu2 %vm611_vm1, %v2465_v54 }
 0xc3c   : > { %3239 = vmatpush.xpose.msk.msrb.mxu1 %vm611_vm1, %v2254_v55 }
 0xc3f   : > { %3222 = vmatmul.msk.f32.gmra.mxu1 %vm611_vm1, %v2002_v44  ;;  %v2457_v58 = vpop.permute.xlu1 %2456 }
 0xc47   : > { %3223 = vmatmul.msk.f32.gmra.mxu1 %vm611_vm1, %v2004_v57  ;;  %v2459_v60 = vpop.permute.xlu1 %2458 }
 0xc4f   : > { %3240 = vmatmul.msk.f32.vlgmr.msrb.gmra.mxu1 %vm611_vm1, %v2246_v59  ;;  %v2250_v62 = vpop.permute.xlu1 %2249 }
 0xc57   : > { %3241 = vmatmul.msk.f32.gmra.mxu1 %vm611_vm1, %v2248_v61 }
 0xc5f   : > { %3242 = vmatmul.msk.f32.gmra.mxu1 %vm611_vm1, %v2250_v62 }
 0xc67   : > { %3243 = vmatmul.msk.f32.gmra.mxu1 %vm611_vm1, %v2252_v63 }
 0xc84   : > { %v1985_v0 = vpop.f32.mrf.mxu2 }
 0xc85   : > { %3232 = vmatmul.msk.f32.vlgmr.msrb.gmra.mxu2 %vm611_vm1, %v1985_v0 }
 0xc8c   : > { %v1988_v1 = vpop.f32.mrf.mxu2 }
 0xc8d   : > { %3233 = vmatmul.msk.f32.gmra.mxu2 %vm611_vm1, %v1988_v1 }
 0xc94   : > { %v1991_v3 = vpop.f32.mrf.mxu2 }
 0xc95   : > { %3234 = vmatmul.msk.f32.gmra.mxu2 %vm611_vm1, %v1991_v3 }
 0xc9c   : > { %v1994_v2 = vpop.f32.mrf.mxu2 }
 0xc9d   : > { %3235 = vmatmul.msk.f32.gmra.mxu2 %vm611_vm1, %v1994_v2 }
 0xca5   : > { %3256 = vmatmul.msk.f32.vlgmr.msra.gmra.mxu2 %vm611_vm1, %v2457_v58 }
 0xcac   : > { %v2046_v5 = vpop.f32.mrf.mxu1 }
 0xcad   : > { %v2058_v7 = vmul.f32 0.35355338, %v2046_v5  ;;  %3257 = vmatmul.msk.f32.gmra.mxu2 %vm611_vm1, %v2459_v60 }
 0xcaf   : > { %v2062_v9 = vsel %vm3735_vm4, %v2058_v7, -1e+30 }
 0xcb0   : > { %v2066_v32 = vsel %vm557_vm0, %v2062_v9, -inf }
 0xcb1   : > { %2067 = vmax.xlane.f32.xlu1 %v2066_v32 }
 0xcb4   : > { %v2049_v10 = vpop.f32.mrf.mxu1 }
 0xcb5   : > { %v2059_v6 = vmul.f32 0.35355338, %v2049_v10  ;;  %3258 = vmatmul.msk.f32.gmra.mxu2 %vm611_vm1, %v2461_v13 }
 0xcb7   : > { %v2063_v52 = vsel %vm3742_vm7, %v2059_v6, -1e+30 }
 0xcb8   : > { %v2069_v18 = vsel %vm557_vm0, %v2063_v52, -inf }
 0xcb9   : > { %2070 = vmax.xlane.f32.xlu2 %v2069_v18 }
 0xcbc   : > { %v2052_v11 = vpop.f32.mrf.mxu1 }
 0xcbd   : > { %v2060_v24 = vmul.f32 0.35355338, %v2052_v11  ;;  %3259 = vmatmul.msk.f32.gmra.mxu2 %vm611_vm1, %v2463_v25 }
 0xcbf   : > { %v2064_v12 = vsel %vm3749_vm10, %v2060_v24, -1e+30 }
 0xcc0   : > { %v2072_v15 = vsel %vm557_vm0, %v2064_v12, -inf }
 0xcc1   : > { %2073 = vmax.xlane.f32.xlu0 %v2072_v15 }
 0xcc4   : > { %v2055_v26 = vpop.f32.mrf.mxu1 }
 0xcc5   : > { %v2061_v27 = vmul.f32 0.35355338, %v2055_v26 }
 0xcc7   : > { %v2065_v23 = vsel %vm3756_vm13, %v2061_v27, -1e+30 }
 0xcc8   : > { %v2075_v30 = vsel %vm557_vm0, %v2065_v23, -inf }
 0xcc9   : > { %2076 = vmax.xlane.f32.xlu1 %v2075_v30 }
 0xccc   : > { %v2294_v21 = vpop.f32.mrf.mxu1 }
 0xccd   : > { %v2306_v31 = vmul.f32 0.35355338, %v2294_v21 }
 0xccf   : > { %v4346_v19 = vsel %vm3735_vm4, %v2306_v31, -1e+30 }
 0xcd0   : > { %v2314_v14 = vsel %vm557_vm0, %v4346_v19, -inf }
 0xcd1   : > { %2315 = vmax.xlane.f32.xlu2 %v2314_v14 }
 0xcd4   : > { %v2297_v33 = vpop.f32.mrf.mxu1 }
 0xcd5   : > { %v2307_v16 = vmul.f32 0.35355338, %v2297_v33 }
 0xcd7   : > { %v4352_v50 = vsel %vm3742_vm7, %v2307_v16, -1e+30 }
 0xcd8   : > { %v2317_v29 = vsel %vm557_vm0, %v4352_v50, -inf }
 0xcd9   : > { %2318 = vmax.xlane.f32.xlu1 %v2317_v29 }
 0xcdc   : > { %v2300_v34 = vpop.f32.mrf.mxu1 }
 0xcdd   : > { %v2308_v36 = vmul.f32 0.35355338, %v2300_v34 }
 0xcdf   : > { %v4358_v37 = vsel %vm3749_vm10, %v2308_v36, -1e+30 }
 0xce0   : > { %v2320_v38 = vsel %vm557_vm0, %v4358_v37, -inf }
 0xce1   : > { %2321 = vmax.xlane.f32.xlu0 %v2320_v38 }
 0xce4   : > { %v2303_v39 = vpop.f32.mrf.mxu1 }
 0xce5   : > { %v2309_v41 = vmul.f32 0.35355338, %v2303_v39 }
 0xce7   : > { %v4364_v43 = vsel %vm3756_vm13, %v2309_v41, -1e+30 }
 0xce8   : > { %v2323_v44 = vsel %vm557_vm0, %v4364_v43, -inf }
 0xce9   : > { %2324 = vmax.xlane.f32.xlu1 %v2323_v44 }
 0xcf5   : > { %3354 = vrot.lane.b32.xlu0 %v4235_v40, %s4727_s23 }
 0xd02   : > { %3359 = vrot.lane.b32.xlu1 %v4241_v22, %s4727_s23 }
 0xd08   : > { %v4372_v20 = vpop.f32.mrf.mxu2 }
 0xd0a   : > { %3364 = vrot.lane.b32.xlu1 %v4235_v40, %s4728_s25 }
 0xd10   : > { %v4376_v45 = vpop.f32.mrf.mxu2 }
 0xd18   : > { %v4378_v46 = vpop.f32.mrf.mxu2 }
 0xd20   : > { %v4380_v47 = vpop.f32.mrf.mxu2 }
 0xd24   : > { %v2068_v49 = vpop.xlane.xlu1 %2067 }
 0xd25   : > { %v2078_v51 = vsub.f32 %v2062_v9, %v2068_v49 }
 0xd27   : > { %v2082_v54 = vmul.f32 1.442695, %v2078_v51 }
 0xd28   : > { %v2505_v55 = vpop.f32.mrf.mxu2 }
 0xd29   : > { %3498 = vpow2.f32 %v2082_v54  ;;  %v2517_v57 = vmul.f32 0.35355338, %v2505_v55 }
 0xd2b   : > { %v4384_v58 = vsel %vm3735_vm4, %v2517_v57, -1e+30 }
 0xd2c   : > { %v2071_v59 = vpop.xlane.xlu2 %2070  ;;  %v2525_v60 = vsel %vm557_vm0, %v4384_v58, -inf }
 0xd2d   : > { %v2079_v61 = vsub.f32 %v2063_v52, %v2071_v59  ;;  %2526 = vmax.xlane.f32.xlu0 %v2525_v60 }
 0xd2f   : > { %v4388_v13 = vpop.eup %3498  ;;  %v2084_v62 = vmul.f32 1.442695, %v2079_v61 }
 0xd30   : > { %v2508_v63 = vpop.f32.mrf.mxu2  ;;  %v2090_v0 = vsel %vm557_vm0, %v4388_v13, 0.0 }
 0xd31   : > { %3500 = vpow2.f32 %v2084_v62  ;;  %2091 = vadd.xlane.f32.xlu2 %v2090_v0  ;;  %v2518_v30 = vmul.f32 0.35355338, %v2508_v63 }
 0xd33   : > { %v4419_v21 = vsel %vm3742_vm7, %v2518_v30, -1e+30 }
 0xd34   : > { %v2074_v1 = vpop.xlane.xlu0 %2073 }
 0xd35   : > { %v2080_v3 = vsub.f32 %v2064_v12, %v2074_v1 }
 0xd37   : > { %v4392_v28 = vpop.eup %3500  ;;  %v2086_v2 = vmul.f32 1.442695, %v2080_v3 }
 0xd38   : > { %v2511_v5 = vpop.f32.mrf.mxu2  ;;  %v2093_v7 = vsel %vm557_vm0, %v4392_v28, 0.0 }
 0xd39   : > { %3502 = vpow2.f32 %v2086_v2  ;;  %v2519_v9 = vmul.f32 0.35355338, %v2511_v5  ;;  %2094 = vadd.xlane.f32.xlu2 %v2093_v7 }
 0xd3b   : > { %v4398_v32 = vsel %vm3749_vm10, %v2519_v9, -1e+30 }
 0xd3c   : > { %v2077_v10 = vpop.xlane.xlu1 %2076  ;;  %v2531_v6 = vsel %vm557_vm0, %v4398_v32, -inf }
 0xd3d   : > { %v2081_v52 = vsub.f32 %v2065_v23, %v2077_v10  ;;  %2532 = vmax.xlane.f32.xlu1 %v2531_v6 }
 0xd3f   : > { %v4402_v18 = vpop.eup %3502  ;;  %v2088_v25 = vmul.f32 1.442695, %v2081_v52 }
 0xd40   : > { %v2096_v11 = vsel %vm557_vm0, %v4402_v18, 0.0  ;;  %v2514_v31 = vpop.f32.mrf.mxu2 }
 0xd41   : > { %3504 = vpow2.f32 %v2088_v25  ;;  %2097 = vadd.xlane.f32.xlu0 %v2096_v11  ;;  %v2520_v14 = vmul.f32 0.35355338, %v2514_v31 }
 0xd43   : > { %v4427_v33 = vsel %vm3756_vm13, %v2520_v14, -1e+30 }
 0xd44   : > { %v2316_v24 = vpop.xlane.xlu2 %2315  ;;  %v2534_v29 = vsel %vm557_vm0, %v4427_v33, -inf }
 0xd45   : > { %v2326_v12 = vsub.f32 %v4346_v19, %v2316_v24  ;;  %v2528_v19 = vsel %vm557_vm0, %v4419_v21, -inf }
 0xd47   : > { %v4407_v42 = vpop.eup %3504  ;;  %v2330_v15 = vmul.f32 1.442695, %v2326_v12 }
 0xd48   : > { %v2099_v26 = vsel %vm557_vm0, %v4407_v42, 0.0 }
 0xd49   : > { %3506 = vpow2.f32 %v2330_v15  ;;  %2100 = vadd.xlane.f32.xlu2 %v2099_v26 }
 0xd4c   : > { %v2319_v35 = vpop.xlane.xlu1 %2318 }
 0xd4d   : > { %v2327_v41 = vsub.f32 %v4352_v50, %v2319_v35 }
 0xd4f   : > { %v4411_v27 = vpop.eup %3506  ;;  %v2332_v48 = vmul.f32 1.442695, %v2327_v41 }
 0xd50   : > { %v2338_v23 = vsel %vm557_vm0, %v4411_v27, 0.0 }
 0xd51   : > { %2339 = vadd.xlane.f32.xlu2 %v2338_v23 }
 0xd54   : > { %v2322_v16 = vpop.xlane.xlu0 %2321 }
 0xd55   : > { %3379 = vrot.lane.b32.xlu0 %v4241_v22, %s4729_s27  ;;  %v2328_v39 = vsub.f32 %v4358_v37, %v2322_v16 }
 0xd56   : > { %3374 = vrot.lane.b32.xlu1 %v4241_v22, %s4728_s25 }
 0xd57   : > { %v2334_v44 = vmul.f32 1.442695, %v2328_v39 }
 0xd59   : > { %2529 = vmax.xlane.f32.xlu2 %v2528_v19  ;;  %3508 = vpow2.f32 %v2334_v44 }
 0xd5a   : > { %3510 = vpow2.f32 %v2332_v48 }
 0xd5c   : > { %v2325_v22 = vpop.xlane.xlu1 %2324 }
 0xd5d   : > { %v2329_v6 = vsub.f32 %v4364_v43, %v2325_v22 }
 0xd5f   : > { %v4435_v55 = vpop.eup %3508  ;;  %v2336_v24 = vmul.f32 1.442695, %v2329_v6 }
 0xd60   : > { %v4437_v57 = vpop.eup %3510  ;;  %v2344_v50 = vsel %vm557_vm0, %v4435_v55, 0.0 }
 0xd61   : > { %2535 = vmax.xlane.f32.xlu2 %v2534_v29  ;;  %v2341_v61 = vsel %vm557_vm0, %v4437_v57, 0.0 }
 0xd67   : > { %v3355_v34 = vpop.permute.xlu0 %3354 }
 0xd68   : > { %v3356_v36 = vunpack.i.l.bf16 %v3355_v34  ;;  %v3357_v38 = vunpack.i.h.bf16 %v3355_v34 }
 0xd6a   : > { %2146 = vmatpush.msrb.mxu3 %v3356_v36 }
 0xd6c   : > { %2147 = vmatpush.msrb.mxu3 %v3357_v38 }
 0xd74   : > { %v3360_v49 = vpop.permute.xlu1 %3359 }
 0xd75   : > { %v3361_v51 = vunpack.i.l.bf16 %v3360_v49  ;;  %v3362_v54 = vunpack.i.h.bf16 %v3360_v49 }
 0xd77   : > { %2148 = vmatpush.msrb.mxu3 %v3361_v51 }
 0xd79   : > { %2149 = vmatpush.msrb.mxu3 %v3362_v54  ;;  %3369 = vrot.lane.b32.xlu2 %v4235_v40, %s4729_s27 }
 0xd7c   : > { %v3365_v59 = vpop.permute.xlu1 %3364 }
 0xd7d   : > { %v3366_v37 = vunpack.i.l.bf16 %v3365_v59  ;;  %v3367_v60 = vunpack.i.h.bf16 %v3365_v59 }
 0xd7f   : > { %2394 = vmatpush.msra.mxu3 %v3366_v37  ;;  %2345 = vadd.xlane.f32.xlu0 %v2344_v50 }
 0xd80   : > { %2342 = vadd.xlane.f32.xlu1 %v2341_v61 }
 0xd81   : > { %2395 = vmatpush.msra.mxu3 %v3367_v60 }
 0xda0   : > { %v2527_v62 = vpop.xlane.xlu0 %2526 }
 0xda1   : > { %v2537_v40 = vsub.f32 %v4384_v58, %v2527_v62 }
 0xda3   : > { %v2541_v63 = vmul.f32 1.442695, %v2537_v40  ;;  %v3178_v40 = vld [vmem:[%s4690_s3 + $0x28] sm:$0xff] }
 0xda4   : > { %v2092_v0 = vpop.xlane.xlu2 %2091  ;;  %2190 = vmatpush.msrb.mxu0 %v3178_v40 }
 0xda5   : > { %3512 = vpow2.f32 %v2541_v63 }
 0xda6   : > { %3514 = vrcp.f32 %v2092_v0 }
 0xdab   : > { %v4444_v1 = vpop.eup %3512 }
 0xdac   : > { %v3515_v3 = vpop.eup %3514  ;;  %v2095_v2 = vpop.xlane.xlu2 %2094  ;;  %v2549_v5 = vsel %vm557_vm0, %v4444_v1, 0.0 }
 0xdad   : > { %v2106_v7 = vmul.f32 %v3515_v3, %v4388_v13  ;;  %3516 = vrcp.f32 %v2095_v2  ;;  %2550 = vadd.xlane.f32.xlu2 %v2549_v5  ;;  %v3179_v2 = vld [vmem:[%s4690_s3 + $0x30] sm:$0xff] }
 0xdae   : > { %2438 = vmatpush.msra.mxu0 %v3179_v2 }
 0xdaf   : > { %3224 = vmatmul.msk.f32.vlgmr.msrb.gmra.mxu3 %vm557_vm0, %v2106_v7 }
 0xdb0   : > { %v2533_v9 = vpop.xlane.xlu1 %2532 }
 0xdb1   : > { %v2539_v58 = vsub.f32 %v4398_v32, %v2533_v9 }
 0xdb3   : > { %v3517_v10 = vpop.eup %3516  ;;  %v2545_v52 = vmul.f32 1.442695, %v2539_v58 }
 0xdb4   : > { %v2098_v25 = vpop.xlane.xlu0 %2097  ;;  %v2107_v11 = vmul.f32 %v3517_v10, %v4392_v28 }
 0xdb5   : > { %3518 = vpow2.f32 %v2545_v52 }
 0xdb6   : > { %3520 = vrcp.f32 %v2098_v25 }
 0xdb7   : > { %3225 = vmatmul.msk.f32.gmra.mxu3 %vm557_vm0, %v2107_v11  ;;  %3522 = vpow2.f32 %v2336_v24 }
 0xdbb   : > { %v4454_v13 = vpop.eup %3518 }
 0xdbc   : > { %v3521_v12 = vpop.eup %3520  ;;  %v2101_v15 = vpop.xlane.xlu2 %2100  ;;  %v2555_v32 = vsel %vm557_vm0, %v4454_v13, 0.0 }
 0xdbd   : > { %3524 = vrcp.f32 %v2101_v15  ;;  %2556 = vadd.xlane.f32.xlu1 %v2555_v32  ;;  %v2108_v43 = vmul.f32 %v3521_v12, %v4402_v18  ;;  %v4460_v28 = vpop.eup %3522 }
 0xdbe   : > { %v2347_v30 = vsel %vm557_vm0, %v4460_v28, 0.0 }
 0xdbf   : > { %3226 = vmatmul.msk.f32.gmra.mxu3 %vm557_vm0, %v2108_v43 }
 0xdc3   : > { %v3525_v26 = vpop.eup %3524 }
 0xdc4   : > { %v2340_v23 = vpop.xlane.xlu2 %2339  ;;  %v2109_v31 = vmul.f32 %v3525_v26, %v4407_v42  ;;  %v3180_v26 = vld [vmem:[%s4690_s3 + $0x38] sm:$0xff] }
 0xdc5   : > { %3526 = vrcp.f32 %v2340_v23  ;;  %2348 = vadd.xlane.f32.xlu1 %v2347_v30 }
 0xdc7   : > { %3227 = vmatmul.msk.f32.gmra.mxu3 %vm557_vm0, %v2109_v31 }
 0xdc8   : > { %v3375_v19 = vpop.permute.xlu1 %3374 }
 0xdc9   : > { %v3376_v14 = vunpack.i.l.bf16 %v3375_v19  ;;  %v3377_v29 = vunpack.i.h.bf16 %v3375_v19 }
 0xdcb   : > { %v3527_v16 = vpop.eup %3526  ;;  %2396 = vmatpush.msra.mxu3 %v3376_v14 }
 0xdcc   : > { %v2354_v18 = vmul.f32 %v3527_v16, %v4411_v27  ;;  %v2530_v35 = vpop.xlane.xlu2 %2529  ;;  %v3380_v27 = vpop.permute.xlu0 %3379 }
 0xdcd   : > { %v2538_v34 = vsub.f32 %v4419_v21, %v2530_v35  ;;  %2397 = vmatpush.msra.mxu3 %v3377_v29  ;;  %v3381_v54 = vunpack.i.l.bf16 %v3380_v27  ;;  %v3382_v59 = vunpack.i.h.bf16 %v3380_v27 }
 0xdcf   : > { %v2543_v36 = vmul.f32 1.442695, %v2538_v34  ;;  %3244 = vmatmul.msk.f32.vlgmr.msra.gmra.mxu3 %vm557_vm0, %v2354_v18 }
 0xdd0   : > { %2649 = vmatpush.msrb.mxu3 %v3180_v26 }
 0xdd1   : > { %3528 = vpow2.f32 %v2543_v36 }
 0xdd4   : > { %v2536_v42 = vpop.xlane.xlu2 %2535 }
 0xdd5   : > { %v2540_v38 = vsub.f32 %v4427_v33, %v2536_v42 }
 0xdd7   : > { %v3529_v22 = vpop.eup %3528  ;;  %v2547_v39 = vmul.f32 1.442695, %v2540_v38  ;;  %v3392_v38 = vld [vmem:[%s4691_s4 + $0x1] ss:$0 sm:$0xff] }
 0xdd8   : > { %v2552_v41 = vsel %vm557_vm0, %v3529_v22, 0.0 }
 0xdd9   : > { %3530 = vpow2.f32 %v2547_v39  ;;  %2553 = vadd.xlane.f32.xlu2 %v2552_v41 }
 0xddc   : > { %v3370_v44 = vpop.permute.xlu2 %3369 }
 0xddd   : > { %v3371_v48 = vunpack.i.l.bf16 %v3370_v44  ;;  %v3372_v51 = vunpack.i.h.bf16 %v3370_v44 }
 0xddf   : > { %v3531_v49 = vpop.eup %3530  ;;  %2605 = vmatpush.msra.mxu1 %v3371_v48 }
 0xde0   : > { %v2558_v21 = vsel %vm557_vm0, %v3531_v49, 0.0 }
 0xde1   : > { %2559 = vadd.xlane.f32.xlu2 %v2558_v21  ;;  %2606 = vmatpush.msra.mxu1 %v3372_v51 }
 0xde3   : > { %2607 = vmatpush.msra.mxu1 %v3381_v54 }
 0xde5   : > { %2608 = vmatpush.msra.mxu1 %v3382_v59 }
 0xdf2   : > { %v2346_v37 = vpop.xlane.xlu0 %2345 }
 0xdf3   : > { %v2343_v33 = vpop.xlane.xlu1 %2342 }
 0xdf4   : > { %3532 = vrcp.f32 %v2343_v33 }
 0xdf5   : > { %3534 = vrcp.f32 %v2346_v37 }
 0xdfa   : > { %v3533_v50 = vpop.eup %3532 }
 0xdfb   : > { %v2355_v60 = vmul.f32 %v3533_v50, %v4437_v57  ;;  %v3535_v61 = vpop.eup %3534 }
 0xdfc   : > { %v2356_v62 = vmul.f32 %v3535_v61, %v4435_v55 }
 0xdfd   : > { %3245 = vmatmul.msk.f32.gmra.mxu3 %vm557_vm0, %v2355_v60 }
 0xe05   : > { %3246 = vmatmul.msk.f32.gmra.mxu3 %vm557_vm0, %v2356_v62 }
 0xe20   : > { %v2551_v63 = vpop.xlane.xlu2 %2550 }
 0xe21   : > { %3536 = vrcp.f32 %v2551_v63 }
 0xe27   : > { %v3537_v0 = vpop.eup %3536 }
 0xe28   : > { %v2565_v3 = vmul.f32 %v3537_v0, %v4444_v1 }
 0xe2a   : > { %3260 = vmatmul.msk.f32.vlgmr.msra.gmra.mxu1 %vm557_vm0, %v2565_v3 }
 0xe30   : > { %v2557_v57 = vpop.xlane.xlu1 %2556 }
 0xe32   : > { %v2151_v55 = vpop.f32.mrf.mxu3 }
 0xe33   : > { %3228 = vmatmul.msk.f32.vlgmr.msrb.gmra.mxu0 %vm611_vm1, %v2151_v55 }
 0xe38   : > { %v2349_v5 = vpop.xlane.xlu1 %2348 }
 0xe39   : > { %3538 = vrcp.f32 %v2349_v5 }
 0xe3a   : > { %v2154_v7 = vpop.f32.mrf.mxu3 }
 0xe3b   : > { %3229 = vmatmul.msk.f32.gmra.mxu0 %vm611_vm1, %v2154_v7 }
 0xe3f   : > { %v3539_v9 = vpop.eup %3538 }
 0xe40   : > { %v2357_v58 = vmul.f32 %v3539_v9, %v4460_v28 }
 0xe42   : > { %v2157_v1 = vpop.f32.mrf.mxu3  ;;  %3247 = vmatmul.msk.f32.gmra.mxu3 %vm557_vm0, %v2357_v58 }
 0xe43   : > { %3230 = vmatmul.msk.f32.gmra.mxu0 %vm611_vm1, %v2157_v1 }
 0xe4a   : > { %v2160_v10 = vpop.f32.mrf.mxu3 }
 0xe4b   : > { %3231 = vmatmul.msk.f32.gmra.mxu0 %vm611_vm1, %v2160_v10 }
 0xe4c   : > { %v2554_v6 = vpop.xlane.xlu2 %2553 }
 0xe4d   : > { %3540 = vrcp.f32 %v2554_v6 }
 0xe4e   : > { %3542 = vrcp.f32 %v2557_v57 }
 0xe52   : > { %v2399_v52 = vpop.f32.mrf.mxu3 }
 0xe53   : > { %v3541_v25 = vpop.eup %3540  ;;  %3248 = vmatmul.msk.f32.vlgmr.msra.gmra.mxu0 %vm611_vm1, %v2399_v52 }
 0xe54   : > { %v2566_v11 = vmul.f32 %v3541_v25, %v3529_v22  ;;  %v2560_v24 = vpop.xlane.xlu2 %2559  ;;  %v3543_v12 = vpop.eup %3542 }
 0xe55   : > { %3544 = vrcp.f32 %v2560_v24  ;;  %v2567_v15 = vmul.f32 %v3543_v12, %v4454_v13 }
 0xe56   : > { %3261 = vmatmul.msk.f32.gmra.mxu1 %vm557_vm0, %v2566_v11 }
 0xe5b   : > { %v3545_v32 = vpop.eup %3544 }
 0xe5c   : > { %v2568_v43 = vmul.f32 %v3545_v32, %v3531_v49 }
 0xe5e   : > { %3262 = vmatmul.msk.f32.gmra.mxu1 %vm557_vm0, %v2567_v15 }
 0xe66   : > { %3263 = vmatmul.msk.f32.gmra.mxu1 %vm557_vm0, %v2568_v43 }
 0xe80   : > { %v2402_v28 = vpop.f32.mrf.mxu3 }
 0xe81   : > { %3249 = vmatmul.msk.f32.gmra.mxu0 %vm611_vm1, %v2402_v28 }
 0xe88   : > { %v2405_v23 = vpop.f32.mrf.mxu3 }
 0xe89   : > { %3250 = vmatmul.msk.f32.gmra.mxu0 %vm611_vm1, %v2405_v23  ;;  %v3187_v23 = vld [vmem:[%s4694_s7 + $0x38] sm:$0xff] }
 0xe8a   : > { %2807 = vmatpush.msrb.mxu0 %v3187_v23 }
 0xea7   : > { %v2610_v30 = vpop.f32.mrf.mxu1 }
 0xea8   : > { %3264 = vmatmul.msk.f32.vlgmr.msrb.gmra.mxu3 %vm611_vm1, %v2610_v30  ;;  %v3186_v30 = vld [vmem:[%s4694_s7 + $0x30] sm:$0xff] }
 0xea9   : > { %2808 = vmatpush.msrb.mxu0 %v3186_v30 }
 0xeb0   : > { %v2192_v16 = vpop.f32.mrf.mxu0 }
 0xeb1   : > { %v2234_v36 = vadd.f32 %v4372_v20, %v2192_v16 }
 0xeb8   : > { %v2195_v29 = vpop.f32.mrf.mxu0 }
 0xeb9   : > { %v2237_v49 = vadd.f32 %v4376_v45, %v2195_v29 }
 0xec0   : > { %v2198_v18 = vpop.f32.mrf.mxu0 }
 0xec1   : > { %v2240_v33 = vadd.f32 %v4378_v46, %v2198_v18 }
 0xec5   : > { %v2408_v13 = vpop.f32.mrf.mxu3 }
 0xec6   : > { %3251 = vmatmul.msk.f32.gmra.mxu0 %vm611_vm1, %v2408_v13  ;;  %v3185_v13 = vld [vmem:[%s4694_s7 + $0x28] sm:$0xff] }
 0xec7   : > { %2809 = vmatpush.msrb.mxu0 %v3185_v13  ;;  %v3190_v13 = vld [vmem:[%s4696_s9 + $0x48] sm:$0xff] }
 0xec8   : > { %v2201_v35 = vpop.f32.mrf.mxu0 }
 0xec9   : > { %v2243_v63 = vadd.f32 %v4380_v47, %v2201_v35 }
 0xed0   : > { %v2440_v34 = vpop.f32.mrf.mxu0 }
 0xed1   : > { %v2452_v42 = vadd.f32 %v2440_v34, %v2234_v36 }
 0xed3   : > { %v2613_v31 = vpop.f32.mrf.mxu1 }
 0xed4   : > { %3265 = vmatmul.msk.f32.gmra.mxu3 %vm611_vm1, %v2613_v31  ;;  %v3184_v31 = vld [vmem:[%s4694_s7 + $0x20] sm:$0xff] }
 0xed5   : > { %2810 = vmatpush.msrb.mxu0 %v3184_v31  ;;  %v3395_v31 = vld [vmem:[%s4695_s8 + $0x1] ss:$0 sm:$0xff] }
 0xedb   : > { %v2616_v19 = vpop.f32.mrf.mxu1 }
 0xedc   : > { %3266 = vmatmul.msk.f32.gmra.mxu3 %vm611_vm1, %v2616_v19 }
 0xee3   : > { %v2619_v14 = vpop.f32.mrf.mxu1 }
 0xee4   : > { %3267 = vmatmul.msk.f32.gmra.mxu3 %vm611_vm1, %v2619_v14 }
 0xefe   : > { %v2443_v27 = vpop.f32.mrf.mxu0 }
 0xeff   : > { %v2453_v51 = vadd.f32 %v2443_v27, %v2237_v49 }
 0xf06   : > { %v2446_v59 = vpop.f32.mrf.mxu0 }
 0xf07   : > { %v2454_v50 = vadd.f32 %v2446_v59, %v2240_v33 }
 0xf2b   : > { %v2651_v22 = vpop.f32.mrf.mxu3 }
 0xf2c   : > { %v2663_v39 = vadd.f32 %v2651_v22, %v2452_v42 }
 0xf2e   : > { %v2670_v41 = vadd.f32 %v3392_v38, %v2663_v39  ;;  %v4561_v39 = vld [vmem:[%s4693_s6 + $0x1] ss:$0 sm:$0xff] }
 0xf30   : > { %v2674_v44 = vadd.f32 %v2670_v41, %v4171_v56 }
 0xf32   : > { %v2678_v48 = vsel %vm557_vm0, %v2674_v44, 0.0 }
 0xf33   : > { %2679 = vadd.xlane.f32.xlu1 %v2678_v48 }
 0xf43   : > { %v2449_v40 = vpop.f32.mrf.mxu0 }
 0xf44   : > { %v2455_v0 = vadd.f32 %v2449_v40, %v2243_v63  ;;  %v3193_v63 = vld [vmem:[%s4696_s9 + $0x60] sm:$0xff] }
 0xf57   : > { %v2654_v21 = vpop.f32.mrf.mxu3 }
 0xf58   : > { %v2664_v54 = vadd.f32 %v2654_v21, %v2453_v51 }
 0xf5a   : > { %v2671_v20 = vadd.f32 %v3392_v38, %v2664_v54 }
 0xf5c   : > { %v2675_v37 = vadd.f32 %v2671_v20, %v4176_v4 }
 0xf5e   : > { %v2681_v60 = vsel %vm557_vm0, %v2675_v37, 0.0 }
 0xf5f   : > { %v2657_v61 = vpop.f32.mrf.mxu3  ;;  %2682 = vadd.xlane.f32.xlu2 %v2681_v60 }
 0xf60   : > { %v2665_v56 = vadd.f32 %v2657_v61, %v2454_v50  ;;  %v3195_v50 = vld [vmem:[%s4696_s9 + $0x70] sm:$0xff]  ;;  %v3194_v61 = vld [vmem:[%s4696_s9 + $0x68] sm:$0xff] }
 0xf62   : > { %v2672_v62 = vadd.f32 %v3392_v38, %v2665_v56 }
 0xf64   : > { %v2676_v45 = vadd.f32 %v2672_v62, %v4181_v17 }
 0xf66   : > { %v2684_v3 = vsel %vm557_vm0, %v2676_v45, 0.0 }
 0xf67   : > { %v2660_v57 = vpop.f32.mrf.mxu3  ;;  %2685 = vadd.xlane.f32.xlu1 %v2684_v3 }
 0xf68   : > { %v2666_v46 = vadd.f32 %v2660_v57, %v2455_v0  ;;  %v3192_v57 = vld [vmem:[%s4696_s9 + $0x58] sm:$0xff] }
 0xf6a   : > { %v2673_v2 = vadd.f32 %v3392_v38, %v2666_v46  ;;  %v4556_v38 = vld [vmem:[%s4692_s5 + $0x1] ss:$0 sm:$0xff] }
 0xf6c   : > { %v2677_v4 = vadd.f32 %v2673_v2, %v4186_v8 }
 0xf6e   : > { %v2687_v55 = vsel %vm557_vm0, %v2677_v4, 0.0 }
 0xf6f   : > { %2688 = vadd.xlane.f32.xlu0 %v2687_v55 }
 0xfa6   : > { %v2680_v5 = vpop.xlane.xlu1 %2679 }
 0xfa7   : > { %v2690_v7 = vmul.f32 %v2680_v5, %v4036_v53 }
 0xfa9   : > { %v2694_v9 = vsub.f32 %v2674_v44, %v2690_v7 }
 0xfab   : > { %v2698_v58 = vmul.f32 %v2694_v9, %v2694_v9 }
 0xfad   : > { %v2702_v47 = vsel %vm557_vm0, %v2698_v58, 0.0 }
 0xfae   : > { %2703 = vadd.xlane.f32.xlu2 %v2702_v47 }
 0xfd2   : > { %v2683_v17 = vpop.xlane.xlu2 %2682 }
 0xfd3   : > { %v2691_v1 = vmul.f32 %v2683_v17, %v4036_v53 }
 0xfd5   : > { %v4523_v10 = vsub.f32 %v2675_v37, %v2691_v1  ;;  %v3196_v37 = vld [vmem:[%s4696_s9 + $0x78] sm:$0xff] }
 0xfd6   : > { %2851 = vmatpush.msrb.mxu2 %v3196_v37 }
 0xfd7   : > { %v2699_v6 = vmul.f32 %v4523_v10, %v4523_v10 }
 0xfd8   : > { %2852 = vmatpush.msrb.mxu2 %v3195_v50 }
 0xfd9   : > { %v2705_v8 = vsel %vm557_vm0, %v2699_v6, 0.0 }
 0xfda   : > { %2706 = vadd.xlane.f32.xlu1 %v2705_v8  ;;  %v2686_v52 = vpop.xlane.xlu1 %2685  ;;  %2853 = vmatpush.msrb.mxu2 %v3194_v61 }
 0xfdb   : > { %v2692_v25 = vmul.f32 %v2686_v52, %v4036_v53 }
 0xfdc   : > { %2854 = vmatpush.msrb.mxu2 %v3193_v63 }
 0xfdd   : > { %v4529_v11 = vsub.f32 %v2676_v45, %v2692_v25 }
 0xfde   : > { %2855 = vmatpush.msrb.mxu2 %v3192_v57 }
 0xfdf   : > { %v2700_v24 = vmul.f32 %v4529_v11, %v4529_v11 }
 0xfe1   : > { %v2708_v12 = vsel %vm557_vm0, %v2700_v24, 0.0 }
 0xfe2   : > { %v2689_v15 = vpop.xlane.xlu0 %2688  ;;  %2709 = vadd.xlane.f32.xlu0 %v2708_v12 }
 0xfe3   : > { %v2693_v32 = vmul.f32 %v2689_v15, %v4036_v53 }
 0xfe5   : > { %v4535_v43 = vsub.f32 %v2677_v4, %v2693_v32 }
 0xfe7   : > { %v2701_v28 = vmul.f32 %v4535_v43, %v4535_v43 }
 0xfe9   : > { %v2711_v26 = vsel %vm557_vm0, %v2701_v28, 0.0 }
 0xfea   : > { %2712 = vadd.xlane.f32.xlu2 %v2711_v26 }
0x1021   : > { %v2704_v19 = vpop.xlane.xlu2 %2703 }
0x1022   : > { %v2714_v14 = vmul.f32 %v2704_v19, %v4036_v53 }
0x1024   : > { %v2718_v16 = vadd.f32 1e-05, %v2714_v14 }
0x1026   : > { %3546 = vrsqrt.f32 %v2718_v16  ;;  %vm2728_vm4 = vweird.f32 %v2718_v16 }
0x102c   : > { %v3547_v29 = vpop.eup %3546 }
0x102d   : > { %v2723_v18 = vmul.f32 %v3547_v29, %v2718_v16  ;;  %vm2729_vm1 = vweird.f32 %v3547_v29 }
0x102e   : > { %vm2730_vm7 = vmor %vm2728_vm4, %vm2729_vm1 }
0x102f   : > { %v2724_v35 = vmul.f32 %v3547_v29, %v2723_v18 }
0x1031   : > { %v2725_v34 = vmul.f32 0.5, %v2724_v35 }
0x1033   : > { %v2726_v36 = vsub.f32 1.5, %v2725_v34 }
0x1035   : > { %v2727_v42 = vmul.f32 %v3547_v29, %v2726_v36 }
0x1037   : > { %v2731_v22 = vsel %vm2730_vm7, %v3547_v29, %v2727_v42 }
0x1038   : > { %v2762_v41 = vmul.f32 %v2731_v22, %v2694_v9 }
0x103a   : > { %v2769_v44 = vmul.f32 %v4556_v38, %v2762_v41  ;;  %v3396_v41 = vld [vmem:[%s4697_s10 + $0x1] ss:$0 sm:$0xff] }
0x103c   : > { %v4565_v48 = vadd.f32 %v4561_v39, %v2769_v44 }
0x103e   : > { %3268 = vmatmul.msk.f32.vlgmr.msrb.gmra.mxu0 %vm557_vm0, %v4565_v48 }
0x104d   : > { %v2707_v27 = vpop.xlane.xlu1 %2706 }
0x104e   : > { %v2715_v49 = vmul.f32 %v2707_v27, %v4036_v53 }
0x1050   : > { %v2719_v51 = vadd.f32 1e-05, %v2715_v49 }
0x1052   : > { %3548 = vrsqrt.f32 %v2719_v51  ;;  %vm2738_vm13 = vweird.f32 %v2719_v51 }
0x1055   : > { %v2710_v21 = vpop.xlane.xlu0 %2709 }
0x1056   : > { %v2716_v54 = vmul.f32 %v2710_v21, %v4036_v53 }
0x1058   : > { %v3549_v20 = vpop.eup %3548  ;;  %v2720_v59 = vadd.f32 1e-05, %v2716_v54 }
0x1059   : > { %v2733_v33 = vmul.f32 %v3549_v20, %v2719_v51  ;;  %vm2739_vm10 = vweird.f32 %v3549_v20 }
0x105a   : > { %3550 = vrsqrt.f32 %v2720_v59  ;;  %vm2740_vm9 = vmor %vm2738_vm13, %vm2739_vm10  ;;  %vm2748_vm12 = vweird.f32 %v2720_v59 }
0x105b   : > { %v2734_v60 = vmul.f32 %v3549_v20, %v2733_v33 }
0x105d   : > { %v2735_v56 = vmul.f32 0.5, %v2734_v60  ;;  %v2713_v62 = vpop.xlane.xlu2 %2712 }
0x105e   : > { %v2717_v40 = vmul.f32 %v2713_v62, %v4036_v53 }
0x105f   : > { %v2736_v45 = vsub.f32 1.5, %v2735_v56 }
0x1060   : > { %v3551_v0 = vpop.eup %3550  ;;  %v2721_v3 = vadd.f32 1e-05, %v2717_v40 }
0x1061   : > { %v2737_v46 = vmul.f32 %v3549_v20, %v2736_v45  ;;  %v2743_v2 = vmul.f32 %v3551_v0, %v2720_v59  ;;  %vm2749_vm11 = vweird.f32 %v3551_v0 }
0x1062   : > { %3552 = vrsqrt.f32 %v2721_v3  ;;  %vm2750_vm14 = vmor %vm2748_vm12, %vm2749_vm11  ;;  %vm2758_vm2 = vweird.f32 %v2721_v3 }
0x1063   : > { %v2741_v4 = vsel %vm2740_vm9, %v3549_v20, %v2737_v46  ;;  %v2744_v55 = vmul.f32 %v3551_v0, %v2743_v2 }
0x1064   : > { %v2763_v5 = vmul.f32 %v2741_v4, %v4523_v10 }
0x1065   : > { %v2745_v7 = vmul.f32 0.5, %v2744_v55 }
0x1066   : > { %v2770_v9 = vmul.f32 %v4556_v38, %v2763_v5 }
0x1067   : > { %v2746_v58 = vsub.f32 1.5, %v2745_v7 }
0x1068   : > { %v3553_v47 = vpop.eup %3552  ;;  %v2777_v17 = vadd.f32 %v4561_v39, %v2770_v9 }
0x1069   : > { %v2747_v1 = vmul.f32 %v3551_v0, %v2746_v58  ;;  %v2753_v6 = vmul.f32 %v3553_v47, %v2721_v3  ;;  %vm2759_vm15 = vweird.f32 %v3553_v47 }
0x106a   : > { %3269 = vmatmul.msk.f32.gmra.mxu0 %vm557_vm0, %v2777_v17  ;;  %vm2760_vm5 = vmor %vm2758_vm2, %vm2759_vm15 }
0x106b   : > { %v2751_v8 = vsel %vm2750_vm14, %v3551_v0, %v2747_v1  ;;  %v2754_v52 = vmul.f32 %v3553_v47, %v2753_v6 }
0x106c   : > { %v2764_v25 = vmul.f32 %v2751_v8, %v4529_v11  ;;  %v3191_v11 = vld [vmem:[%s4696_s9 + $0x50] sm:$0xff] }
0x106d   : > { %v2755_v24 = vmul.f32 0.5, %v2754_v52  ;;  %2856 = vmatpush.msrb.mxu2 %v3191_v11 }
0x106e   : > { %v2771_v10 = vmul.f32 %v4556_v38, %v2764_v25  ;;  %v2981_v25 = vld [vmem:[%s4700_s13 + $0x18] sm:$0xff] }
0x106f   : > { %v2756_v12 = vsub.f32 1.5, %v2755_v24  ;;  %2857 = vmatpush.msrb.mxu2 %v3190_v13  ;;  %3010 = vmatpush.msrb.mxu1 %v2981_v25  ;;  %v2980_v24 = vld [vmem:[%s4700_s13 + $0x10] sm:$0xff] }
0x1070   : > { %v2778_v15 = vadd.f32 %v4561_v39, %v2771_v10  ;;  %v2979_v10 = vld [vmem:[%s4700_s13 + $0x8] sm:$0xff] }
0x1071   : > { %v2757_v32 = vmul.f32 %v3553_v47, %v2756_v12  ;;  %3011 = vmatpush.msrb.mxu1 %v2980_v24  ;;  %v2978_v12 = vld [vmem:[%s4700_s13] sm:$0xff] }
0x1072   : > { %3270 = vmatmul.msk.f32.gmra.mxu0 %vm557_vm0, %v2778_v15 }
0x1073   : > { %v2761_v28 = vsel %vm2760_vm5, %v3553_v47, %v2757_v32  ;;  %3012 = vmatpush.msrb.mxu1 %v2979_v10 }
0x1074   : > { %v2765_v26 = vmul.f32 %v2761_v28, %v4535_v43  ;;  %v3189_v43 = vld [vmem:[%s4696_s9 + $0x40] sm:$0xff] }
0x1075   : > { %2858 = vmatpush.msrb.mxu2 %v3189_v43  ;;  %3013 = vmatpush.msrb.mxu1 %v2978_v12 }
0x1076   : > { %v2772_v23 = vmul.f32 %v4556_v38, %v2765_v26 }
0x1078   : > { %v2779_v30 = vadd.f32 %v4561_v39, %v2772_v23 }
0x107a   : > { %3271 = vmatmul.msk.f32.gmra.mxu0 %vm557_vm0, %v2779_v30 }
0x10bb   : > { %v2812_v19 = vpop.f32.mrf.mxu0 }
0x10bc   : > { %v2813_v14 = vadd.f32 %v3395_v31, %v2812_v19 }
0x10be   : > { %v2824_v16 = vmax.f32 %v2813_v14, 0.0  ;;  %v3398_v14 = vld [vmem:[%s4699_s12 + $0x1] ss:$0 sm:$0xff] }
0x10c0   : > { %3272 = vmatmul.msk.f32.vlgmr.msrb.gmra.mxu2 %vm1603_vm3, %v2824_v16 }
0x10e7   : > { %v2815_v29 = vpop.f32.mrf.mxu0 }
0x10e8   : > { %v2816_v18 = vadd.f32 %v3395_v31, %v2815_v29 }
0x10ea   : > { %v2825_v35 = vmax.f32 %v2816_v18, 0.0 }
0x10ec   : > { %3273 = vmatmul.msk.f32.gmra.mxu2 %vm1603_vm3, %v2825_v35 }
0x10ef   : > { %v2818_v34 = vpop.f32.mrf.mxu0 }
0x10f0   : > { %v2819_v36 = vadd.f32 %v3395_v31, %v2818_v34 }
0x10f2   : > { %v2826_v42 = vmax.f32 %v2819_v36, 0.0 }
0x10f4   : > { %3274 = vmatmul.msk.f32.gmra.mxu2 %vm1603_vm3, %v2826_v42 }
0x10f7   : > { %v2821_v38 = vpop.f32.mrf.mxu0 }
0x10f8   : > { %v2822_v22 = vadd.f32 %v3395_v31, %v2821_v38  ;;  %v3397_v31 = vld [vmem:[%s4698_s11 + $0x1] ss:$0 sm:$0xff] }
0x10fa   : > { %v2827_v39 = vmax.f32 %v2822_v22, 0.0 }
0x10fc   : > { %3275 = vmatmul.msk.f32.gmra.mxu2 %vm1603_vm3, %v2827_v39 }
0x1143   : > { %v2860_v44 = vpop.f32.mrf.mxu2 }
0x1144   : > { %v2861_v27 = vadd.f32 %v3396_v41, %v2860_v44 }
0x1146   : > { %v2872_v49 = vadd.f32 %v2861_v27, %v4565_v48 }
0x1148   : > { %v2876_v51 = vsel %vm557_vm0, %v2872_v49, 0.0 }
0x1149   : > { %2877 = vadd.xlane.f32.xlu1 %v2876_v51 }
0x116f   : > { %v2863_v21 = vpop.f32.mrf.mxu2 }
0x1170   : > { %v2864_v54 = vadd.f32 %v3396_v41, %v2863_v21 }
0x1172   : > { %v2873_v20 = vadd.f32 %v2864_v54, %v2777_v17 }
0x1174   : > { %v2879_v59 = vsel %vm557_vm0, %v2873_v20, 0.0 }
0x1175   : > { %2880 = vadd.xlane.f32.xlu0 %v2879_v59 }
0x1177   : > { %v2866_v33 = vpop.f32.mrf.mxu2 }
0x1178   : > { %v2867_v37 = vadd.f32 %v3396_v41, %v2866_v33 }
0x117a   : > { %v2874_v50 = vadd.f32 %v2867_v37, %v2778_v15 }
0x117c   : > { %v2882_v60 = vsel %vm557_vm0, %v2874_v50, 0.0 }
0x117d   : > { %2883 = vadd.xlane.f32.xlu2 %v2882_v60 }
0x117f   : > { %v2869_v61 = vpop.f32.mrf.mxu2 }
0x1180   : > { %v2870_v56 = vadd.f32 %v3396_v41, %v2869_v61 }
0x1182   : > { %v2875_v62 = vadd.f32 %v2870_v56, %v2779_v30 }
0x1184   : > { %v2885_v48 = vsel %vm557_vm0, %v2875_v62, 0.0 }
0x1185   : > { %2886 = vadd.xlane.f32.xlu1 %v2885_v48 }
0x11bc   : > { %v2878_v40 = vpop.xlane.xlu1 %2877 }
0x11bd   : > { %v2888_v63 = vmul.f32 %v2878_v40, %v4036_v53 }
0x11bf   : > { %v2892_v45 = vsub.f32 %v2872_v49, %v2888_v63 }
0x11c1   : > { %v2896_v0 = vmul.f32 %v2892_v45, %v2892_v45 }
0x11c3   : > { %v2900_v3 = vsel %vm557_vm0, %v2896_v0, 0.0 }
0x11c4   : > { %2901 = vadd.xlane.f32.xlu0 %v2900_v3 }
0x11e8   : > { %v2881_v57 = vpop.xlane.xlu0 %2880 }
0x11e9   : > { %v2889_v46 = vmul.f32 %v2881_v57, %v4036_v53 }
0x11eb   : > { %v4626_v2 = vsub.f32 %v2873_v20, %v2889_v46 }
0x11ed   : > { %v2897_v4 = vmul.f32 %v4626_v2, %v4626_v2 }
0x11ef   : > { %v2903_v55 = vsel %vm557_vm0, %v2897_v4, 0.0 }
0x11f0   : > { %v2884_v5 = vpop.xlane.xlu2 %2883  ;;  %2904 = vadd.xlane.f32.xlu2 %v2903_v55 }
0x11f1   : > { %v2890_v7 = vmul.f32 %v2884_v5, %v4036_v53 }
0x11f3   : > { %v4632_v9 = vsub.f32 %v2874_v50, %v2890_v7 }
0x11f5   : > { %v2898_v58 = vmul.f32 %v4632_v9, %v4632_v9 }
0x11f7   : > { %v2906_v47 = vsel %vm557_vm0, %v2898_v58, 0.0 }
0x11f8   : > { %2907 = vadd.xlane.f32.xlu1 %v2906_v47  ;;  %v2887_v17 = vpop.xlane.xlu1 %2886 }
0x11f9   : > { %v2891_v1 = vmul.f32 %v2887_v17, %v4036_v53 }
0x11fb   : > { %v4638_v6 = vsub.f32 %v2875_v62, %v2891_v1 }
0x11fd   : > { %v2899_v8 = vmul.f32 %v4638_v6, %v4638_v6 }
0x11ff   : > { %v2909_v52 = vsel %vm557_vm0, %v2899_v8, 0.0 }
0x1200   : > { %2910 = vadd.xlane.f32.xlu0 %v2909_v52 }
0x1237   : > { %v2902_v15 = vpop.xlane.xlu0 %2901 }
0x1238   : > { %v2912_v32 = vmul.f32 %v2902_v15, %v4036_v53 }
0x123a   : > { %v2916_v28 = vadd.f32 1e-05, %v2912_v32 }
0x123c   : > { %3554 = vrsqrt.f32 %v2916_v28  ;;  %vm2926_vm6 = vweird.f32 %v2916_v28 }
0x1242   : > { %v3555_v26 = vpop.eup %3554 }
0x1243   : > { %v2921_v23 = vmul.f32 %v3555_v26, %v2916_v28  ;;  %vm2927_vm3 = vweird.f32 %v3555_v26 }
0x1244   : > { %vm2928_vm8 = vmor %vm2926_vm6, %vm2927_vm3 }
0x1245   : > { %v2922_v30 = vmul.f32 %v3555_v26, %v2921_v23 }
0x1247   : > { %v2923_v11 = vmul.f32 0.5, %v2922_v30 }
0x1249   : > { %v2924_v13 = vsub.f32 1.5, %v2923_v11 }
0x124b   : > { %v2925_v43 = vmul.f32 %v3555_v26, %v2924_v13 }
0x124d   : > { %v2929_v19 = vsel %vm2928_vm8, %v3555_v26, %v2925_v43 }
0x124e   : > { %v2960_v16 = vmul.f32 %v2929_v19, %v2892_v45 }
0x1250   : > { %v2967_v29 = vmul.f32 %v3397_v31, %v2960_v16 }
0x1252   : > { %v2974_v18 = vadd.f32 %v3398_v14, %v2967_v29 }
0x1254   : > { %3276 = vmatmul.msk.f32.vlgmr.msrb.gmra.mxu1 %vm557_vm0, %v2974_v18 }
0x1263   : > { %v2905_v35 = vpop.xlane.xlu2 %2904 }
0x1264   : > { %v2913_v34 = vmul.f32 %v2905_v35, %v4036_v53 }
0x1266   : > { %v2917_v36 = vadd.f32 1e-05, %v2913_v34 }
0x1268   : > { %3556 = vrsqrt.f32 %v2917_v36  ;;  %vm2936_vm4 = vweird.f32 %v2917_v36 }
0x126b   : > { %v2908_v42 = vpop.xlane.xlu1 %2907 }
0x126c   : > { %v2914_v38 = vmul.f32 %v2908_v42, %v4036_v53 }
0x126e   : > { %v3557_v22 = vpop.eup %3556  ;;  %v2918_v39 = vadd.f32 1e-05, %v2914_v38 }
0x126f   : > { %v2931_v41 = vmul.f32 %v3557_v22, %v2917_v36  ;;  %vm2937_vm1 = vweird.f32 %v3557_v22 }
0x1270   : > { %3558 = vrsqrt.f32 %v2918_v39  ;;  %vm2938_vm7 = vmor %vm2936_vm4, %vm2937_vm1  ;;  %vm2946_vm13 = vweird.f32 %v2918_v39 }
0x1271   : > { %v2932_v44 = vmul.f32 %v3557_v22, %v2931_v41 }
0x1273   : > { %v2933_v27 = vmul.f32 0.5, %v2932_v44  ;;  %v2911_v49 = vpop.xlane.xlu0 %2910 }
0x1274   : > { %v2915_v51 = vmul.f32 %v2911_v49, %v4036_v53 }
0x1275   : > { %v2934_v21 = vsub.f32 1.5, %v2933_v27 }
0x1276   : > { %v3559_v54 = vpop.eup %3558  ;;  %v2919_v20 = vadd.f32 1e-05, %v2915_v51 }
0x1277   : > { %v2935_v59 = vmul.f32 %v3557_v22, %v2934_v21  ;;  %v2941_v33 = vmul.f32 %v3559_v54, %v2918_v39  ;;  %vm2947_vm10 = vweird.f32 %v3559_v54 }
0x1278   : > { %3560 = vrsqrt.f32 %v2919_v20  ;;  %vm2948_vm9 = vmor %vm2946_vm13, %vm2947_vm10  ;;  %vm2956_vm12 = vweird.f32 %v2919_v20 }
0x1279   : > { %v2939_v37 = vsel %vm2938_vm7, %v3557_v22, %v2935_v59  ;;  %v2942_v50 = vmul.f32 %v3559_v54, %v2941_v33 }
0x127a   : > { %v2961_v60 = vmul.f32 %v2939_v37, %v4626_v2 }
0x127b   : > { %v2943_v61 = vmul.f32 0.5, %v2942_v50 }
0x127c   : > { %v2968_v56 = vmul.f32 %v3397_v31, %v2961_v60 }
0x127d   : > { %v2944_v62 = vsub.f32 1.5, %v2943_v61 }
0x127e   : > { %v3561_v48 = vpop.eup %3560  ;;  %v2975_v40 = vadd.f32 %v3398_v14, %v2968_v56 }
0x127f   : > { %v2945_v53 = vmul.f32 %v3559_v54, %v2944_v62  ;;  %v2951_v63 = vmul.f32 %v3561_v48, %v2919_v20  ;;  %vm2957_vm11 = vweird.f32 %v3561_v48 }
0x1280   : > { %3277 = vmatmul.msk.f32.gmra.mxu1 %vm557_vm0, %v2975_v40  ;;  %vm2958_vm14 = vmor %vm2956_vm12, %vm2957_vm11 }
0x1281   : > { %v2949_v45 = vsel %vm2948_vm9, %v3559_v54, %v2945_v53  ;;  %v2952_v0 = vmul.f32 %v3561_v48, %v2951_v63 }
0x1282   : > { %v2962_v3 = vmul.f32 %v2949_v45, %v4632_v9  ;;  %v3399_v9 = vld [vmem:[%s4701_s14] ss:$0 sm:$0xff] }
0x1283   : > { %v2953_v57 = vmul.f32 0.5, %v2952_v0 }
0x1284   : > { %v2969_v46 = vmul.f32 %v3397_v31, %v2962_v3 }
0x1285   : > { %v2954_v2 = vsub.f32 1.5, %v2953_v57 }
0x1286   : > { %v2976_v4 = vadd.f32 %v3398_v14, %v2969_v46 }
0x1287   : > { %v2955_v55 = vmul.f32 %v3561_v48, %v2954_v2 }
0x1288   : > { %3278 = vmatmul.msk.f32.gmra.mxu1 %vm557_vm0, %v2976_v4 }
0x1289   : > { %v2959_v5 = vsel %vm2958_vm14, %v3561_v48, %v2955_v55 }
0x128a   : > { %v2963_v7 = vmul.f32 %v2959_v5, %v4638_v6 }
0x128c   : > { %v2970_v58 = vmul.f32 %v3397_v31, %v2963_v7 }
0x128e   : > { %v2977_v47 = vadd.f32 %v3398_v14, %v2970_v58 }
0x1290   : > { %3279 = vmatmul.msk.f32.gmra.mxu1 %vm557_vm0, %v2977_v47 }
0x12d1   : > { %v3015_v17 = vpop.f32.mrf.mxu1 }
0x12d2   : > { %v3016_v1 = vadd.f32 %v3399_v9, %v3015_v17 }
0x12d4   : > { %3027 = vst.msk [vmem:[%s496_s21] sm:$0xff] %vm557_vm0, %v3016_v1 }
0x12fd   : > { %v3018_v8 = vpop.f32.mrf.mxu1 }
0x12fe   : > { %v3019_v52 = vadd.f32 %v3399_v9, %v3018_v8 }
0x1300   : > { %3028 = vst.msk [vmem:[%s496_s21 + $0x8] sm:$0xff] %vm557_vm0, %v3019_v52 }
0x1305   : > { %v3021_v6 = vpop.f32.mrf.mxu1 }
0x1306   : > { %v3022_v25 = vadd.f32 %v3399_v9, %v3021_v6 }
0x1308   : > { %3029 = vst.msk [vmem:[%s496_s21 + $0x10] sm:$0xff] %vm557_vm0, %v3022_v25 }
0x130d   : > { %v3024_v24 = vpop.f32.mrf.mxu1 }
0x130e   : > { %v3025_v10 = vadd.f32 %v3399_v9, %v3024_v24 }
0x1310   : > { %3030 = vst.msk [vmem:[%s496_s21 + $0x18] sm:$0xff] %vm557_vm0, %v3025_v10 }
0x1311 PF: > { %s25_s18 = sadd.s32 1, %s3572_s18  }
0x1312   : > { %p22_p4 = scmp.ge.s32.totalorder %s25_s18, 4  }
0x1314   :  { %24 = sbr.rel (!%p22_p4) target bundleno = 1 (0x1), region = 122 }

</bundles_post_ra>
